<compile_context>
chip_gen: v6e
topology: v6e:2x2x1
jax: 0.10.0
libtpu: 0.0.40
codegen_flags: <defaults>
</compile_context>

<pallas_src>
import functools

import jax
import jax.numpy as jnp
from jax.experimental import pallas as pl
from jax.experimental.pallas import tpu as pltpu

LANE = 128
_VMEM_LIMIT = 32 * 1024 * 1024


def _round_up(v, m):
    return ((v + m - 1) // m) * m


# ----------------------------------------------------------------------------
# Kernel 1: per-channel batch statistics (sum, sum of squares), (M, C_p) layout
# ----------------------------------------------------------------------------
def bn_stats_kernel(x_ref, sum_ref, sq_ref, acc_sum, acc_sq):
    """Channels on lanes, rows on sublanes -> sublane reduction (cheap VPU).

    The (1, C_p) accumulators live in VMEM scratch across the M-tile grid;
    init at step 0, write back at the last step (P3 pattern).
    """
    @pl.when(pl.program_id(0) == 0)
    def _():
        acc_sum[...] = jnp.zeros_like(acc_sum)
        acc_sq[...] = jnp.zeros_like(acc_sq)

    x = x_ref[...]                                        # (tm, C_p) f32
    acc_sum[...] += jnp.sum(x, axis=0, keepdims=True)
    acc_sq[...] += jnp.sum(x * x, axis=0, keepdims=True)

    @pl.when(pl.program_id(0) == pl.num_programs(0) - 1)
    def _():
        sum_ref[...] = acc_sum[...]
        sq_ref[...] = acc_sq[...]


# ----------------------------------------------------------------------------
# Kernel 2: fused BN-affine + ReLU + KxK conv (K*K accumulated matmuls)
# ----------------------------------------------------------------------------
def conv_bn_relu_kernel(x_ref, scale_ref, shift_ref, w_ref, bias_ref, o_ref,
                        ypad_ref, acc_ref, *, K, stride, padding,
                        H, W, H_out, W_out, operand_dtype):
    """One grid step = one image.

    The normalized+ReLU'd, spatially padded activation is built directly in a
    VMEM scratch (no HBM round trip, no 9x im2col).  Each (kh, kw) tap is a
    shifted slice of that slab fed to the MXU; accumulation in f32.
    """
    C_p = x_ref.shape[-1]
    Cout_p = o_ref.shape[-1]
    M_img = H_out * W_out

    # ---- BN affine + ReLU fused into the GEMM A-operand path (f32) --------
    scale = scale_ref[...].reshape(1, 1, C_p)
    shift = shift_ref[...].reshape(1, 1, C_p)
    y = jnp.maximum(x_ref[0] * scale + shift, 0.0)        # (H, W, C_p) f32

    if padding > 0:
        ypad_ref[...] = jnp.zeros_like(ypad_ref)          # conv halo = post-ReLU zeros
        ypad_ref[padding:padding + H, padding:padding + W, :] = y
    else:
        ypad_ref[...] = y

    # ---- conv = K*K accumulated (M_img, C_p) x (C_p, Cout_p) matmuls ------
    acc_ref[...] = jnp.broadcast_to(bias_ref[...], (M_img, Cout_p))
    for kh in range(K):
        for kw in range(K):
            if stride == 1:
                a = ypad_ref[kh:kh + H_out, kw:kw + W_out, :]
            else:
                # TODO(synk): strided sublane slicing path is not exercised here.
                a = ypad_ref[pl.ds(kh, H_out, stride=stride),
                             pl.ds(kw, W_out, stride=stride), :]
            a = a.reshape(M_img, C_p).astype(operand_dtype)
            acc_ref[...] += jnp.dot(a, w_ref[kh * K + kw],
                                    preferred_element_type=jnp.float32)

    o_ref[...] = acc_ref[...].reshape(1, M_img, Cout_p).astype(o_ref.dtype)


# ----------------------------------------------------------------------------
# Wrapper
# ----------------------------------------------------------------------------
def conv_bn_block_forward(x_nchw, w, b, gamma, beta, *, stride, padding,
                          operand_dtype=jnp.bfloat16):
    """x_nchw: (N, Cin, H, W); w: (Cout, Cin, K, K); b: (Cout,).  Returns NCHW."""
    N, C_in, H, W = x_nchw.shape
    C_out, _, K, _ = w.shape
    H_out = (H + 2 * padding - K) // stride + 1
    W_out = (W + 2 * padding - K) // stride + 1
    H_pad, W_pad = H + 2 * padding, W + 2 * padding
    M_img = H_out * W_out

    C_p = _round_up(C_in, LANE)        # channels on the lane axis
    Cout_p = _round_up(C_out, LANE)    # lane-dense GEMM output

    # Single layout change: NCHW -> NHWC (channel-last), pad C to 128 lanes.
    x_nhwc = jnp.transpose(x_nchw, (0, 2, 3, 1)).astype(jnp.float32)
    x_p = jnp.pad(x_nhwc, ((0, 0), (0, 0), (0, 0), (0, C_p - C_in)))

    # ---- Stage 1: per-channel batch statistics (tiled, pipelined) ---------
    M = N * H * W
    x2d = x_p.reshape(M, C_p)
    tm = min(256, _round_up(M, 8))
    M_rows = _round_up(M, tm)
    if M_rows != M:
        x2d = jnp.pad(x2d, ((0, M_rows - M), (0, 0)))     # zero rows: no effect on sums
    grid_m = M_rows // tm

    sum_c, sq_c = pl.pallas_call(
        bn_stats_kernel,
        grid=(grid_m,),
        in_specs=[pl.BlockSpec((tm, C_p), lambda i: (i, 0))],
        out_specs=(pl.BlockSpec((1, C_p), lambda i: (0, 0)),
                   pl.BlockSpec((1, C_p), lambda i: (0, 0))),
        out_shape=(jax.ShapeDtypeStruct((1, C_p), jnp.float32),
                   jax.ShapeDtypeStruct((1, C_p), jnp.float32)),
        scratch_shapes=[pltpu.VMEM((1, C_p), jnp.float32),
                        pltpu.VMEM((1, C_p), jnp.float32)],
        compiler_params=pltpu.CompilerParams(
            dimension_semantics=("arbitrary",),
            vmem_limit_bytes=_VMEM_LIMIT),
    )(x2d)

    # Fold BN into a per-channel scale/shift (tiny vectors, plain JAX).
    count = jnp.float32(M)
    mean = sum_c / count
    var = jnp.maximum(sq_c / count - mean * mean, 0.0)    # biased, training-mode BN
    gamma_p = jnp.pad(gamma.astype(jnp.float32), (0, C_p - C_in),
                      constant_values=1.0)[None, :]
    beta_p = jnp.pad(beta.astype(jnp.float32), (0, C_p - C_in))[None, :]
    scale = gamma_p * jax.lax.rsqrt(var + 1e-5)           # (1, C_p)
    shift = beta_p - mean * scale                         # (1, C_p)

    # Weights: (Cout, Cin, K, K) -> (K*K, C_p, Cout_p), bf16 for the MXU.
    w_mat = jnp.transpose(w, (2, 3, 1, 0))                # (K, K, Cin, Cout)
    w_mat = jnp.pad(w_mat, ((0, 0), (0, 0), (0, C_p - C_in), (0, Cout_p - C_out)))
    w_mat = w_mat.reshape(K * K, C_p, Cout_p).astype(operand_dtype)
    bias_p = jnp.pad(b.astype(jnp.float32), (0, Cout_p - C_out))[None, :]

    # ---- Stage 2: fused BN-affine + ReLU + conv -----------------------------
    # TODO(synk): for large H*W, tile H_out with halo DMA (manual make_async_copy)
    # instead of one per-image slab, so the scratch stays inside v7x's 64 MiB VMEM.
    kernel = functools.partial(
        conv_bn_relu_kernel, K=K, stride=stride, padding=padding,
        H=H, W=W, H_out=H_out, W_out=W_out, operand_dtype=operand_dtype)

    flops = 2 * N * M_img * K * K * C_p * Cout_p
    bytes_accessed = (N * H * W * C_p * 4 + K * K * C_p * Cout_p * 2
                      + N * M_img * Cout_p * 4)

    out_flat = pl.pallas_call(
        kernel,
        grid=(N,),
        in_specs=[
            pl.BlockSpec((1, H, W, C_p), lambda n: (n, 0, 0, 0)),
            pl.BlockSpec((1, C_p), lambda n: (0, 0)),
            pl.BlockSpec((1, C_p), lambda n: (0, 0)),
            pl.BlockSpec((K * K, C_p, Cout_p), lambda n: (0, 0, 0)),
            pl.BlockSpec((1, Cout_p), lambda n: (0, 0)),
        ],
        out_specs=pl.BlockSpec((1, M_img, Cout_p), lambda n: (n, 0, 0)),
        out_shape=jax.ShapeDtypeStruct((N, M_img, Cout_p), jnp.float32),
        scratch_shapes=[
            pltpu.VMEM((H_pad, W_pad, C_p), jnp.float32),   # padded activation slab
            pltpu.VMEM((M_img, Cout_p), jnp.float32),       # f32 accumulator
        ],
        compiler_params=pltpu.CompilerParams(
            dimension_semantics=("parallel",),
            vmem_limit_bytes=_VMEM_LIMIT),
        cost_estimate=pl.CostEstimate(flops=flops, transcendentals=0,
                                      bytes_accessed=bytes_accessed),
    )(x_p, scale, shift, w_mat, bias_p)

    out = out_flat.reshape(N, H_out, W_out, Cout_p)[..., :C_out]
    return jnp.transpose(out, (0, 3, 1, 2))               # back to NCHW


# ----------------------------------------------------------------------------
# Pure-JAX reference (PyTorch semantics); optional bf16 quantization of the
# conv operands so the MXU path can be checked with a tight tolerance.
# ----------------------------------------------------------------------------
def reference_forward(x, w, b, gamma, beta, *, stride, padding, operand_dtype=None):
    mean = jnp.mean(x, axis=(0, 2, 3), keepdims=True)
    var = jnp.maximum(jnp.mean(x * x, axis=(0, 2, 3), keepdims=True) - mean * mean, 0.0)
    y = gamma[None, :, None, None] * (x - mean) * jax.lax.rsqrt(var + 1e-5) \
        + beta[None, :, None, None]
    y = jnp.maximum(y, 0.0)
    wc = w
    if operand_dtype is not None:
        y = y.astype(operand_dtype).astype(jnp.float32)
        wc = w.astype(operand_dtype).astype(jnp.float32)
    out = jax.lax.conv_general_dilated(
        y, wc, window_strides=(stride, stride),
        padding=((padding, padding), (padding, padding)),
        dimension_numbers=("NCHW", "OIHW", "NCHW"))
    return out + b[None, :, None, None]


if __name__ == "__main__":
    # Small shapes consistent with the module's ctor signature.
    N, C_in, H, W = 2, 4, 16, 16
    C_out, K, stride, padding = 8, 3, 1, 1

    key = jax.random.PRNGKey(0)
    kx, kw, kb = jax.random.split(key, 3)

    x = jax.random.normal(kx, (N, C_in, H, W), dtype=jnp.float32)

    fan_in = C_in * K * K
    bound = 1.0 / (fan_in ** 0.5)
    w = jax.random.uniform(kw, (C_out, C_in, K, K), jnp.float32, -bound, bound)
    b = jax.random.uniform(kb, (C_out,), jnp.float32, -bound, bound)
    gamma = jnp.ones((C_in,), jnp.float32)
    beta = jnp.zeros((C_in,), jnp.float32)

    fwd = jax.jit(functools.partial(conv_bn_block_forward,
                                    stride=stride, padding=padding))
    out = jax.block_until_ready(fwd(x, w, b, gamma, beta))

    # Strict check vs a bf16-operand-matched reference (validates indexing/math).
    ref_bf16 = jax.block_until_ready(reference_forward(
        x, w, b, gamma, beta, stride=stride, padding=padding,
        operand_dtype=jnp.bfloat16))
    # Sanity check vs the pure-f32 PyTorch-semantics reference.
    ref_f32 = jax.block_until_ready(reference_forward(
        x, w, b, gamma, beta, stride=stride, padding=padding))

    assert out.shape == (N, C_out, H, W), out.shape
    err_strict = float(jnp.max(jnp.abs(out - ref_bf16)))
    err_f32 = float(jnp.max(jnp.abs(out - ref_f32)))
    assert err_strict < 5e-3, err_strict
    assert err_f32 < 8e-2, err_f32

    print("KERNEL_OK")
</pallas_src>

<mosaic_0001>
module attributes {stable_mosaic.version = 11 : i64} {
  func.func @bn_stats_kernel(%arg0: i32, %arg1: memref<256x128xf32, #tpu.memory_space<vmem>>, %arg2: memref<1x128xf32, #tpu.memory_space<vmem>>, %arg3: memref<1x128xf32, #tpu.memory_space<vmem>>, %arg4: memref<1x128xf32, #tpu.memory_space<vmem>>, %arg5: memref<1x128xf32, #tpu.memory_space<vmem>>) attributes {dimension_semantics = [#tpu.dimension_semantics<arbitrary>], iteration_bounds = array<i64: 2>, scalar_prefetch = 0 : i64, scratch_operands = 2 : i64, tpu.core_type = #tpu.core_type<tc>, window_params = [{transform_indices = @transform_0, window_bounds = array<i64: 256, 128>}, {pipeline_mode = #tpu.pipeline_mode<synchronous>, transform_indices = @transform_1, window_bounds = array<i64: 1, 128>}, {pipeline_mode = #tpu.pipeline_mode<synchronous>, transform_indices = @transform_2, window_bounds = array<i64: 1, 128>}]} {
    %c0_i32 = arith.constant 0 : i32
    %0 = arith.cmpi eq, %arg0, %c0_i32 : i32
    %1 = arith.extui %0 : i1 to i32
    %c0_i32_0 = arith.constant 0 : i32
    %2 = arith.cmpi ne, %1, %c0_i32_0 : i32
    scf.if %2 {
      %cst_12 = arith.constant 0.000000e+00 : f32
      %18 = vector.broadcast %cst_12 : f32 to vector<1x128xf32>
      %c0_13 = arith.constant 0 : index
      %c0_14 = arith.constant 0 : index
      %19 = vector.load %arg4[%c0_13, %c0_14] : memref<1x128xf32, #tpu.memory_space<vmem>>, vector<1x128xf32>
      tpu.vector_store %arg4[%c0_13, %c0_14], %18 {strides = array<i32>} : memref<1x128xf32, #tpu.memory_space<vmem>>, vector<1x128xf32>,
      %cst_15 = arith.constant 0.000000e+00 : f32
      %20 = vector.broadcast %cst_15 : f32 to vector<1x128xf32>
      %c0_16 = arith.constant 0 : index
      %c0_17 = arith.constant 0 : index
      %21 = vector.load %arg5[%c0_16, %c0_17] : memref<1x128xf32, #tpu.memory_space<vmem>>, vector<1x128xf32>
      tpu.vector_store %arg5[%c0_16, %c0_17], %20 {strides = array<i32>} : memref<1x128xf32, #tpu.memory_space<vmem>>, vector<1x128xf32>,
    } else {
    }
    %c0 = arith.constant 0 : index
    %c0_1 = arith.constant 0 : index
    %3 = vector.load %arg1[%c0, %c0_1] : memref<256x128xf32, #tpu.memory_space<vmem>>, vector<256x128xf32>
    %c0_2 = arith.constant 0 : index
    %c0_3 = arith.constant 0 : index
    %4 = vector.load %arg4[%c0_2, %c0_3] : memref<1x128xf32, #tpu.memory_space<vmem>>, vector<1x128xf32>
    %cst = arith.constant dense<0.000000e+00> : vector<128xf32>
    %5 = vector.multi_reduction <add>, %3, %cst [0] : vector<256x128xf32> to vector<128xf32>
    %6 = vector.shape_cast %5 : vector<128xf32> to vector<1x128xf32>
    %7 = arith.addf %4, %6 : vector<1x128xf32>
    %c0_4 = arith.constant 0 : index
    %c0_5 = arith.constant 0 : index
    %8 = vector.load %arg4[%c0_4, %c0_5] : memref<1x128xf32, #tpu.memory_space<vmem>>, vector<1x128xf32>
    tpu.vector_store %arg4[%c0_4, %c0_5], %7 {strides = array<i32>} : memref<1x128xf32, #tpu.memory_space<vmem>>, vector<1x128xf32>,
    %c0_6 = arith.constant 0 : index
    %c0_7 = arith.constant 0 : index
    %9 = vector.load %arg5[%c0_6, %c0_7] : memref<1x128xf32, #tpu.memory_space<vmem>>, vector<1x128xf32>
    %10 = arith.mulf %3, %3 : vector<256x128xf32>
    %cst_8 = arith.constant dense<0.000000e+00> : vector<128xf32>
    %11 = vector.multi_reduction <add>, %10, %cst_8 [0] : vector<256x128xf32> to vector<128xf32>
    %12 = vector.shape_cast %11 : vector<128xf32> to vector<1x128xf32>
    %13 = arith.addf %9, %12 : vector<1x128xf32>
    %c0_9 = arith.constant 0 : index
    %c0_10 = arith.constant 0 : index
    %14 = vector.load %arg5[%c0_9, %c0_10] : memref<1x128xf32, #tpu.memory_space<vmem>>, vector<1x128xf32>
    tpu.vector_store %arg5[%c0_9, %c0_10], %13 {strides = array<i32>} : memref<1x128xf32, #tpu.memory_space<vmem>>, vector<1x128xf32>,
    %c1_i32 = arith.constant 1 : i32
    %15 = arith.cmpi eq, %arg0, %c1_i32 : i32
    %16 = arith.extui %15 : i1 to i32
    %c0_i32_11 = arith.constant 0 : i32
    %17 = arith.cmpi ne, %16, %c0_i32_11 : i32
    scf.if %17 {
      %c0_12 = arith.constant 0 : index
      %c0_13 = arith.constant 0 : index
      %18 = vector.load %arg4[%c0_12, %c0_13] : memref<1x128xf32, #tpu.memory_space<vmem>>, vector<1x128xf32>
      %c0_14 = arith.constant 0 : index
      %c0_15 = arith.constant 0 : index
      %19 = vector.load %arg2[%c0_14, %c0_15] : memref<1x128xf32, #tpu.memory_space<vmem>>, vector<1x128xf32>
      tpu.vector_store %arg2[%c0_14, %c0_15], %18 {strides = array<i32>} : memref<1x128xf32, #tpu.memory_space<vmem>>, vector<1x128xf32>,
      %c0_16 = arith.constant 0 : index
      %c0_17 = arith.constant 0 : index
      %20 = vector.load %arg5[%c0_16, %c0_17] : memref<1x128xf32, #tpu.memory_space<vmem>>, vector<1x128xf32>
      %c0_18 = arith.constant 0 : index
      %c0_19 = arith.constant 0 : index
      %21 = vector.load %arg3[%c0_18, %c0_19] : memref<1x128xf32, #tpu.memory_space<vmem>>, vector<1x128xf32>
      tpu.vector_store %arg3[%c0_18, %c0_19], %20 {strides = array<i32>} : memref<1x128xf32, #tpu.memory_space<vmem>>, vector<1x128xf32>,
    } else {
    }
    return
  }
  func.func @transform_0(%arg0: i32) -> (i32, i32) {
    %c0_i32 = arith.constant 0 : i32
    %c0_i32_0 = arith.constant 0 : i32
    return %arg0, %c0_i32 : i32, i32
  }
  func.func @transform_1(%arg0: i32) -> (i32, i32) {
    %c0_i32 = arith.constant 0 : i32
    %c0_i32_0 = arith.constant 0 : i32
    %c0_i32_1 = arith.constant 0 : i32
    return %c0_i32, %c0_i32_0 : i32, i32
  }
  func.func @transform_2(%arg0: i32) -> (i32, i32) {
    %c0_i32 = arith.constant 0 : i32
    %c0_i32_0 = arith.constant 0 : i32
    %c0_i32_1 = arith.constant 0 : i32
    return %c0_i32, %c0_i32_0 : i32, i32
  }
}

module attributes {stable_mosaic.version = 11 : i64} {
  func.func @conv_bn_relu_kernel(%arg0: i32, %arg1: memref<1x16x16x128xf32, #tpu.memory_space<vmem>>, %arg2: memref<1x128xf32, #tpu.memory_space<vmem>>, %arg3: memref<1x128xf32, #tpu.memory_space<vmem>>, %arg4: memref<9x128x128xbf16, #tpu.memory_space<vmem>>, %arg5: memref<1x128xf32, #tpu.memory_space<vmem>>, %arg6: memref<1x256x128xf32, #tpu.memory_space<vmem>>, %arg7: memref<18x18x128xf32, #tpu.memory_space<vmem>>, %arg8: memref<256x128xf32, #tpu.memory_space<vmem>>) attributes {dimension_semantics = [#tpu.dimension_semantics<parallel>], iteration_bounds = array<i64: 2>, scalar_prefetch = 0 : i64, scratch_operands = 2 : i64, tpu.core_type = #tpu.core_type<tc>, window_params = [{transform_indices = @transform_0, window_bounds = array<i64: 1, 16, 16, 128>}, {pipeline_mode = #tpu.pipeline_mode<synchronous>, transform_indices = @transform_1, window_bounds = array<i64: 1, 128>}, {pipeline_mode = #tpu.pipeline_mode<synchronous>, transform_indices = @transform_2, window_bounds = array<i64: 1, 128>}, {pipeline_mode = #tpu.pipeline_mode<synchronous>, transform_indices = @transform_3, window_bounds = array<i64: 9, 128, 128>}, {pipeline_mode = #tpu.pipeline_mode<synchronous>, transform_indices = @transform_4, window_bounds = array<i64: 1, 128>}, {transform_indices = @transform_5, window_bounds = array<i64: 1, 256, 128>}]} {
    %c0 = arith.constant 0 : index
    %c0_0 = arith.constant 0 : index
    %0 = vector.load %arg2[%c0, %c0_0] : memref<1x128xf32, #tpu.memory_space<vmem>>, vector<1x128xf32>
    %1 = vector.shape_cast %0 : vector<1x128xf32> to vector<1x1x128xf32>
    %c0_1 = arith.constant 0 : index
    %c0_2 = arith.constant 0 : index
    %2 = vector.load %arg3[%c0_1, %c0_2] : memref<1x128xf32, #tpu.memory_space<vmem>>, vector<1x128xf32>
    %3 = vector.shape_cast %2 : vector<1x128xf32> to vector<1x1x128xf32>
    %c0_3 = arith.constant 0 : index
    %c0_4 = arith.constant 0 : index
    %c0_5 = arith.constant 0 : index
    %c0_6 = arith.constant 0 : index
    %4 = vector.load %arg1[%c0_3, %c0_4, %c0_5, %c0_6] : memref<1x16x16x128xf32, #tpu.memory_space<vmem>>, vector<1x16x16x128xf32>
    %5 = vector.shape_cast %4 : vector<1x16x16x128xf32> to vector<16x16x128xf32>
    %6 = vector.broadcast %1 : vector<1x1x128xf32> to vector<16x16x128xf32>
    %7 = arith.mulf %5, %6 : vector<16x16x128xf32>
    %8 = vector.broadcast %3 : vector<1x1x128xf32> to vector<16x16x128xf32>
    %9 = arith.addf %7, %8 : vector<16x16x128xf32>
    %cst = arith.constant 0.000000e+00 : f32
    %10 = vector.broadcast %cst : f32 to vector<16x16x128xf32>
    %11 = arith.maximumf %9, %10 : vector<16x16x128xf32>
    %cst_7 = arith.constant 0.000000e+00 : f32
    %12 = vector.broadcast %cst_7 : f32 to vector<18x18x128xf32>
    %c0_8 = arith.constant 0 : index
    %c0_9 = arith.constant 0 : index
    %c0_10 = arith.constant 0 : index
    %13 = vector.load %arg7[%c0_8, %c0_9, %c0_10] : memref<18x18x128xf32, #tpu.memory_space<vmem>>, vector<18x18x128xf32>
    tpu.vector_store %arg7[%c0_8, %c0_9, %c0_10], %12 {strides = array<i32>} : memref<18x18x128xf32, #tpu.memory_space<vmem>>, vector<18x18x128xf32>,
    %c1 = arith.constant 1 : index
    %c1_11 = arith.constant 1 : index
    %c0_12 = arith.constant 0 : index
    %14 = vector.load %arg7[%c1, %c1_11, %c0_12] : memref<18x18x128xf32, #tpu.memory_space<vmem>>, vector<16x16x128xf32>
    tpu.vector_store %arg7[%c1, %c1_11, %c0_12], %11 {strides = array<i32>} : memref<18x18x128xf32, #tpu.memory_space<vmem>>, vector<16x16x128xf32>,
    %c0_13 = arith.constant 0 : index
    %c0_14 = arith.constant 0 : index
    %15 = vector.load %arg5[%c0_13, %c0_14] : memref<1x128xf32, #tpu.memory_space<vmem>>, vector<1x128xf32>
    %16 = vector.shape_cast %15 : vector<1x128xf32> to vector<1x128xf32>
    %17 = vector.broadcast %16 : vector<1x128xf32> to vector<256x128xf32>
    %c0_15 = arith.constant 0 : index
    %c0_16 = arith.constant 0 : index
    %18 = vector.load %arg8[%c0_15, %c0_16] : memref<256x128xf32, #tpu.memory_space<vmem>>, vector<256x128xf32>
    tpu.vector_store %arg8[%c0_15, %c0_16], %17 {strides = array<i32>} : memref<256x128xf32, #tpu.memory_space<vmem>>, vector<256x128xf32>,
    %c0_17 = arith.constant 0 : index
    %c0_18 = arith.constant 0 : index
    %c0_19 = arith.constant 0 : index
    %19 = vector.load %arg7[%c0_17, %c0_18, %c0_19] : memref<18x18x128xf32, #tpu.memory_space<vmem>>, vector<16x16x128xf32>
    %20 = vector.shape_cast %19 : vector<16x16x128xf32> to vector<256x128xf32>
    %21 = arith.truncf %20 : vector<256x128xf32> to vector<256x128xbf16>
    %c0_20 = arith.constant 0 : index
    %c0_21 = arith.constant 0 : index
    %22 = vector.load %arg8[%c0_20, %c0_21] : memref<256x128xf32, #tpu.memory_space<vmem>>, vector<256x128xf32>
    %c0_22 = arith.constant 0 : index
    %c0_23 = arith.constant 0 : index
    %c0_24 = arith.constant 0 : index
    %23 = vector.load %arg4[%c0_22, %c0_23, %c0_24] : memref<9x128x128xbf16, #tpu.memory_space<vmem>>, vector<1x128x128xbf16>
    %24 = vector.shape_cast %23 : vector<1x128x128xbf16> to vector<128x128xbf16>
    %cst_25 = arith.constant dense<0.000000e+00> : vector<256x128xf32>
    %25 = tpu.matmul %21, %24, %cst_25 {dimension_numbers = #tpu.dot_dimension_numbers<[1], [0], [0], [1], [0, 0, 1, 1], [], []>} : vector<256x128xbf16>, vector<128x128xbf16>, vector<256x128xf32> -> vector<256x128xf32>
    %26 = arith.addf %22, %25 : vector<256x128xf32>
    %c0_26 = arith.constant 0 : index
    %c0_27 = arith.constant 0 : index
    %27 = vector.load %arg8[%c0_26, %c0_27] : memref<256x128xf32, #tpu.memory_space<vmem>>, vector<256x128xf32>
    tpu.vector_store %arg8[%c0_26, %c0_27], %26 {strides = array<i32>} : memref<256x128xf32, #tpu.memory_space<vmem>>, vector<256x128xf32>,
    %c0_28 = arith.constant 0 : index
    %c1_29 = arith.constant 1 : index
    %c0_30 = arith.constant 0 : index
    %28 = vector.load %arg7[%c0_28, %c1_29, %c0_30] : memref<18x18x128xf32, #tpu.memory_space<vmem>>, vector<16x16x128xf32>
    %29 = vector.shape_cast %28 : vector<16x16x128xf32> to vector<256x128xf32>
    %30 = arith.truncf %29 : vector<256x128xf32> to vector<256x128xbf16>
    %c0_31 = arith.constant 0 : index
    %c0_32 = arith.constant 0 : index
    %31 = vector.load %arg8[%c0_31, %c0_32] : memref<256x128xf32, #tpu.memory_space<vmem>>, vector<256x128xf32>
    %c1_33 = arith.constant 1 : index
    %c0_34 = arith.constant 0 : index
    %c0_35 = arith.constant 0 : index
    %32 = vector.load %arg4[%c1_33, %c0_34, %c0_35] : memref<9x128x128xbf16, #tpu.memory_space<vmem>>, vector<1x128x128xbf16>
    %33 = vector.shape_cast %32 : vector<1x128x128xbf16> to vector<128x128xbf16>
    %cst_36 = arith.constant dense<0.000000e+00> : vector<256x128xf32>
    %34 = tpu.matmul %30, %33, %cst_36 {dimension_numbers = #tpu.dot_dimension_numbers<[1], [0], [0], [1], [0, 0, 1, 1], [], []>} : vector<256x128xbf16>, vector<128x128xbf16>, vector<256x128xf32> -> vector<256x128xf32>
    %35 = arith.addf %31, %34 : vector<256x128xf32>
    %c0_37 = arith.constant 0 : index
    %c0_38 = arith.constant 0 : index
    %36 = vector.load %arg8[%c0_37, %c0_38] : memref<256x128xf32, #tpu.memory_space<vmem>>, vector<256x128xf32>
    tpu.vector_store %arg8[%c0_37, %c0_38], %35 {strides = array<i32>} : memref<256x128xf32, #tpu.memory_space<vmem>>, vector<256x128xf32>,
    %c0_39 = arith.constant 0 : index
    %c2 = arith.constant 2 : index
    %c0_40 = arith.constant 0 : index
    %37 = vector.load %arg7[%c0_39, %c2, %c0_40] : memref<18x18x128xf32, #tpu.memory_space<vmem>>, vector<16x16x128xf32>
    %38 = vector.shape_cast %37 : vector<16x16x128xf32> to vector<256x128xf32>
    %39 = arith.truncf %38 : vector<256x128xf32> to vector<256x128xbf16>
    %c0_41 = arith.constant 0 : index
    %c0_42 = arith.constant 0 : index
    %40 = vector.load %arg8[%c0_41, %c0_42] : memref<256x128xf32, #tpu.memory_space<vmem>>, vector<256x128xf32>
    %c2_43 = arith.constant 2 : index
    %c0_44 = arith.constant 0 : index
    %c0_45 = arith.constant 0 : index
    %41 = vector.load %arg4[%c2_43, %c0_44, %c0_45] : memref<9x128x128xbf16, #tpu.memory_space<vmem>>, vector<1x128x128xbf16>
    %42 = vector.shape_cast %41 : vector<1x128x128xbf16> to vector<128x128xbf16>
    %cst_46 = arith.constant dense<0.000000e+00> : vector<256x128xf32>
    %43 = tpu.matmul %39, %42, %cst_46 {dimension_numbers = #tpu.dot_dimension_numbers<[1], [0], [0], [1], [0, 0, 1, 1], [], []>} : vector<256x128xbf16>, vector<128x128xbf16>, vector<256x128xf32> -> vector<256x128xf32>
    %44 = arith.addf %40, %43 : vector<256x128xf32>
    %c0_47 = arith.constant 0 : index
    %c0_48 = arith.constant 0 : index
    %45 = vector.load %arg8[%c0_47, %c0_48] : memref<256x128xf32, #tpu.memory_space<vmem>>, vector<256x128xf32>
    tpu.vector_store %arg8[%c0_47, %c0_48], %44 {strides = array<i32>} : memref<256x128xf32, #tpu.memory_space<vmem>>, vector<256x128xf32>,
    %c1_49 = arith.constant 1 : index
    %c0_50 = arith.constant 0 : index
    %c0_51 = arith.constant 0 : index
    %46 = vector.load %arg7[%c1_49, %c0_50, %c0_51] : memref<18x18x128xf32, #tpu.memory_space<vmem>>, vector<16x16x128xf32>
    %47 = vector.shape_cast %46 : vector<16x16x128xf32> to vector<256x128xf32>
    %48 = arith.truncf %47 : vector<256x128xf32> to vector<256x128xbf16>
    %c0_52 = arith.constant 0 : index
    %c0_53 = arith.constant 0 : index
    %49 = vector.load %arg8[%c0_52, %c0_53] : memref<256x128xf32, #tpu.memory_space<vmem>>, vector<256x128xf32>
    %c3 = arith.constant 3 : index
    %c0_54 = arith.constant 0 : index
    %c0_55 = arith.constant 0 : index
    %50 = vector.load %arg4[%c3, %c0_54, %c0_55] : memref<9x128x128xbf16, #tpu.memory_space<vmem>>, vector<1x128x128xbf16>
    %51 = vector.shape_cast %50 : vector<1x128x128xbf16> to vector<128x128xbf16>
    %cst_56 = arith.constant dense<0.000000e+00> : vector<256x128xf32>
    %52 = tpu.matmul %48, %51, %cst_56 {dimension_numbers = #tpu.dot_dimension_numbers<[1], [0], [0], [1], [0, 0, 1, 1], [], []>} : vector<256x128xbf16>, vector<128x128xbf16>, vector<256x128xf32> -> vector<256x128xf32>
    %53 = arith.addf %49, %52 : vector<256x128xf32>
    %c0_57 = arith.constant 0 : index
    %c0_58 = arith.constant 0 : index
    %54 = vector.load %arg8[%c0_57, %c0_58] : memref<256x128xf32, #tpu.memory_space<vmem>>, vector<256x128xf32>
    tpu.vector_store %arg8[%c0_57, %c0_58], %53 {strides = array<i32>} : memref<256x128xf32, #tpu.memory_space<vmem>>, vector<256x128xf32>,
    %c1_59 = arith.constant 1 : index
    %c1_60 = arith.constant 1 : index
    %c0_61 = arith.constant 0 : index
    %55 = vector.load %arg7[%c1_59, %c1_60, %c0_61] : memref<18x18x128xf32, #tpu.memory_space<vmem>>, vector<16x16x128xf32>
    %56 = vector.shape_cast %55 : vector<16x16x128xf32> to vector<256x128xf32>
    %57 = arith.truncf %56 : vector<256x128xf32> to vector<256x128xbf16>
    %c0_62 = arith.constant 0 : index
    %c0_63 = arith.constant 0 : index
    %58 = vector.load %arg8[%c0_62, %c0_63] : memref<256x128xf32, #tpu.memory_space<vmem>>, vector<256x128xf32>
    %c4 = arith.constant 4 : index
    %c0_64 = arith.constant 0 : index
    %c0_65 = arith.constant 0 : index
    %59 = vector.load %arg4[%c4, %c0_64, %c0_65] : memref<9x128x128xbf16, #tpu.memory_space<vmem>>, vector<1x128x128xbf16>
    %60 = vector.shape_cast %59 : vector<1x128x128xbf16> to vector<128x128xbf16>
    %cst_66 = arith.constant dense<0.000000e+00> : vector<256x128xf32>
    %61 = tpu.matmul %57, %60, %cst_66 {dimension_numbers = #tpu.dot_dimension_numbers<[1], [0], [0], [1], [0, 0, 1, 1], [], []>} : vector<256x128xbf16>, vector<128x128xbf16>, vector<256x128xf32> -> vector<256x128xf32>
    %62 = arith.addf %58, %61 : vector<256x128xf32>
    %c0_67 = arith.constant 0 : index
    %c0_68 = arith.constant 0 : index
    %63 = vector.load %arg8[%c0_67, %c0_68] : memref<256x128xf32, #tpu.memory_space<vmem>>, vector<256x128xf32>
    tpu.vector_store %arg8[%c0_67, %c0_68], %62 {strides = array<i32>} : memref<256x128xf32, #tpu.memory_space<vmem>>, vector<256x128xf32>,
    %c1_69 = arith.constant 1 : index
    %c2_70 = arith.constant 2 : index
    %c0_71 = arith.constant 0 : index
    %64 = vector.load %arg7[%c1_69, %c2_70, %c0_71] : memref<18x18x128xf32, #tpu.memory_space<vmem>>, vector<16x16x128xf32>
    %65 = vector.shape_cast %64 : vector<16x16x128xf32> to vector<256x128xf32>
    %66 = arith.truncf %65 : vector<256x128xf32> to vector<256x128xbf16>
    %c0_72 = arith.constant 0 : index
    %c0_73 = arith.constant 0 : index
    %67 = vector.load %arg8[%c0_72, %c0_73] : memref<256x128xf32, #tpu.memory_space<vmem>>, vector<256x128xf32>
    %c5 = arith.constant 5 : index
    %c0_74 = arith.constant 0 : index
    %c0_75 = arith.constant 0 : index
    %68 = vector.load %arg4[%c5, %c0_74, %c0_75] : memref<9x128x128xbf16, #tpu.memory_space<vmem>>, vector<1x128x128xbf16>
    %69 = vector.shape_cast %68 : vector<1x128x128xbf16> to vector<128x128xbf16>
    %cst_76 = arith.constant dense<0.000000e+00> : vector<256x128xf32>
    %70 = tpu.matmul %66, %69, %cst_76 {dimension_numbers = #tpu.dot_dimension_numbers<[1], [0], [0], [1], [0, 0, 1, 1], [], []>} : vector<256x128xbf16>, vector<128x128xbf16>, vector<256x128xf32> -> vector<256x128xf32>
    %71 = arith.addf %67, %70 : vector<256x128xf32>
    %c0_77 = arith.constant 0 : index
    %c0_78 = arith.constant 0 : index
    %72 = vector.load %arg8[%c0_77, %c0_78] : memref<256x128xf32, #tpu.memory_space<vmem>>, vector<256x128xf32>
    tpu.vector_store %arg8[%c0_77, %c0_78], %71 {strides = array<i32>} : memref<256x128xf32, #tpu.memory_space<vmem>>, vector<256x128xf32>,
    %c2_79 = arith.constant 2 : index
    %c0_80 = arith.constant 0 : index
    %c0_81 = arith.constant 0 : index
    %73 = vector.load %arg7[%c2_79, %c0_80, %c0_81] : memref<18x18x128xf32, #tpu.memory_space<vmem>>, vector<16x16x128xf32>
    %74 = vector.shape_cast %73 : vector<16x16x128xf32> to vector<256x128xf32>
    %75 = arith.truncf %74 : vector<256x128xf32> to vector<256x128xbf16>
    %c0_82 = arith.constant 0 : index
    %c0_83 = arith.constant 0 : index
    %76 = vector.load %arg8[%c0_82, %c0_83] : memref<256x128xf32, #tpu.memory_space<vmem>>, vector<256x128xf32>
    %c6 = arith.constant 6 : index
    %c0_84 = arith.constant 0 : index
    %c0_85 = arith.constant 0 : index
    %77 = vector.load %arg4[%c6, %c0_84, %c0_85] : memref<9x128x128xbf16, #tpu.memory_space<vmem>>, vector<1x128x128xbf16>
    %78 = vector.shape_cast %77 : vector<1x128x128xbf16> to vector<128x128xbf16>
    %cst_86 = arith.constant dense<0.000000e+00> : vector<256x128xf32>
    %79 = tpu.matmul %75, %78, %cst_86 {dimension_numbers = #tpu.dot_dimension_numbers<[1], [0], [0], [1], [0, 0, 1, 1], [], []>} : vector<256x128xbf16>, vector<128x128xbf16>, vector<256x128xf32> -> vector<256x128xf32>
    %80 = arith.addf %76, %79 : vector<256x128xf32>
    %c0_87 = arith.constant 0 : index
    %c0_88 = arith.constant 0 : index
    %81 = vector.load %arg8[%c0_87, %c0_88] : memref<256x128xf32, #tpu.memory_space<vmem>>, vector<256x128xf32>
    tpu.vector_store %arg8[%c0_87, %c0_88], %80 {strides = array<i32>} : memref<256x128xf32, #tpu.memory_space<vmem>>, vector<256x128xf32>,
    %c2_89 = arith.constant 2 : index
    %c1_90 = arith.constant 1 : index
    %c0_91 = arith.constant 0 : index
    %82 = vector.load %arg7[%c2_89, %c1_90, %c0_91] : memref<18x18x128xf32, #tpu.memory_space<vmem>>, vector<16x16x128xf32>
    %83 = vector.shape_cast %82 : vector<16x16x128xf32> to vector<256x128xf32>
    %84 = arith.truncf %83 : vector<256x128xf32> to vector<256x128xbf16>
    %c0_92 = arith.constant 0 : index
    %c0_93 = arith.constant 0 : index
    %85 = vector.load %arg8[%c0_92, %c0_93] : memref<256x128xf32, #tpu.memory_space<vmem>>, vector<256x128xf32>
    %c7 = arith.constant 7 : index
    %c0_94 = arith.constant 0 : index
    %c0_95 = arith.constant 0 : index
    %86 = vector.load %arg4[%c7, %c0_94, %c0_95] : memref<9x128x128xbf16, #tpu.memory_space<vmem>>, vector<1x128x128xbf16>
    %87 = vector.shape_cast %86 : vector<1x128x128xbf16> to vector<128x128xbf16>
    %cst_96 = arith.constant dense<0.000000e+00> : vector<256x128xf32>
    %88 = tpu.matmul %84, %87, %cst_96 {dimension_numbers = #tpu.dot_dimension_numbers<[1], [0], [0], [1], [0, 0, 1, 1], [], []>} : vector<256x128xbf16>, vector<128x128xbf16>, vector<256x128xf32> -> vector<256x128xf32>
    %89 = arith.addf %85, %88 : vector<256x128xf32>
    %c0_97 = arith.constant 0 : index
    %c0_98 = arith.constant 0 : index
    %90 = vector.load %arg8[%c0_97, %c0_98] : memref<256x128xf32, #tpu.memory_space<vmem>>, vector<256x128xf32>
    tpu.vector_store %arg8[%c0_97, %c0_98], %89 {strides = array<i32>} : memref<256x128xf32, #tpu.memory_space<vmem>>, vector<256x128xf32>,
    %c2_99 = arith.constant 2 : index
    %c2_100 = arith.constant 2 : index
    %c0_101 = arith.constant 0 : index
    %91 = vector.load %arg7[%c2_99, %c2_100, %c0_101] : memref<18x18x128xf32, #tpu.memory_space<vmem>>, vector<16x16x128xf32>
    %92 = vector.shape_cast %91 : vector<16x16x128xf32> to vector<256x128xf32>
    %93 = arith.truncf %92 : vector<256x128xf32> to vector<256x128xbf16>
    %c0_102 = arith.constant 0 : index
    %c0_103 = arith.constant 0 : index
    %94 = vector.load %arg8[%c0_102, %c0_103] : memref<256x128xf32, #tpu.memory_space<vmem>>, vector<256x128xf32>
    %c8 = arith.constant 8 : index
    %c0_104 = arith.constant 0 : index
    %c0_105 = arith.constant 0 : index
    %95 = vector.load %arg4[%c8, %c0_104, %c0_105] : memref<9x128x128xbf16, #tpu.memory_space<vmem>>, vector<1x128x128xbf16>
    %96 = vector.shape_cast %95 : vector<1x128x128xbf16> to vector<128x128xbf16>
    %cst_106 = arith.constant dense<0.000000e+00> : vector<256x128xf32>
    %97 = tpu.matmul %93, %96, %cst_106 {dimension_numbers = #tpu.dot_dimension_numbers<[1], [0], [0], [1], [0, 0, 1, 1], [], []>} : vector<256x128xbf16>, vector<128x128xbf16>, vector<256x128xf32> -> vector<256x128xf32>
    %98 = arith.addf %94, %97 : vector<256x128xf32>
    %c0_107 = arith.constant 0 : index
    %c0_108 = arith.constant 0 : index
    %99 = vector.load %arg8[%c0_107, %c0_108] : memref<256x128xf32, #tpu.memory_space<vmem>>, vector<256x128xf32>
    tpu.vector_store %arg8[%c0_107, %c0_108], %98 {strides = array<i32>} : memref<256x128xf32, #tpu.memory_space<vmem>>, vector<256x128xf32>,
    %c0_109 = arith.constant 0 : index
    %c0_110 = arith.constant 0 : index
    %100 = vector.load %arg8[%c0_109, %c0_110] : memref<256x128xf32, #tpu.memory_space<vmem>>, vector<256x128xf32>
    %101 = vector.shape_cast %100 : vector<256x128xf32> to vector<1x256x128xf32>
    %c0_111 = arith.constant 0 : index
    %c0_112 = arith.constant 0 : index
    %c0_113 = arith.constant 0 : index
    %102 = vector.load %arg6[%c0_111, %c0_112, %c0_113] : memref<1x256x128xf32, #tpu.memory_space<vmem>>, vector<1x256x128xf32>
    tpu.vector_store %arg6[%c0_111, %c0_112, %c0_113], %101 {strides = array<i32>} : memref<1x256x128xf32, #tpu.memory_space<vmem>>, vector<1x256x128xf32>,
    return
  }
  func.func @transform_0(%arg0: i32) -> (i32, i32, i32, i32) {
    %c0_i32 = arith.constant 0 : i32
    %c0_i32_0 = arith.constant 0 : i32
    %c0_i32_1 = arith.constant 0 : i32
    %c0_i32_2 = arith.constant 0 : i32
    return %arg0, %c0_i32, %c0_i32_0, %c0_i32_1 : i32, i32, i32, i32
  }
  func.func @transform_1(%arg0: i32) -> (i32, i32) {
    %c0_i32 = arith.constant 0 : i32
    %c0_i32_0 = arith.constant 0 : i32
    %c0_i32_1 = arith.constant 0 : i32
    return %c0_i32, %c0_i32_0 : i32, i32
  }
  func.func @transform_2(%arg0: i32) -> (i32, i32) {
    %c0_i32 = arith.constant 0 : i32
    %c0_i32_0 = arith.constant 0 : i32
    %c0_i32_1 = arith.constant 0 : i32
    return %c0_i32, %c0_i32_0 : i32, i32
  }
  func.func @transform_3(%arg0: i32) -> (i32, i32, i32) {
    %c0_i32 = arith.constant 0 : i32
    %c0_i32_0 = arith.constant 0 : i32
    %c0_i32_1 = arith.constant 0 : i32
    %c0_i32_2 = arith.constant 0 : i32
    return %c0_i32, %c0_i32_0, %c0_i32_1 : i32, i32, i32
  }
  func.func @transform_4(%arg0: i32) -> (i32, i32) {
    %c0_i32 = arith.constant 0 : i32
    %c0_i32_0 = arith.constant 0 : i32
    %c0_i32_1 = arith.constant 0 : i32
    return %c0_i32, %c0_i32_0 : i32, i32
  }
  func.func @transform_5(%arg0: i32) -> (i32, i32, i32) {
    %c0_i32 = arith.constant 0 : i32
    %c0_i32_0 = arith.constant 0 : i32
    %c0_i32_1 = arith.constant 0 : i32
    return %arg0, %c0_i32, %c0_i32_0 : i32, i32, i32
  }
}

</mosaic_0001>

<bundles_post_ra>
// kernel: conv_bn_block_forward.2
= control target key start
LH: loop header
LB: loop body
LE: loop exit
PB: predicated region body
PF: predicated region fallthrough
CT: control target
= control target key end

     0   :  { %s364_s9 = smov 0   ;;  %s423_s0 = inlined_call_operand.vmem [shape: f32[512,128], index: 0, kind: input, shape index: {}]   ;;  %s424_s1 = inlined_call_operand.vmem [shape: f32[1,128], index: 1, kind: output, shape index: {0}]   ;;  %s425_s2 = inlined_call_operand.vmem [shape: f32[1,128], index: 2, kind: output, shape index: {1}]  }
   0x1 LB: > { %s370_s10 = sadd.s32 4294967295, %s346_s9   ;;  %p324_p0 = scmp.ge.s32.totalorder %s346_s9, 1  ;;  %s346_s9 = sphi %s364_s9, %s13_s9  }
   0x2   : > { %p106_p1 = scmp.lt.s32.totalorder %s346_s9, 3 }
   0x4   : > { %p107_p2 = pnand %p324_p0, %p106_p1 }
   0x5   : > { %s325_s11 = sshll.u32 (!%p107_p2), %s370_s10, 5  ;;  %p327_p4 = scmp.ne.s32.totalorder (!%p107_p2), %s370_s10, 0 }
   0x6   : > { %110 = sbr.rel (%p107_p2) target bundleno = 106 (0x6a), region = 24  ;;  %p124_p3 = scmp.lt.s32.totalorder (!%p107_p2), %s325_s11, 63 }
   0xb   : > { %s427_s11 = smov (!%p124_p3, %s325_s11), 63  ;;  %132 = sbr.rel (%p327_p4) target bundleno = 18 (0x12), region = 28 }
   0xc   : > { %s326_s12 = sshll.u32 %s427_s11, 3 }
   0xd   : > { %s378_s15 = scalar_lea.vmem %s423_s0, %s326_s12 }
  0x10   : > { %v348_v0 = vmov 0.0  }
  0x11   : > { %133 = vst [vmem:[#allocation2] sm:$0x1] %v348_v0  ;;  %134 = vst [vmem:[#allocation3] sm:$0x1] %v348_v0 }
  0x12 PF: > { %v135_v1 = vld [vmem:[%s378_s15] sm:$0xff]  ;;  %v136_v2 = vld [vmem:[%s378_s15 + $0x8] sm:$0xff]  ;;  %v137_v3 = vld [vmem:[%s378_s15 + $0x10] sm:$0xff]  ;;  %p328_p5 = scmp.ne.s32.totalorder %s370_s10, 1 }
  0x13   : > { %v138_v4 = vld [vmem:[%s378_s15 + $0x18] sm:$0xff]  ;;  %v168_v5 = vadd.f32 %v136_v2, %v135_v1  ;;  %v208_v6 = vmul.f32 %v135_v1, %v135_v1  ;;  %v209_v7 = vmul.f32 %v136_v2, %v136_v2  ;;  %v210_v8 = vmul.f32 %v137_v3, %v137_v3  ;;  %v139_v9 = vld [vmem:[%s378_s15 + $0x20] sm:$0xff]  ;;  %v140_v13 = vld [vmem:[%s378_s15 + $0x28] sm:$0xff] }
  0x14   : > { %v211_v11 = vmul.f32 %v138_v4, %v138_v4  ;;  %v212_v15 = vmul.f32 %v139_v9, %v139_v9  ;;  %v141_v17 = vld [vmem:[%s378_s15 + $0x30] sm:$0xff]  ;;  %v213_v19 = vmul.f32 %v140_v13, %v140_v13  ;;  %v142_v21 = vld [vmem:[%s378_s15 + $0x38] sm:$0xff]  ;;  %v143_v25 = vld [vmem:[%s378_s15 + $0x40] sm:$0xff] }
  0x15   : > { %v169_v10 = vadd.f32 %v168_v5, %v137_v3  ;;  %v240_v12 = vadd.f32 %v209_v7, %v208_v6  ;;  %v214_v23 = vmul.f32 %v141_v17, %v141_v17  ;;  %v215_v27 = vmul.f32 %v142_v21, %v142_v21  ;;  %v144_v29 = vld [vmem:[%s378_s15 + $0x48] sm:$0xff]  ;;  %v145_v33 = vld [vmem:[%s378_s15 + $0x50] sm:$0xff]  ;;  %v146_v37 = vld [vmem:[%s378_s15 + $0x58] sm:$0xff] }
  0x16   : > { %v216_v31 = vmul.f32 %v143_v25, %v143_v25  ;;  %v217_v35 = vmul.f32 %v144_v29, %v144_v29  ;;  %v218_v39 = vmul.f32 %v145_v33, %v145_v33  ;;  %v147_v41 = vld [vmem:[%s378_s15 + $0x60] sm:$0xff]  ;;  %v219_v43 = vmul.f32 %v146_v37, %v146_v37  ;;  %v148_v45 = vld [vmem:[%s378_s15 + $0x68] sm:$0xff]  ;;  %v149_v49 = vld [vmem:[%s378_s15 + $0x70] sm:$0xff] }
  0x17   : > { %v170_v14 = vadd.f32 %v169_v10, %v138_v4  ;;  %v241_v16 = vadd.f32 %v240_v12, %v210_v8  ;;  %v220_v47 = vmul.f32 %v147_v41, %v147_v41  ;;  %v221_v51 = vmul.f32 %v148_v45, %v148_v45  ;;  %v150_v53 = vld [vmem:[%s378_s15 + $0x78] sm:$0xff]  ;;  %v151_v57 = vld [vmem:[%s378_s15 + $0x80] sm:$0xff]  ;;  %v152_v61 = vld [vmem:[%s378_s15 + $0x88] sm:$0xff] }
  0x18   : > { %v222_v55 = vmul.f32 %v149_v49, %v149_v49  ;;  %v223_v59 = vmul.f32 %v150_v53, %v150_v53  ;;  %v224_v63 = vmul.f32 %v151_v57, %v151_v57  ;;  %v153_v1 = vld [vmem:[%s378_s15 + $0x90] sm:$0xff]  ;;  %v225_v3 = vmul.f32 %v152_v61, %v152_v61  ;;  %v154_v5 = vld [vmem:[%s378_s15 + $0x98] sm:$0xff] }
  0x19   : > { %v171_v18 = vadd.f32 %v170_v14, %v139_v9  ;;  %v242_v20 = vadd.f32 %v241_v16, %v211_v11  ;;  %v226_v7 = vmul.f32 %v153_v1, %v153_v1  ;;  %v155_v9 = vld [vmem:[%s378_s15 + $0xa0] sm:$0xff]  ;;  %v227_v11 = vmul.f32 %v154_v5, %v154_v5 }
  0x1b   : > { %v172_v22 = vadd.f32 %v171_v18, %v140_v13  ;;  %v243_v24 = vadd.f32 %v242_v20, %v212_v15  ;;  %v156_v13 = vld [vmem:[%s378_s15 + $0xa8] sm:$0xff]  ;;  %v228_v15 = vmul.f32 %v155_v9, %v155_v9 }
  0x1d   : > { %v173_v26 = vadd.f32 %v172_v22, %v141_v17  ;;  %v244_v28 = vadd.f32 %v243_v24, %v213_v19  ;;  %v157_v17 = vld [vmem:[%s378_s15 + $0xb0] sm:$0xff]  ;;  %v229_v19 = vmul.f32 %v156_v13, %v156_v13 }
  0x1f   : > { %v174_v30 = vadd.f32 %v173_v26, %v142_v21  ;;  %v245_v32 = vadd.f32 %v244_v28, %v214_v23  ;;  %v158_v21 = vld [vmem:[%s378_s15 + $0xb8] sm:$0xff]  ;;  %v230_v23 = vmul.f32 %v157_v17, %v157_v17 }
  0x21   : > { %v175_v34 = vadd.f32 %v174_v30, %v143_v25  ;;  %v246_v36 = vadd.f32 %v245_v32, %v215_v27  ;;  %v159_v25 = vld [vmem:[%s378_s15 + $0xc0] sm:$0xff]  ;;  %v231_v27 = vmul.f32 %v158_v21, %v158_v21 }
  0x23   : > { %v176_v38 = vadd.f32 %v175_v34, %v144_v29  ;;  %v247_v40 = vadd.f32 %v246_v36, %v216_v31  ;;  %v160_v29 = vld [vmem:[%s378_s15 + $0xc8] sm:$0xff]  ;;  %v232_v31 = vmul.f32 %v159_v25, %v159_v25 }
  0x25   : > { %v177_v42 = vadd.f32 %v176_v38, %v145_v33  ;;  %v248_v44 = vadd.f32 %v247_v40, %v217_v35  ;;  %v161_v33 = vld [vmem:[%s378_s15 + $0xd0] sm:$0xff]  ;;  %v233_v35 = vmul.f32 %v160_v29, %v160_v29 }
  0x27   : > { %v178_v46 = vadd.f32 %v177_v42, %v146_v37  ;;  %v249_v48 = vadd.f32 %v248_v44, %v218_v39  ;;  %v162_v37 = vld [vmem:[%s378_s15 + $0xd8] sm:$0xff]  ;;  %v234_v39 = vmul.f32 %v161_v33, %v161_v33 }
  0x29   : > { %v179_v50 = vadd.f32 %v178_v46, %v147_v41  ;;  %v250_v52 = vadd.f32 %v249_v48, %v219_v43  ;;  %v163_v41 = vld [vmem:[%s378_s15 + $0xe0] sm:$0xff]  ;;  %v235_v43 = vmul.f32 %v162_v37, %v162_v37 }
  0x2b   : > { %v180_v54 = vadd.f32 %v179_v50, %v148_v45  ;;  %v251_v56 = vadd.f32 %v250_v52, %v220_v47  ;;  %v164_v45 = vld [vmem:[%s378_s15 + $0xe8] sm:$0xff]  ;;  %v236_v47 = vmul.f32 %v163_v41, %v163_v41 }
  0x2d   : > { %v181_v58 = vadd.f32 %v180_v54, %v149_v49  ;;  %v252_v60 = vadd.f32 %v251_v56, %v221_v51  ;;  %v165_v49 = vld [vmem:[%s378_s15 + $0xf0] sm:$0xff]  ;;  %v237_v51 = vmul.f32 %v164_v45, %v164_v45 }
  0x2f   : > { %v182_v62 = vadd.f32 %v181_v58, %v150_v53  ;;  %v253_v0 = vadd.f32 %v252_v60, %v222_v55  ;;  %v166_v53 = vld [vmem:[%s378_s15 + $0xf8] sm:$0xff]  ;;  %v238_v55 = vmul.f32 %v165_v49, %v165_v49 }
  0x30   : > { %v239_v58 = vmul.f32 %v166_v53, %v166_v53 }
  0x31   : > { %v183_v2 = vadd.f32 %v182_v62, %v151_v57  ;;  %v254_v4 = vadd.f32 %v253_v0, %v223_v59 }
  0x33   : > { %v184_v6 = vadd.f32 %v183_v2, %v152_v61  ;;  %v255_v8 = vadd.f32 %v254_v4, %v224_v63 }
  0x35   : > { %v185_v10 = vadd.f32 %v184_v6, %v153_v1  ;;  %v256_v12 = vadd.f32 %v255_v8, %v225_v3 }
  0x37   : > { %v186_v14 = vadd.f32 %v185_v10, %v154_v5  ;;  %v257_v16 = vadd.f32 %v256_v12, %v226_v7  ;;  %v167_v7 = vld [vmem:[#allocation2] sm:$0x1]  ;;  %v207_v12 = vld [vmem:[#allocation3] sm:$0x1] }
  0x39   : > { %v187_v18 = vadd.f32 %v186_v14, %v155_v9  ;;  %v258_v20 = vadd.f32 %v257_v16, %v227_v11 }
  0x3b   : > { %v188_v22 = vadd.f32 %v187_v18, %v156_v13  ;;  %v259_v24 = vadd.f32 %v258_v20, %v228_v15 }
  0x3d   : > { %v189_v26 = vadd.f32 %v188_v22, %v157_v17  ;;  %v260_v28 = vadd.f32 %v259_v24, %v229_v19 }
  0x3f   : > { %v190_v30 = vadd.f32 %v189_v26, %v158_v21  ;;  %v261_v32 = vadd.f32 %v260_v28, %v230_v23 }
  0x41   : > { %v191_v34 = vadd.f32 %v190_v30, %v159_v25  ;;  %v262_v36 = vadd.f32 %v261_v32, %v231_v27 }
  0x43   : > { %v192_v38 = vadd.f32 %v191_v34, %v160_v29  ;;  %v263_v40 = vadd.f32 %v262_v36, %v232_v31 }
  0x45   : > { %v193_v42 = vadd.f32 %v192_v38, %v161_v33  ;;  %v264_v44 = vadd.f32 %v263_v40, %v233_v35 }
  0x47   : > { %v194_v46 = vadd.f32 %v193_v42, %v162_v37  ;;  %v265_v48 = vadd.f32 %v264_v44, %v234_v39 }
  0x49   : > { %v195_v50 = vadd.f32 %v194_v46, %v163_v41  ;;  %v266_v52 = vadd.f32 %v265_v48, %v235_v43 }
  0x4b   : > { %v196_v54 = vadd.f32 %v195_v50, %v164_v45  ;;  %v267_v56 = vadd.f32 %v266_v52, %v236_v47 }
  0x4d   : > { %v197_v57 = vadd.f32 %v196_v54, %v165_v49  ;;  %v268_v59 = vadd.f32 %v267_v56, %v237_v51 }
  0x4f   : > { %v198_v60 = vadd.f32 %v197_v57, %v166_v53  ;;  %v269_v61 = vadd.f32 %v268_v59, %v238_v55 }
  0x51   : > { %v199_v62 = vrot.slane %v198_v60, 4  ;;  %v270_v63 = vadd.f32 %v269_v61, %v239_v58 }
  0x53   : > { %v200_v0 = vadd.f32 %v199_v62, %v198_v60  ;;  %v271_v1 = vrot.slane %v270_v63, 4 }
  0x55   : > { %v201_v2 = vrot.slane %v200_v0, 2  ;;  %v272_v3 = vadd.f32 %v271_v1, %v270_v63 }
  0x57   : > { %v202_v4 = vadd.f32 %v201_v2, %v200_v0  ;;  %v273_v5 = vrot.slane %v272_v3, 2 }
  0x59   : > { %v203_v6 = vrot.slane %v202_v4, 1  ;;  %v274_v8 = vadd.f32 %v273_v5, %v272_v3 }
  0x5b   : > { %v204_v9 = vadd.f32 %v203_v6, %v202_v4  ;;  %v275_v10 = vrot.slane %v274_v8, 1 }
  0x5d   : > { %v205_v11 = vadd.f32 %v204_v9, %v167_v7  ;;  %v276_v13 = vadd.f32 %v275_v10, %v274_v8  ;;  %282 = sbr.rel (%p328_p5) target bundleno = 106 (0x6a), region = 32 }
  0x5f   : > { %206 = vst [vmem:[#allocation2] sm:$0x1] %v205_v11  ;;  %v277_v14 = vadd.f32 %v276_v13, %v207_v12 }
  0x61   : > { %278 = vst [vmem:[#allocation3] sm:$0x1] %v277_v14 }
  0x66   : > { %v283_v15 = vld [vmem:[#allocation2] sm:$0x1] }
  0x67   : > { %284 = vst [vmem:[%s424_s1] sm:$0x1] %v283_v15 }
  0x68   : > { %v285_v16 = vld [vmem:[#allocation3] sm:$0x1] }
  0x69   : > { %286 = vst [vmem:[%s425_s2] sm:$0x1] %v285_v16 }
  0x6a PF: > { %s13_s9 = sadd.s32 1, %s346_s9  }
  0x6b   : > { %p10_p6 = scmp.ge.s32.totalorder %s13_s9, 4  }
  0x6d   :  { %12 = sbr.rel (!%p10_p6) target bundleno = 1 (0x1), region = 66 }

// kernel: conv_bn_block_forward.3
= control target key start
LH: loop header
LB: loop body
LE: loop exit
PB: predicated region body
PF: predicated region fallthrough
CT: control target
= control target key end

     0   :  { %s4945_s18 = smov 0   ;;  %s6186_s0 = inlined_call_operand.vmem [shape: f32[2,16,16,128], index: 0, kind: input, shape index: {}]   ;;  %s6187_s1 = inlined_call_operand.vmem [shape: f32[1,128], index: 1, kind: input, shape index: {}]   ;;  %s6188_s2 = inlined_call_operand.vmem [shape: f32[1,128], index: 2, kind: input, shape index: {}]   ;;  %s6189_s3 = inlined_call_operand.vmem [shape: bf16[9,128,128], index: 3, kind: input, shape index: {}]   ;;  %s6190_s4 = inlined_call_operand.vmem [shape: f32[1,128], index: 4, kind: input, shape index: {}]   ;;  %s6191_s5 = inlined_call_operand.vmem [shape: f32[2,256,128], index: 5, kind: output, shape index: {}]  }
   0x1 LB: > { %s3943_s19 = sadd.s32 4294967295, %s4911_s18   ;;  %p3947_p0 = scmp.ge.s32.totalorder %s4911_s18, 1  ;;  %s4911_s18 = sphi %s4945_s18, %s15_s18  }
   0x2   : > { %p187_p1 = scmp.lt.s32.totalorder %s4911_s18, 3 }
   0x4   : > { %p188_p2 = pnand %p3947_p0, %p187_p1 }
   0x6   : > { %191 = sbr.rel (%p188_p2) target bundleno = 535 (0x217), region = 40 }
   0xb   : > { %v4832_v0 = vld [vmem:[%s6189_s3 + $0x38] sm:$0xff]   ;;  %v4959_v1 = vld [vmem:[%s6189_s3 + $0x30] sm:$0xff]   ;;  %v4913_v2 = vmov 0.0   ;;  %p215_p3 = scmp.lt.s32.totalorder %s3943_s19, 1  ;;  %v4834_v3 = vld [vmem:[%s6189_s3 + $0x28] sm:$0xff]   ;;  %v4914_v4 = vmov 0.0|0.0  }
   0xc   : > { %368 = vst [vmem:[#allocation2] sm:$0xff] %v4913_v2  ;;  %369 = vst [vmem:[#allocation2 + $0x8] sm:$0xff] %v4913_v2  ;;  %4375 = vmatprep.subr.bf16.mxu0 %v4832_v0  ;;  %4807 = vmatprep.subr.bf16.mxu1 %v4832_v0  ;;  %v4835_v5 = vld [vmem:[%s6189_s3 + $0x20] sm:$0xff]   ;;  %v4836_v21 = vld [vmem:[%s6189_s3 + $0x18] sm:$0xff]  }
   0xd   : > { %370 = vst [vmem:[#allocation2 + $0x10] sm:$0x3] %v4913_v2  ;;  %371 = vst [vmem:[#allocation2 + $0x18] sm:$0xff] %v4913_v2  ;;  %4376 = vmatpush3.bf16.msra.mxu0 %v4832_v0  ;;  %4815 = vmatpush3.bf16.msra.mxu1 %v4832_v0  ;;  %s6277_s19 = smov (!%p215_p3, %s3943_s19), 1  ;;  %v4988_v6 = vld [vmem:[%s6187_s1] ss:$0 sm:$0xff] }
   0xe   : > { %372 = vst [vmem:[#allocation2 + $0x20] sm:$0xff] %v4913_v2  ;;  %373 = vst [vmem:[#allocation2 + $0x28] sm:$0x3] %v4913_v2  ;;  %4377 = vmatprep.subr.bf16.mxu0 %v4959_v1  ;;  %4808 = vmatprep.subr.bf16.mxu1 %v4959_v1  ;;  %s4157_s26 = sshll.u32 %s6277_s19, 8  ;;  %v4993_v7 = vld [vmem:[%s6188_s2] ss:$0 sm:$0xff] }
   0xf   : > { %374 = vst [vmem:[#allocation2 + $0x30] sm:$0xff] %v4913_v2  ;;  %375 = vst [vmem:[#allocation2 + $0x38] sm:$0xff] %v4913_v2  ;;  %4391 = vmatprep.mubr.bf16.mxu0 %v4914_v4  ;;  %s4978_s29 = scalar_lea.vmem %s6186_s0, %s4157_s26  ;;  %v4837_v28 = vld [vmem:[%s6189_s3 + $0x10] sm:$0xff]   ;;  %v4838_v55 = vld [vmem:[%s6189_s3 + $0x8] sm:$0xff]   ;;  %s6063_s24 = scalar_lea.vmem %s6191_s5, %s4157_s26 }
  0x10   : > { %376 = vst [vmem:[#allocation2 + $0x40] sm:$0x3] %v4913_v2  ;;  %377 = vst [vmem:[#allocation2 + $0x48] sm:$0xff] %v4913_v2  ;;  %v242_v8 = vld [vmem:[%s4978_s29 + $0x70] sm:$0xff]  ;;  %v243_v9 = vld [vmem:[%s4978_s29 + $0x78] sm:$0xff] }
  0x11   : > { %378 = vst [vmem:[#allocation2 + $0x50] sm:$0xff] %v4913_v2  ;;  %379 = vst [vmem:[#allocation2 + $0x58] sm:$0x3] %v4913_v2  ;;  %4378 = vmatpush3.bf16.msra.mxu0 %v4959_v1  ;;  %4816 = vmatpush3.bf16.msra.mxu1 %v4959_v1  ;;  %v280_v10 = vmul.f32 %v4988_v6, %v242_v8  ;;  %v228_v11 = vld [vmem:[%s4978_s29] sm:$0xff]  ;;  %v229_v12 = vld [vmem:[%s4978_s29 + $0x8] sm:$0xff]  ;;  %v281_v13 = vmul.f32 %v4988_v6, %v243_v9 }
  0x12   : > { %380 = vst [vmem:[#allocation2 + $0x60] sm:$0xff] %v4913_v2  ;;  %381 = vst [vmem:[#allocation2 + $0x68] sm:$0xff] %v4913_v2  ;;  %4379 = vmatprep.subr.bf16.mxu0 %v4834_v3  ;;  %4809 = vmatprep.subr.bf16.mxu1 %v4834_v3  ;;  %v266_v14 = vmul.f32 %v4988_v6, %v228_v11  ;;  %v267_v15 = vmul.f32 %v4988_v6, %v229_v12  ;;  %v244_v16 = vld [vmem:[%s4978_s29 + $0x80] sm:$0xff]  ;;  %v245_v17 = vld [vmem:[%s4978_s29 + $0x88] sm:$0xff] }
  0x13   : > { %382 = vst [vmem:[#allocation2 + $0x70] sm:$0x3] %v4913_v2  ;;  %383 = vst [vmem:[#allocation2 + $0x78] sm:$0xff] %v4913_v2  ;;  %v5006_v18 = vadd.f32 %v4993_v7, %v280_v10  ;;  %v282_v19 = vmul.f32 %v4988_v6, %v244_v16  ;;  %v283_v20 = vmul.f32 %v4988_v6, %v245_v17  ;;  %v230_v34 = vld [vmem:[%s4978_s29 + $0x10] sm:$0xff]  ;;  %v231_v35 = vld [vmem:[%s4978_s29 + $0x18] sm:$0xff] }
  0x14   : > { %384 = vst [vmem:[#allocation2 + $0x80] sm:$0xff] %v4913_v2  ;;  %385 = vst [vmem:[#allocation2 + $0x88] sm:$0x3] %v4913_v2  ;;  %v5014_v22 = vadd.f32 %v4993_v7, %v281_v13  ;;  %v5017_v23 = vadd.f32 %v4993_v7, %v266_v14  ;;  %v5020_v24 = vadd.f32 %v4993_v7, %v267_v15  ;;  %v246_v36 = vld [vmem:[%s4978_s29 + $0x90] sm:$0xff]  ;;  %v247_v39 = vld [vmem:[%s4978_s29 + $0x98] sm:$0xff] }
  0x15   : > { %386 = vst [vmem:[#allocation2 + $0x90] sm:$0xff] %v4913_v2  ;;  %387 = vst [vmem:[#allocation2 + $0x98] sm:$0xff] %v4913_v2  ;;  %4380 = vmatpush3.bf16.msra.mxu0 %v4834_v3  ;;  %4817 = vmatpush3.bf16.msra.mxu1 %v4834_v3  ;;  %v350_v25 = vmax.f32 %v5006_v18, 0.0  ;;  %v320_v26 = vadd.f32 %v4993_v7, %v282_v19  ;;  %v321_v27 = vadd.f32 %v4993_v7, %v283_v20  ;;  %v232_v41 = vld [vmem:[%s4978_s29 + $0x20] sm:$0xff]  ;;  %v233_v42 = vld [vmem:[%s4978_s29 + $0x28] sm:$0xff] }
  0x16   : > { %388 = vst [vmem:[#allocation2 + $0xa0] sm:$0x3] %v4913_v2  ;;  %389 = vst [vmem:[#allocation2 + $0xa8] sm:$0xff] %v4913_v2  ;;  %4381 = vmatprep.subr.bf16.mxu0 %v4835_v5  ;;  %4810 = vmatprep.subr.bf16.mxu1 %v4835_v5  ;;  %v351_v29 = vmax.f32 %v5014_v22, 0.0  ;;  %v336_v30 = vmax.f32 %v5017_v23, 0.0  ;;  %v337_v31 = vmax.f32 %v5020_v24, 0.0  ;;  %v268_v37 = vmul.f32 %v4988_v6, %v230_v34 }
  0x17   : > { %390 = vst [vmem:[#allocation2 + $0xb0] sm:$0xff] %v4913_v2  ;;  %391 = vst [vmem:[#allocation2 + $0xb8] sm:$0x3] %v4913_v2  ;;  %v352_v32 = vmax.f32 %v320_v26, 0.0  ;;  %v353_v33 = vmax.f32 %v321_v27, 0.0  ;;  %v269_v38 = vmul.f32 %v4988_v6, %v231_v35  ;;  %v284_v40 = vmul.f32 %v4988_v6, %v246_v36  ;;  %v248_v46 = vld [vmem:[%s4978_s29 + $0xa0] sm:$0xff] }
  0x18   : > { %392 = vst [vmem:[#allocation2 + $0xc0] sm:$0xff] %v4913_v2  ;;  %393 = vst [vmem:[#allocation2 + $0xc8] sm:$0xff] %v4913_v2  ;;  %v285_v43 = vmul.f32 %v4988_v6, %v247_v39  ;;  %v270_v44 = vmul.f32 %v4988_v6, %v232_v41  ;;  %v271_v45 = vmul.f32 %v4988_v6, %v233_v42  ;;  %v249_v47 = vld [vmem:[%s4978_s29 + $0xa8] sm:$0xff]  ;;  %v4839_v13 = vld [vmem:[%s6189_s3] sm:$0xff]  }
  0x19   : > { %394 = vst [vmem:[#allocation2 + $0xd0] sm:$0x3] %v4913_v2  ;;  %395 = vst [vmem:[#allocation2 + $0xd8] sm:$0xff] %v4913_v2  ;;  %4382 = vmatpush3.bf16.msra.mxu0 %v4835_v5  ;;  %4818 = vmatpush3.bf16.msra.mxu1 %v4835_v5  ;;  %v5050_v48 = vadd.f32 %v4993_v7, %v268_v37  ;;  %v5053_v49 = vadd.f32 %v4993_v7, %v269_v38  ;;  %v235_v16 = vld [vmem:[%s4978_s29 + $0x38] sm:$0xff]  ;;  %v253_v34 = vld [vmem:[%s4978_s29 + $0xc8] sm:$0xff] }
  0x1a   : > { %396 = vst [vmem:[#allocation2 + $0xe0] sm:$0xff] %v4913_v2  ;;  %397 = vst [vmem:[#allocation2 + $0xe8] sm:$0x3] %v4913_v2  ;;  %4383 = vmatprep.subr.bf16.mxu0 %v4836_v21  ;;  %4811 = vmatprep.subr.bf16.mxu1 %v4836_v21  ;;  %v322_v50 = vadd.f32 %v4993_v7, %v284_v40  ;;  %v286_v51 = vmul.f32 %v4988_v6, %v248_v46  ;;  %v251_v22 = vld [vmem:[%s4978_s29 + $0xb8] sm:$0xff]  ;;  %v4858_v23 = vld [vmem:[%s6189_s3 + $0xf0] sm:$0xff]  }
  0x1b   : > { %398 = vst [vmem:[#allocation2 + $0xf0] sm:$0xff] %v4913_v2  ;;  %399 = vst [vmem:[#allocation2 + $0xf8] sm:$0xff] %v4913_v2  ;;  %v323_v52 = vadd.f32 %v4993_v7, %v285_v43  ;;  %v5059_v53 = vadd.f32 %v4993_v7, %v270_v44  ;;  %v5062_v54 = vadd.f32 %v4993_v7, %v271_v45  ;;  %v338_v56 = vmax.f32 %v5050_v48, 0.0  ;;  %v5108_v26 = vld [vmem:[%s6189_s3 + $0x78] sm:$0xff]   ;;  %v4859_v24 = vld [vmem:[%s6189_s3 + $0x130] sm:$0xff]  }
  0x1c   : > { %400 = vst [vmem:[#allocation2 + $0x100] sm:$0x3] %v4913_v2  ;;  %401 = vst [vmem:[#allocation2 + $0x108] sm:$0xff] %v4913_v2  ;;  %v339_v57 = vmax.f32 %v5053_v49, 0.0  ;;  %v354_v58 = vmax.f32 %v322_v50, 0.0  ;;  %v287_v59 = vmul.f32 %v4988_v6, %v249_v47  ;;  %v324_v63 = vadd.f32 %v4993_v7, %v286_v51  ;;  %v4841_v41 = vld [vmem:[%s6189_s3 + $0xb8] sm:$0xff]  }
  0x1d   : > { %402 = vst [vmem:[#allocation2 + $0x110] sm:$0xff] %v4913_v2  ;;  %403 = vst [vmem:[#allocation2 + $0x118] sm:$0x3] %v4913_v2  ;;  %4384 = vmatpush3.bf16.msra.mxu0 %v4836_v21  ;;  %4819 = vmatpush3.bf16.msra.mxu1 %v4836_v21  ;;  %v355_v60 = vmax.f32 %v323_v52, 0.0  ;;  %v340_v61 = vmax.f32 %v5059_v53, 0.0  ;;  %v341_v62 = vmax.f32 %v5062_v54, 0.0  ;;  %v5079_v3 = vpack.c.bf16 %v351_v29, %v350_v25 }
  0x1e   : > { %404 = vst [vmem:[#allocation2 + $0x120] sm:$0xff] %v4913_v2  ;;  %405 = vst [vmem:[#allocation2 + $0x128] sm:$0xff] %v4913_v2  ;;  %4385 = vmatprep.subr.bf16.mxu0 %v4837_v28  ;;  %4812 = vmatprep.subr.bf16.mxu1 %v4837_v28  ;;  %v325_v1 = vadd.f32 %v4993_v7, %v287_v59  ;;  %v5081_v4 = vpack.c.bf16 %v353_v33, %v352_v32  ;;  %v356_v10 = vmax.f32 %v324_v63, 0.0  ;;  %v250_v21 = vld [vmem:[%s4978_s29 + $0xb0] sm:$0xff]  ;;  %v4862_v53 = vld [vmem:[%s6189_s3 + $0xe0] sm:$0xff]  }
  0x1f   : > { %406 = vst [vmem:[#allocation2 + $0x130] sm:$0x3] %v4913_v2  ;;  %407 = vst [vmem:[#allocation2 + $0x138] sm:$0xff] %v4913_v2  ;;  %v5088_v12 = vpack.c.bf16 %v355_v60, %v354_v58  ;;  %v273_v19 = vmul.f32 %v4988_v6, %v235_v16  ;;  %v288_v27 = vmul.f32 %v4988_v6, %v250_v21  ;;  %v5151_v59 = vld [vmem:[%s6189_s3 + $0xb0] sm:$0xff]  }
  0x20   : > { %408 = vst [vmem:[#allocation2 + $0x140] sm:$0xff] %v4913_v2  ;;  %409 = vst [vmem:[#allocation2 + $0x148] sm:$0x3] %v4913_v2  ;;  %v357_v15 = vmax.f32 %v325_v1, 0.0  ;;  %v291_v51 = vmul.f32 %v4988_v6, %v253_v34  ;;  %v238_v21 = vld [vmem:[%s4978_s29 + $0x50] sm:$0xff] }
  0x21   : > { %410 = vst [vmem:[#allocation2 + $0x150] sm:$0xff] %v4913_v2  ;;  %411 = vst [vmem:[#allocation2 + $0x158] sm:$0xff] %v4913_v2  ;;  %4386 = vmatpush3.bf16.msra.mxu0 %v4837_v28  ;;  %4820 = vmatpush3.bf16.msra.mxu1 %v4837_v28  ;;  %v289_v28 = vmul.f32 %v4988_v6, %v251_v22  ;;  %v5119_v37 = vadd.f32 %v4993_v7, %v273_v19 }
  0x22   : > { %412 = vst [vmem:[#allocation2 + $0x160] sm:$0x3] %v4913_v2  ;;  %413 = vst [vmem:[#allocation2 + $0x168] sm:$0xff] %v4913_v2  ;;  %4387 = vmatprep.subr.bf16.mxu0 %v4838_v55  ;;  %4813 = vmatprep.subr.bf16.mxu1 %v4838_v55  ;;  %v5116_v35 = vpack.c.bf16 %v357_v15, %v356_v10  ;;  %v326_v42 = vadd.f32 %v4993_v7, %v288_v27  ;;  %v239_v27 = vld [vmem:[%s4978_s29 + $0x58] sm:$0xff] }
  0x23   : > { %414 = vst [vmem:[#allocation2 + $0x170] sm:$0xff] %v4913_v2  ;;  %415 = vst [vmem:[#allocation2 + $0x178] sm:$0x3] %v4913_v2  ;;  %v327_v43 = vadd.f32 %v4993_v7, %v289_v28  ;;  %v343_v47 = vmax.f32 %v5119_v37, 0.0  ;;  %v276_v28 = vmul.f32 %v4988_v6, %v238_v21 }
  0x24   : > { %416 = vst [vmem:[#allocation2 + $0x180] sm:$0xff] %v4913_v2  ;;  %417 = vst [vmem:[#allocation2 + $0x188] sm:$0xff] %v4913_v2  ;;  %v358_v1 = vmax.f32 %v326_v42, 0.0  ;;  %v256_v42 = vld [vmem:[%s4978_s29 + $0xe0] sm:$0xff] }
  0x25   : > { %418 = vst [vmem:[#allocation2 + $0x190] sm:$0x3] %v4913_v2  ;;  %419 = vst [vmem:[#allocation2 + $0x198] sm:$0xff] %v4913_v2  ;;  %4388 = vmatpush3.bf16.msra.mxu0 %v4838_v55  ;;  %4821 = vmatpush3.bf16.msra.mxu1 %v4838_v55 }
  0x26   : > { %420 = vst [vmem:[#allocation2 + $0x1a0] sm:$0xff] %v4913_v2  ;;  %421 = vst [vmem:[#allocation2 + $0x1a8] sm:$0x3] %v4913_v2  ;;  %v234_v2 = vld [vmem:[%s4978_s29 + $0x30] sm:$0xff]  ;;  %4389 = vmatprep.subr.bf16.mxu0 %v4839_v13  ;;  %4814 = vmatprep.subr.bf16.mxu1 %v4839_v13 }
  0x27   : > { %437 = vst [vmem:[#allocation2 + $0xc1] sm:$0xff] %v350_v25  ;;  %438 = vst [vmem:[#allocation2 + $0xc9] sm:$0xff] %v351_v29  ;;  %v272_v11 = vmul.f32 %v4988_v6, %v234_v2  ;;  %v236_v25 = vld [vmem:[%s4978_s29 + $0x40] sm:$0xff]  ;;  %v237_v29 = vld [vmem:[%s4978_s29 + $0x48] sm:$0xff]  ;;  %v359_v2 = vmax.f32 %v327_v43, 0.0  ;;  %v5203_v43 = vadd.f32 %v4993_v7, %v276_v28 }
  0x28   : > { %423 = vst [vmem:[#allocation2 + $0x19] sm:$0xff] %v336_v30  ;;  %424 = vst [vmem:[#allocation2 + $0x21] sm:$0xff] %v337_v31  ;;  %v275_v39 = vmul.f32 %v4988_v6, %v237_v29  ;;  %v254_v29 = vld [vmem:[%s4978_s29 + $0xd0] sm:$0xff] }
  0x29   : > { %439 = vst [vmem:[#allocation2 + $0xd9] sm:$0xff] %v352_v32  ;;  %440 = vst [vmem:[#allocation2 + $0xe1] sm:$0xff] %v353_v33  ;;  %v5100_v20 = vadd.f32 %v4993_v7, %v272_v11  ;;  %v274_v32 = vmul.f32 %v4988_v6, %v236_v25  ;;  %v252_v33 = vld [vmem:[%s4978_s29 + $0xc0] sm:$0xff]  ;;  %4390 = vmatpush3.bf16.msra.mxu0 %v4839_v13  ;;  %4822 = vmatpush3.bf16.msra.mxu1 %v4839_v13 }
  0x2a   : > { %425 = vst [vmem:[#allocation2 + $0x31] sm:$0xff] %v338_v56  ;;  %426 = vst [vmem:[#allocation2 + $0x39] sm:$0xff] %v339_v57  ;;  %v290_v40 = vmul.f32 %v4988_v6, %v252_v33  ;;  %v5136_v50 = vadd.f32 %v4993_v7, %v275_v39  ;;  %4423 = vmatprep.subr.bf16.mxu1 %v5108_v26  ;;  %4471 = vmatprep.subr.bf16.mxu0 %v4841_v41  ;;  %v240_v39 = vld [vmem:[%s4978_s29 + $0x60] sm:$0xff] }
  0x2b   : > { %441 = vst [vmem:[#allocation2 + $0xf1] sm:$0xff] %v354_v58  ;;  %442 = vst [vmem:[#allocation2 + $0xf9] sm:$0xff] %v355_v60  ;;  %v342_v38 = vmax.f32 %v5100_v20, 0.0  ;;  %v5130_v44 = vadd.f32 %v4993_v7, %v274_v32  ;;  %v5146_v58 = vld [vmem:[%s6189_s3 + $0x70] sm:$0xff]   ;;  %v255_v32 = vld [vmem:[%s4978_s29 + $0xd8] sm:$0xff]  ;;  %v277_v33 = vmul.f32 %v4988_v6, %v239_v27  ;;  %v292_v34 = vmul.f32 %v4988_v6, %v254_v29 }
  0x2c   : > { %427 = vst [vmem:[#allocation2 + $0x49] sm:$0xff] %v340_v61  ;;  %428 = vst [vmem:[#allocation2 + $0x51] sm:$0xff] %v341_v62  ;;  %v5140_v52 = vadd.f32 %v4993_v7, %v290_v40  ;;  %v241_v40 = vld [vmem:[%s4978_s29 + $0x68] sm:$0xff]  ;;  %v4846_v29 = vld [vmem:[%s6189_s3 + $0x60] sm:$0xff]  }
  0x2d   : > { %443 = vst [vmem:[#allocation2 + $0x109] sm:$0xff] %v356_v10  ;;  %444 = vst [vmem:[#allocation2 + $0x111] sm:$0xff] %v357_v15  ;;  %v5158_v10 = vadd.f32 %v4993_v7, %v291_v51  ;;  %v5209_v51 = vadd.f32 %v4993_v7, %v277_v33 }
  0x2e   : > { %v510_v0 = vld [vmem:[#allocation2 + $0xc0] sm:$0xff]  ;;  %v511_v5 = vld [vmem:[#allocation2 + $0xc8] sm:$0xff]  ;;  %429 = vst [vmem:[#allocation2 + $0x61] sm:$0xff] %v342_v38  ;;  %430 = vst [vmem:[#allocation2 + $0x69] sm:$0xff] %v343_v47  ;;  %v360_v13 = vmax.f32 %v5140_v52, 0.0 }
  0x2f   : > { %v496_v8 = vld [vmem:[#allocation2 + $0x18] sm:$0xff]  ;;  %v497_v9 = vld [vmem:[#allocation2 + $0x20] sm:$0xff]  ;;  %v534_v14 = vpack.c.bf16 %v511_v5, %v510_v0  ;;  %v344_v5 = vmax.f32 %v5130_v44, 0.0  ;;  %445 = vst [vmem:[#allocation2 + $0x121] sm:$0xff] %v358_v1  ;;  %446 = vst [vmem:[#allocation2 + $0x129] sm:$0xff] %v359_v2  ;;  %v361_v19 = vmax.f32 %v5158_v10, 0.0 }
  0x30   : > { %v5094_v17 = vpack.c.bf16 %v497_v9, %v496_v8  ;;  %v5096_v18 = vld [vmem:[#allocation2 + $0xd8] sm:$0xff]  ;;  %v513_v36 = vld [vmem:[#allocation2 + $0xe0] sm:$0xff]  ;;  %v345_v9 = vmax.f32 %v5136_v50, 0.0  ;;  %447 = vst [vmem:[#allocation2 + $0x139] sm:$0xff] %v360_v13  ;;  %v347_v21 = vmax.f32 %v5209_v51, 0.0  ;;  %v4866_v44 = vld [vmem:[%s6189_s3 + $0xd0] sm:$0xff]  }
  0x31   : > { %4407 = vmatprep.mubr.bf16.mxu1 %v534_v14  ;;  %v498_v45 = vld [vmem:[#allocation2 + $0x30] sm:$0xff]  ;;  %v499_v46 = vld [vmem:[#allocation2 + $0x38] sm:$0xff]  ;;  %v535_v55 = vpack.c.bf16 %v513_v36, %v5096_v18  ;;  %431 = vst [vmem:[#allocation2 + $0x79] sm:$0xff] %v344_v5  ;;  %v5166_v14 = vpack.c.bf16 %v359_v2, %v358_v1  ;;  %448 = vst [vmem:[#allocation2 + $0x141] sm:$0xff] %v361_v19  ;;  %v293_v36 = vmul.f32 %v4988_v6, %v255_v32 }
  0x32   : > { %v514_v60 = vld [vmem:[#allocation2 + $0xf0] sm:$0xff]  ;;  %v515_v63 = vld [vmem:[#allocation2 + $0xf8] sm:$0xff]  ;;  %v5168_v15 = vpack.c.bf16 %v499_v46, %v498_v45  ;;  %432 = vst [vmem:[#allocation2 + $0x81] sm:$0xff] %v345_v9  ;;  %4392 = vmatmul.mubr.bf16.vlgmr.msra.gmra.mxu0 %v5094_v17  ;;  %v278_v45 = vmul.f32 %v4988_v6, %v240_v39  ;;  %v279_v46 = vmul.f32 %v4988_v6, %v241_v40  ;;  %v346_v2 = vmax.f32 %v5203_v43, 0.0  ;;  %v4847_v32 = vld [vmem:[%s6189_s3 + $0xa0] sm:$0xff]  }
  0x33   : > { %v500_v0 = vld [vmem:[#allocation2 + $0x48] sm:$0xff]  ;;  %v501_v8 = vld [vmem:[#allocation2 + $0x50] sm:$0xff]  ;;  %v536_v16 = vpack.c.bf16 %v515_v63, %v514_v60  ;;  %4408 = vmatmul.mubr.bf16.vlgmr.msra.gmra.mxu1 %v535_v55  ;;  %4472 = vmatpush3.bf16.msra.mxu0 %v4841_v41  ;;  %v330_v55 = vadd.f32 %v4993_v7, %v292_v34  ;;  %v331_v60 = vadd.f32 %v4993_v7, %v293_v36 }
  0x34   : > { %v5161_v11 = vld [vmem:[#allocation2 + $0x108] sm:$0xff]  ;;  %v5170_v18 = vld [vmem:[#allocation2 + $0x110] sm:$0xff]  ;;  %v5177_v22 = vpack.c.bf16 %v501_v8, %v500_v0  ;;  %4424 = vmatpush3.bf16.msra.mxu1 %v5108_v26  ;;  %4473 = vmatprep.subr.bf16.mxu0 %v5151_v59  ;;  %v5216_v8 = vadd.f32 %v4993_v7, %v278_v45  ;;  %v5219_v10 = vadd.f32 %v4993_v7, %v279_v46 }
  0x35   : > { %v537_v25 = vpack.c.bf16 %v5170_v18, %v5161_v11  ;;  %4425 = vmatprep.subr.bf16.mxu1 %v5146_v58  ;;  %v4844_v26 = vld [vmem:[%s6189_s3 + $0x68] sm:$0xff]   ;;  %4395 = vmatprep.mubr.bf16.mxu0 %v5168_v15  ;;  %v502_v0 = vld [vmem:[#allocation2 + $0x60] sm:$0xff]  ;;  %v294_v11 = vmul.f32 %v4988_v6, %v256_v42  ;;  %v362_v27 = vmax.f32 %v330_v55, 0.0  ;;  %v363_v28 = vmax.f32 %v331_v60, 0.0  ;;  %433 = vst [vmem:[#allocation2 + $0x91] sm:$0xff] %v346_v2  ;;  %v4849_v60 = vld [vmem:[%s6189_s3 + $0x98] sm:$0xff]  }
  0x36   : > { %v4845_v41 = vld [vmem:[%s6189_s3 + $0xa8] sm:$0xff]   ;;  %4411 = vmatprep.mubr.bf16.mxu1 %v536_v16  ;;  %v518_v16 = vld [vmem:[#allocation2 + $0x120] sm:$0xff]  ;;  %434 = vst [vmem:[#allocation2 + $0x99] sm:$0xff] %v347_v21  ;;  %v5245_v40 = vpack.c.bf16 %v361_v19, %v360_v13  ;;  %v4867_v50 = vld [vmem:[%s6189_s3 + $0x110] sm:$0xff]  }
  0x37   : > { %v257_v63 = vld [vmem:[%s4978_s29 + $0xe8] sm:$0xff]  ;;  %4474 = vmatpush3.bf16.msra.mxu0 %v5151_v59  ;;  %v6192_v59 = vmax.f32 %v5219_v10, 0.0  ;;  %449 = vst [vmem:[#allocation2 + $0x151] sm:$0xff] %v362_v27  ;;  %450 = vst [vmem:[#allocation2 + $0x159] sm:$0xff] %v363_v28  ;;  %v332_v39 = vadd.f32 %v4993_v7, %v294_v11  ;;  %v5253_v46 = vpack.c.bf16 %v363_v28, %v362_v27  ;;  %v520_v52 = vld [vmem:[#allocation2 + $0x138] sm:$0xff] }
  0x38   : > { %v503_v1 = vld [vmem:[#allocation2 + $0x68] sm:$0xff]  ;;  %4426 = vmatpush3.bf16.msra.mxu1 %v5146_v58  ;;  %4475 = vmatprep.subr.bf16.mxu0 %v4845_v41  ;;  %v348_v58 = vmax.f32 %v5216_v8, 0.0  ;;  %v295_v33 = vmul.f32 %v4988_v6, %v257_v63  ;;  %v504_v42 = vld [vmem:[#allocation2 + $0x78] sm:$0xff]  ;;  %v521_v13 = vld [vmem:[#allocation2 + $0x140] sm:$0xff] }
  0x39   : > { %v519_v18 = vld [vmem:[#allocation2 + $0x128] sm:$0xff]  ;;  %4427 = vmatprep.subr.bf16.mxu1 %v4844_v26  ;;  %v5236_v34 = vpack.c.bf16 %v503_v1, %v502_v0  ;;  %436 = vst [vmem:[#allocation2 + $0xb1] sm:$0xff] %v6192_v59  ;;  %v505_v55 = vld [vmem:[#allocation2 + $0x80] sm:$0xff]  ;;  %v364_v19 = vmax.f32 %v332_v39, 0.0  ;;  %v4850_v1 = vld [vmem:[%s6189_s3 + $0x50] sm:$0xff]  }
  0x3a   : > { %v5238_v36 = vpack.c.bf16 %v519_v18, %v518_v16  ;;  %4396 = vmatmul.mubr.bf16.gmra.mxu0 %v5177_v22  ;;  %435 = vst [vmem:[#allocation2 + $0xa9] sm:$0xff] %v348_v58  ;;  %v333_v45 = vadd.f32 %v4993_v7, %v295_v33  ;;  %v4851_v11 = vld [vmem:[%s6189_s3 + $0x90] sm:$0xff]   ;;  %v1241_v48 = vld [vmem:[#allocation2 + $0x62] sm:$0xff]  ;;  %v1243_v54 = vld [vmem:[#allocation2 + $0x7a] sm:$0xff] }
  0x3b   : > { %4412 = vmatmul.mubr.bf16.gmra.mxu1 %v537_v25  ;;  %4476 = vmatpush3.bf16.msra.mxu0 %v4845_v41  ;;  %v4848_v25 = vld [vmem:[%s6189_s3 + $0x58] sm:$0xff]   ;;  %451 = vst [vmem:[#allocation2 + $0x169] sm:$0xff] %v364_v19  ;;  %v5265_v41 = vpack.c.bf16 %v521_v13, %v520_v52  ;;  %v863_v52 = vld [vmem:[#allocation2 + $0x1] sm:$0xff]  ;;  %v1242_v49 = vld [vmem:[#allocation2 + $0x6a] sm:$0xff] }
  0x3c   : > { %4428 = vmatpush3.bf16.msra.mxu1 %v4844_v26  ;;  %4477 = vmatprep.subr.bf16.mxu0 %v4847_v32  ;;  %v365_v63 = vmax.f32 %v333_v45, 0.0  ;;  %v5263_v26 = vpack.c.bf16 %v505_v55, %v504_v42  ;;  %v506_v16 = vld [vmem:[#allocation2 + $0x90] sm:$0xff]  ;;  %v4853_v55 = vld [vmem:[%s6189_s3 + $0x88] sm:$0xff]   ;;  %v4871_v8 = vld [vmem:[%s6189_s3 + $0x100] sm:$0xff]  }
  0x3d   : > { %4429 = vmatprep.subr.bf16.mxu1 %v4846_v29  ;;  %4399 = vmatprep.mubr.bf16.mxu0 %v5236_v34  ;;  %v507_v18 = vld [vmem:[#allocation2 + $0x98] sm:$0xff]  ;;  %v1249_v43 = vld [vmem:[#allocation2 + $0xc2] sm:$0xff]  ;;  %v1250_v51 = vld [vmem:[#allocation2 + $0xca] sm:$0xff] }
  0x3e   : > { %4415 = vmatprep.mubr.bf16.mxu1 %v5238_v36  ;;  %452 = vst [vmem:[#allocation2 + $0x171] sm:$0xff] %v365_v63  ;;  %v5267_v0 = vpack.c.bf16 %v365_v63, %v364_v19  ;;  %v522_v27 = vld [vmem:[#allocation2 + $0x150] sm:$0xff]  ;;  %v523_v28 = vld [vmem:[#allocation2 + $0x158] sm:$0xff]  ;;  %v5275_v33 = vpack.c.bf16 %v507_v18, %v506_v16  ;;  %v1233_v63 = vld [vmem:[#allocation2 + $0x2] sm:$0xff] }
  0x3f   : > { %4478 = vmatpush3.bf16.msra.mxu0 %v4847_v32  ;;  %v5277_v39 = vpack.c.bf16 %v523_v28, %v522_v27  ;;  %v4852_v32 = vld [vmem:[%s6189_s3 + $0x48] sm:$0xff]   ;;  %v4854_v18 = vld [vmem:[%s6189_s3 + $0x40] sm:$0xff]   ;;  %v1245_v20 = vld [vmem:[#allocation2 + $0x92] sm:$0xff] }
  0x40   : > { %4430 = vmatpush3.bf16.msra.mxu1 %v4846_v29  ;;  %4479 = vmatprep.subr.bf16.mxu0 %v4849_v60  ;;  %v864_v19 = vld [vmem:[#allocation2 + $0x9] sm:$0xff]  ;;  %v4855_v27 = vld [vmem:[%s6189_s3 + $0x80] sm:$0xff]  }
  0x41   : > { %4431 = vmatprep.subr.bf16.mxu1 %v4848_v25  ;;  %v508_v29 = vld [vmem:[#allocation2 + $0xa8] sm:$0xff]  ;;  %v509_v42 = vld [vmem:[#allocation2 + $0xb0] sm:$0xff]  ;;  %v895_v28 = vpack.c.bf16 %v864_v19, %v863_v52  ;;  %v1238_v52 = vld [vmem:[#allocation2 + $0x3a] sm:$0xff]  ;;  %v5343_v19 = vpack.c.bf16 %v341_v62, %v340_v61 }
  0x42   : > { %4400 = vmatmul.mubr.bf16.gmra.mxu0 %v5263_v26  ;;  %v524_v45 = vld [vmem:[#allocation2 + $0x168] sm:$0xff]  ;;  %v5289_v16 = vpack.c.bf16 %v509_v42, %v508_v29  ;;  %v4856_v29 = vld [vmem:[%s6189_s3 + $0xf8] sm:$0xff]   ;;  %v4863_v62 = vld [vmem:[%s6189_s3 + $0x120] sm:$0xff]  }
  0x43   : > { %4416 = vmatmul.mubr.bf16.gmra.mxu1 %v5265_v41  ;;  %4480 = vmatpush3.bf16.msra.mxu0 %v4849_v60  ;;  %v1234_v60 = vld [vmem:[#allocation2 + $0xa] sm:$0xff]  ;;  %v4857_v42 = vld [vmem:[%s6189_s3 + $0x138] sm:$0xff]   ;;  %v1244_v61 = vld [vmem:[#allocation2 + $0x82] sm:$0xff] }
  0x44   : > { %4432 = vmatpush3.bf16.msra.mxu1 %v4848_v25  ;;  %4481 = vmatprep.subr.bf16.mxu0 %v4851_v11  ;;  %v1265_v59 = vpack.c.bf16 %v1234_v60, %v1233_v63  ;;  %v5351_v60 = vpack.c.bf16 %v343_v47, %v342_v38  ;;  %v1246_v37 = vld [vmem:[#allocation2 + $0x9a] sm:$0xff] }
  0x45   : > { %4433 = vmatprep.subr.bf16.mxu1 %v4850_v1  ;;  %4403 = vmatprep.mubr.bf16.mxu0 %v5275_v33  ;;  %v525_v13 = vld [vmem:[#allocation2 + $0x170] sm:$0xff]  ;;  %v4864_v38 = vld [vmem:[%s6189_s3 + $0xd8] sm:$0xff]  }
  0x46   : > { %4419 = vmatprep.mubr.bf16.mxu1 %v5277_v39  ;;  %v5291_v25 = vpack.c.bf16 %v525_v13, %v524_v45  ;;  %v1237_v45 = vld [vmem:[#allocation2 + $0x32] sm:$0xff]  ;;  %v5319_v13 = vpack.c.bf16 %v339_v57, %v338_v56  ;;  %v4860_v56 = vld [vmem:[%s6189_s3 + $0xe8] sm:$0xff]  }
  0x47   : > { %4482 = vmatpush3.bf16.msra.mxu0 %v4851_v11  ;;  %v1236_v11 = vld [vmem:[#allocation2 + $0x22] sm:$0xff]  ;;  %v4865_v47 = vld [vmem:[%s6189_s3 + $0x118] sm:$0xff]  }
  0x48   : > { %4434 = vmatpush3.bf16.msra.mxu1 %v4850_v1  ;;  %4483 = vmatprep.subr.bf16.mxu0 %v4853_v55  ;;  %v1235_v1 = vld [vmem:[#allocation2 + $0x1a] sm:$0xff]  ;;  %v4861_v57 = vld [vmem:[%s6189_s3 + $0x128] sm:$0xff]  }
  0x49   : > { %4435 = vmatprep.subr.bf16.mxu1 %v4852_v32 }
  0x4a   : > { %4404 = vmatmul.mubr.bf16.gmra.mxu0 %v5289_v16 }
  0x4b   : > { %4420 = vmatmul.mubr.bf16.gmra.mxu1 %v5291_v25  ;;  %4484 = vmatpush3.bf16.msra.mxu0 %v4853_v55  ;;  %v5313_v55 = vpack.c.bf16 %v1236_v11, %v1235_v1  ;;  %v5383_v1 = vpack.c.bf16 %v347_v21, %v346_v2  ;;  %v5385_v11 = vpack.c.bf16 %v1246_v37, %v1245_v20  ;;  %v4868_v2 = vld [vmem:[%s6189_s3 + $0xc8] sm:$0xff]  }
  0x4c   : > { %4436 = vmatpush3.bf16.msra.mxu1 %v4852_v32  ;;  %4485 = vmatprep.subr.bf16.mxu0 %v4855_v27  ;;  %v5311_v32 = vpack.c.bf16 %v337_v31, %v336_v30  ;;  %v1239_v30 = vld [vmem:[#allocation2 + $0x4a] sm:$0xff]  ;;  %v1240_v31 = vld [vmem:[#allocation2 + $0x52] sm:$0xff] }
  0x4d   : > { %4437 = vmatprep.subr.bf16.mxu1 %v4854_v18  ;;  %4439 = vmatprep.mubr.bf16.mxu1 %v895_v28  ;;  %v5345_v63 = vpack.c.bf16 %v1240_v31, %v1239_v30  ;;  %v5377_v28 = vpack.c.bf16 %v1244_v61, %v1243_v54  ;;  %v4869_v21 = vld [vmem:[%s6189_s3 + $0x108] sm:$0xff]   ;;  %v4872_v31 = vld [vmem:[%s6189_s3 + $0x178] sm:$0xff]  }
  0x4e   : > { %4487 = vmatprep.mubr.bf16.mxu0 %v1265_v59  ;;  %v5321_v59 = vpack.c.bf16 %v1238_v52, %v1237_v45  ;;  %v5411_v52 = vpack.c.bf16 %v1250_v51, %v1249_v43  ;;  %v1252_v30 = vld [vmem:[#allocation2 + $0xe2] sm:$0xff]  ;;  %v1262_v43 = vld [vmem:[#allocation2 + $0x15a] sm:$0xff] }
  0x4f   : > { %4486 = vmatpush3.bf16.msra.mxu0 %v4855_v27  ;;  %v5375_v27 = vpack.c.bf16 %v345_v9, %v344_v5  ;;  %v1247_v5 = vld [vmem:[#allocation2 + $0xaa] sm:$0xff]  ;;  %v1248_v9 = vld [vmem:[#allocation2 + $0xb2] sm:$0xff] }
  0x50   : > { %4438 = vmatpush3.bf16.msra.mxu1 %v4854_v18  ;;  %4567 = vmatprep.subr.bf16.mxu0 %v4857_v42  ;;  %v5353_v18 = vpack.c.bf16 %v1242_v49, %v1241_v48  ;;  %v5409_v45 = vpack.c.bf16 %v1248_v9, %v1247_v5  ;;  %v258_v48 = vld [vmem:[%s4978_s29 + $0xf0] sm:$0xff]  ;;  %v259_v49 = vld [vmem:[%s4978_s29 + $0xf8] sm:$0xff] }
  0x51   : > { %4519 = vmatprep.subr.bf16.mxu1 %v4856_v29  ;;  %v1261_v9 = vld [vmem:[#allocation2 + $0x152] sm:$0xff] }
  0x52   : > { %4488 = vmatmul.mubr.bf16.vlgmr.msra.gmra.mxu0 %v5313_v55 }
  0x53   : > { %4440 = vmatmul.mubr.bf16.vlgmr.msra.gmra.mxu1 %v5311_v32  ;;  %4568 = vmatpush3.bf16.msra.mxu0 %v4857_v42 }
  0x54   : > { %4520 = vmatpush3.bf16.msra.mxu1 %v4856_v29  ;;  %4443 = vmatprep.mubr.bf16.mxu1 %v5319_v13  ;;  %v6193_v29 = vmax.f32 %v5219_v10, 0.0  ;;  %v1253_v10 = vld [vmem:[#allocation2 + $0xf2] sm:$0xff] }
  0x55   : > { %4491 = vmatprep.mubr.bf16.mxu0 %v5321_v59  ;;  %4521 = vmatprep.subr.bf16.mxu1 %v4858_v23 }
  0x56   : > { %4569 = vmatprep.subr.bf16.mxu0 %v4859_v24  ;;  %v5407_v42 = vpack.c.bf16 %v6193_v29, %v348_v58  ;;  %v1254_v58 = vld [vmem:[#allocation2 + $0xfa] sm:$0xff] }
  0x57   : > { %4570 = vmatpush3.bf16.msra.mxu0 %v4859_v24  ;;  %v1251_v24 = vld [vmem:[#allocation2 + $0xda] sm:$0xff]  ;;  %v5435_v54 = vpack.c.bf16 %v1254_v58, %v1253_v10 }
  0x58   : > { %4522 = vmatpush3.bf16.msra.mxu1 %v4858_v23  ;;  %4571 = vmatprep.subr.bf16.mxu0 %v4861_v57  ;;  %v4870_v23 = vld [vmem:[%s6189_s3 + $0xc0] sm:$0xff]   ;;  %v1619_v10 = vld [vmem:[#allocation2 + $0xd8] sm:$0xff] }
  0x59   : > { %4523 = vmatprep.subr.bf16.mxu1 %v4860_v56  ;;  %v1620_v58 = vld [vmem:[#allocation2 + $0xe0] sm:$0xff] }
  0x5a   : > { %4492 = vmatmul.mubr.bf16.gmra.mxu0 %v5345_v63 }
  0x5b   : > { %4444 = vmatmul.mubr.bf16.gmra.mxu1 %v5343_v19  ;;  %4495 = vmatprep.mubr.bf16.mxu0 %v5353_v18 }
  0x5c   : > { %4447 = vmatprep.mubr.bf16.mxu1 %v5351_v60  ;;  %4524 = vmatpush3.bf16.msra.mxu1 %v4860_v56  ;;  %v4873_v56 = vld [vmem:[%s6189_s3 + $0x1b8] sm:$0xff]  }
  0x5d   : > { %4572 = vmatpush3.bf16.msra.mxu0 %v4861_v57  ;;  %4525 = vmatprep.subr.bf16.mxu1 %v4862_v53  ;;  %v296_v57 = vmul.f32 %v4988_v6, %v258_v48  ;;  %v1990_v48 = vld [vmem:[#allocation2 + $0xe1] sm:$0xff] }
  0x5e   : > { %4573 = vmatprep.subr.bf16.mxu0 %v4863_v62 }
  0x5f   : > { %v334_v61 = vadd.f32 %v4993_v7, %v296_v57  ;;  %v4886_v57 = vld [vmem:[%s6189_s3 + $0x140] sm:$0xff]  }
  0x60   : > { %4526 = vmatpush3.bf16.msra.mxu1 %v4862_v53  ;;  %v5433_v53 = vpack.c.bf16 %v1252_v30, %v1251_v24  ;;  %v4875_v24 = vld [vmem:[%s6189_s3 + $0x1b0] sm:$0xff]   ;;  %v1987_v30 = vld [vmem:[#allocation2 + $0xc1] sm:$0xff] }
  0x61   : > { %4574 = vmatpush3.bf16.msra.mxu0 %v4863_v62  ;;  %4527 = vmatprep.subr.bf16.mxu1 %v4864_v38  ;;  %v366_v20 = vmax.f32 %v334_v61, 0.0  ;;  %v1621_v61 = vld [vmem:[#allocation2 + $0xf0] sm:$0xff] }
  0x62   : > { %4575 = vmatprep.subr.bf16.mxu0 %v4865_v47  ;;  %4496 = vmatmul.mubr.bf16.gmra.mxu0 %v5377_v28 }
  0x63   : > { %4448 = vmatmul.mubr.bf16.gmra.mxu1 %v5375_v27  ;;  %4499 = vmatprep.mubr.bf16.mxu0 %v5385_v11  ;;  %453 = vst [vmem:[#allocation2 + $0x181] sm:$0xff] %v366_v20 }
  0x64   : > { %4451 = vmatprep.mubr.bf16.mxu1 %v5383_v1  ;;  %4528 = vmatpush3.bf16.msra.mxu1 %v4864_v38  ;;  %v1255_v38 = vld [vmem:[#allocation2 + $0x10a] sm:$0xff] }
  0x65   : > { %4576 = vmatpush3.bf16.msra.mxu0 %v4865_v47  ;;  %4529 = vmatprep.subr.bf16.mxu1 %v4866_v44  ;;  %v1257_v47 = vld [vmem:[#allocation2 + $0x122] sm:$0xff] }
  0x66   : > { %4577 = vmatprep.subr.bf16.mxu0 %v4867_v50 }
  0x68   : > { %4530 = vmatpush3.bf16.msra.mxu1 %v4866_v44  ;;  %v1258_v44 = vld [vmem:[#allocation2 + $0x12a] sm:$0xff] }
  0x69   : > { %4578 = vmatpush3.bf16.msra.mxu0 %v4867_v50  ;;  %4531 = vmatprep.subr.bf16.mxu1 %v4868_v2  ;;  %v5447_v5 = vpack.c.bf16 %v1258_v44, %v1257_v47  ;;  %v1993_v47 = vld [vmem:[#allocation2 + $0x109] sm:$0xff]  ;;  %v1994_v44 = vld [vmem:[#allocation2 + $0x111] sm:$0xff] }
  0x6a   : > { %4579 = vmatprep.subr.bf16.mxu0 %v4869_v21  ;;  %4500 = vmatmul.mubr.bf16.gmra.mxu0 %v5409_v45 }
  0x6b   : > { %4452 = vmatmul.mubr.bf16.gmra.mxu1 %v5407_v42  ;;  %4503 = vmatprep.mubr.bf16.mxu0 %v5411_v52 }
  0x6c   : > { %4455 = vmatprep.mubr.bf16.mxu1 %v5079_v3  ;;  %4532 = vmatpush3.bf16.msra.mxu1 %v4868_v2  ;;  %v297_v3 = vmul.f32 %v4988_v6, %v259_v49  ;;  %v1256_v6 = vld [vmem:[#allocation2 + $0x112] sm:$0xff]  ;;  %v5455_v2 = vpack.c.bf16 %v1262_v43, %v1261_v9  ;;  %v5519_v49 = vpack.c.bf16 %v1620_v58, %v1619_v10 }
  0x6d   : > { %4580 = vmatpush3.bf16.msra.mxu0 %v4869_v21  ;;  %4533 = vmatprep.subr.bf16.mxu1 %v4870_v23  ;;  %v5445_v50 = vpack.c.bf16 %v1256_v6, %v1255_v38  ;;  %v1263_v21 = vld [vmem:[#allocation2 + $0x16a] sm:$0xff]  ;;  %v4896_v10 = vld [vmem:[%s6189_s3 + $0x1d8] sm:$0xff]  }
  0x6e   : > { %4581 = vmatprep.subr.bf16.mxu0 %v4871_v8  ;;  %v335_v62 = vadd.f32 %v4993_v7, %v297_v3  ;;  %v4887_v3 = vld [vmem:[%s6189_s3 + $0x180] sm:$0xff]   ;;  %v1623_v38 = vld [vmem:[#allocation2 + $0x108] sm:$0xff]  ;;  %v1624_v6 = vld [vmem:[#allocation2 + $0x110] sm:$0xff] }
  0x6f   : > { %v4897_v58 = vld [vmem:[%s6189_s3 + $0x218] sm:$0xff]  }
  0x70   : > { %4534 = vmatpush3.bf16.msra.mxu1 %v4870_v23  ;;  %v367_v37 = vmax.f32 %v335_v62, 0.0  ;;  %v4874_v23 = vld [vmem:[%s6189_s3 + $0x170] sm:$0xff]   ;;  %v1622_v62 = vld [vmem:[#allocation2 + $0xf8] sm:$0xff] }
  0x71   : > { %4582 = vmatpush3.bf16.msra.mxu0 %v4871_v8  ;;  %4615 = vmatprep.subr.bf16.mxu1 %v4872_v31  ;;  %v1988_v8 = vld [vmem:[#allocation2 + $0xc9] sm:$0xff]  ;;  %v5539_v9 = vpack.c.bf16 %v1622_v62, %v1621_v61 }
  0x72   : > { %4663 = vmatprep.subr.bf16.mxu0 %v4873_v56  ;;  %4504 = vmatmul.mubr.bf16.gmra.mxu0 %v5433_v53  ;;  %454 = vst [vmem:[#allocation2 + $0x189] sm:$0xff] %v367_v37  ;;  %v5443_v7 = vpack.c.bf16 %v367_v37, %v366_v20  ;;  %v1991_v20 = vld [vmem:[#allocation2 + $0xf1] sm:$0xff]  ;;  %v1992_v37 = vld [vmem:[#allocation2 + $0xf9] sm:$0xff] }
  0x73   : > { %4456 = vmatmul.mubr.bf16.gmra.mxu1 %v5081_v4  ;;  %4507 = vmatprep.mubr.bf16.mxu0 %v5435_v54  ;;  %v1259_v4 = vld [vmem:[#allocation2 + $0x13a] sm:$0xff]  ;;  %v5541_v43 = vpack.c.bf16 %v1992_v37, %v1991_v20  ;;  %v2738_v20 = vld [vmem:[#allocation2 + $0x150] sm:$0xff] }
  0x74   : > { %4459 = vmatprep.mubr.bf16.mxu1 %v5088_v12  ;;  %v1260_v12 = vld [vmem:[#allocation2 + $0x142] sm:$0xff]  ;;  %v2739_v37 = vld [vmem:[#allocation2 + $0x158] sm:$0xff] }
  0x75   : > { %v5453_v51 = vpack.c.bf16 %v1260_v12, %v1259_v4  ;;  %v4888_v4 = vld [vmem:[%s6189_s3 + $0x1f8] sm:$0xff]  }
  0x76   : > { %v4889_v12 = vld [vmem:[%s6189_s3 + $0x238] sm:$0xff]  }
  0x7a   : > { %4508 = vmatmul.mubr.bf16.gmra.mxu0 %v5445_v50 }
  0x7b   : > { %4460 = vmatmul.mubr.bf16.gmra.mxu1 %v5116_v35  ;;  %4511 = vmatprep.mubr.bf16.mxu0 %v5447_v5  ;;  %v1264_v35 = vld [vmem:[#allocation2 + $0x172] sm:$0xff] }
  0x7c   : > { %4463 = vmatprep.mubr.bf16.mxu1 %v5166_v14  ;;  %v5461_v29 = vpack.c.bf16 %v1264_v35, %v1263_v21  ;;  %v5543_v21 = vpack.c.bf16 %v1624_v6, %v1623_v38  ;;  %v5545_v35 = vpack.c.bf16 %v1994_v44, %v1993_v47  ;;  %v2758_v44 = vpack.c.bf16 %v2739_v37, %v2738_v20  ;;  %v5691_v20 = vld [vmem:[%s6190_s4] ss:$0 sm:$0xff] }
  0x82   : > { %4512 = vmatmul.mubr.bf16.gmra.mxu0 %v5453_v51 }
  0x83   : > { %4464 = vmatmul.mubr.bf16.gmra.mxu1 %v5245_v40  ;;  %4515 = vmatprep.mubr.bf16.mxu0 %v5455_v2 }
  0x84   : > { %4467 = vmatprep.mubr.bf16.mxu1 %v5253_v46 }
  0x8a   : > { %4516 = vmatmul.mubr.bf16.gmra.mxu0 %v5461_v29 }
  0x8b   : > { %4468 = vmatmul.mubr.bf16.gmra.mxu1 %v5267_v0  ;;  %4583 = vmatprep.mubr.bf16.mxu0 %v5311_v32  ;;  %v4877_v32 = vld [vmem:[%s6189_s3 + $0x1a8] sm:$0xff]  }
  0x8c   : > { %4535 = vmatprep.mubr.bf16.mxu1 %v5094_v17  ;;  %v4876_v17 = vld [vmem:[%s6189_s3 + $0x168] sm:$0xff]  }
  0x92   : > { %4584 = vmatmul.mubr.bf16.vlgmr.msra.gmra.mxu0 %v5319_v13  ;;  %v4880_v13 = vld [vmem:[%s6189_s3 + $0x158] sm:$0xff]  }
  0x93   : > { %4536 = vmatmul.mubr.bf16.vlgmr.msra.gmra.mxu1 %v5168_v15  ;;  %4664 = vmatpush3.bf16.msra.mxu0 %v4873_v56  ;;  %v4878_v15 = vld [vmem:[%s6189_s3 + $0x160] sm:$0xff]  }
  0x94   : > { %4616 = vmatpush3.bf16.msra.mxu1 %v4872_v31  ;;  %4539 = vmatprep.mubr.bf16.mxu1 %v5177_v22  ;;  %v4879_v22 = vld [vmem:[%s6189_s3 + $0x1a0] sm:$0xff]  }
  0x95   : > { %4587 = vmatprep.mubr.bf16.mxu0 %v5343_v19  ;;  %4617 = vmatprep.subr.bf16.mxu1 %v4874_v23  ;;  %v4881_v19 = vld [vmem:[%s6189_s3 + $0x198] sm:$0xff]  }
  0x96   : > { %4665 = vmatprep.subr.bf16.mxu0 %v4875_v24  ;;  %v1989_v31 = vld [vmem:[#allocation2 + $0xd9] sm:$0xff] }
  0x97   : > { %4666 = vmatpush3.bf16.msra.mxu0 %v4875_v24  ;;  %v5521_v56 = vpack.c.bf16 %v1990_v48, %v1989_v31  ;;  %v1634_v24 = vld [vmem:[#allocation2 + $0x188] sm:$0xff] }
  0x98   : > { %4618 = vmatpush3.bf16.msra.mxu1 %v4874_v23  ;;  %4667 = vmatprep.subr.bf16.mxu0 %v4877_v32  ;;  %v1633_v23 = vld [vmem:[#allocation2 + $0x180] sm:$0xff]  ;;  %v4900_v48 = vld [vmem:[%s6189_s3 + $0x1c8] sm:$0xff]  }
  0x99   : > { %4619 = vmatprep.subr.bf16.mxu1 %v4876_v17 }
  0x9a   : > { %4588 = vmatmul.mubr.bf16.gmra.mxu0 %v5351_v60  ;;  %v1617_v60 = vld [vmem:[#allocation2 + $0xc0] sm:$0xff] }
  0x9b   : > { %4540 = vmatmul.mubr.bf16.gmra.mxu1 %v5236_v34  ;;  %4591 = vmatprep.mubr.bf16.mxu0 %v5375_v27  ;;  %v4882_v34 = vld [vmem:[%s6189_s3 + $0x150] sm:$0xff]   ;;  %v1618_v27 = vld [vmem:[#allocation2 + $0xc8] sm:$0xff] }
  0x9c   : > { %4543 = vmatprep.mubr.bf16.mxu1 %v5263_v26  ;;  %4620 = vmatpush3.bf16.msra.mxu1 %v4876_v17  ;;  %v4883_v26 = vld [vmem:[%s6189_s3 + $0x190] sm:$0xff]  }
  0x9d   : > { %4668 = vmatpush3.bf16.msra.mxu0 %v4877_v32  ;;  %4621 = vmatprep.subr.bf16.mxu1 %v4878_v15  ;;  %v2714_v17 = vld [vmem:[#allocation2 + $0x30] sm:$0xff]  ;;  %v2715_v32 = vld [vmem:[#allocation2 + $0x38] sm:$0xff] }
  0x9e   : > { %4669 = vmatprep.subr.bf16.mxu0 %v4879_v22 }
  0xa0   : > { %4622 = vmatpush3.bf16.msra.mxu1 %v4878_v15  ;;  %v5559_v15 = vpack.c.bf16 %v1634_v24, %v1633_v23 }
  0xa1   : > { %4670 = vmatpush3.bf16.msra.mxu0 %v4879_v22  ;;  %4623 = vmatprep.subr.bf16.mxu1 %v4880_v13  ;;  %v4891_v22 = vld [vmem:[%s6189_s3 + $0x230] sm:$0xff]  }
  0xa2   : > { %4671 = vmatprep.subr.bf16.mxu0 %v4881_v19  ;;  %4592 = vmatmul.mubr.bf16.gmra.mxu0 %v5383_v1  ;;  %v5515_v1 = vpack.c.bf16 %v1618_v27, %v1617_v60  ;;  %v4895_v27 = vld [vmem:[%s6189_s3 + $0x220] sm:$0xff]  }
  0xa3   : > { %4544 = vmatmul.mubr.bf16.gmra.mxu1 %v5275_v33  ;;  %4595 = vmatprep.mubr.bf16.mxu0 %v5407_v42  ;;  %v4884_v33 = vld [vmem:[%s6189_s3 + $0x148] sm:$0xff]   ;;  %v5517_v42 = vpack.c.bf16 %v1988_v8, %v1987_v30  ;;  %v2725_v8 = vld [vmem:[#allocation2 + $0xb0] sm:$0xff] }
  0xa4   : > { %4547 = vmatprep.mubr.bf16.mxu1 %v5289_v16  ;;  %4624 = vmatpush3.bf16.msra.mxu1 %v4880_v13  ;;  %v4885_v16 = vld [vmem:[%s6189_s3 + $0x188] sm:$0xff]   ;;  %v2722_v13 = vld [vmem:[#allocation2 + $0x90] sm:$0xff] }
  0xa5   : > { %4672 = vmatpush3.bf16.msra.mxu0 %v4881_v19  ;;  %4625 = vmatprep.subr.bf16.mxu1 %v4882_v34  ;;  %v2723_v19 = vld [vmem:[#allocation2 + $0x98] sm:$0xff]  ;;  %v2724_v30 = vld [vmem:[#allocation2 + $0xa8] sm:$0xff] }
  0xa6   : > { %4673 = vmatprep.subr.bf16.mxu0 %v4883_v26  ;;  %v2750_v60 = vpack.c.bf16 %v2723_v19, %v2722_v13  ;;  %v2751_v31 = vpack.c.bf16 %v2725_v8, %v2724_v30  ;;  %v3086_v30 = vld [vmem:[#allocation2 + $0x49] sm:$0xff]  ;;  %v3087_v8 = vld [vmem:[#allocation2 + $0x51] sm:$0xff] }
  0xa8   : > { %4626 = vmatpush3.bf16.msra.mxu1 %v4882_v34  ;;  %v4892_v34 = vld [vmem:[%s6189_s3 + $0x1e8] sm:$0xff]  }
  0xa9   : > { %4674 = vmatpush3.bf16.msra.mxu0 %v4883_v26  ;;  %4627 = vmatprep.subr.bf16.mxu1 %v4884_v33  ;;  %v4893_v26 = vld [vmem:[%s6189_s3 + $0x228] sm:$0xff]  }
  0xaa   : > { %4675 = vmatprep.subr.bf16.mxu0 %v4885_v16  ;;  %4596 = vmatmul.mubr.bf16.gmra.mxu0 %v5517_v42 }
  0xab   : > { %4548 = vmatmul.mubr.bf16.gmra.mxu1 %v5515_v1  ;;  %4599 = vmatprep.mubr.bf16.mxu0 %v5521_v56 }
  0xac   : > { %4551 = vmatprep.mubr.bf16.mxu1 %v5519_v49  ;;  %4628 = vmatpush3.bf16.msra.mxu1 %v4884_v33  ;;  %v4901_v33 = vld [vmem:[%s6189_s3 + $0x208] sm:$0xff]  }
  0xad   : > { %4676 = vmatpush3.bf16.msra.mxu0 %v4885_v16  ;;  %4629 = vmatprep.subr.bf16.mxu1 %v4886_v57  ;;  %v2734_v16 = vld [vmem:[#allocation2 + $0x120] sm:$0xff] }
  0xae   : > { %4677 = vmatprep.subr.bf16.mxu0 %v4887_v3 }
  0xb0   : > { %4630 = vmatpush3.bf16.msra.mxu1 %v4886_v57 }
  0xb1   : > { %4678 = vmatpush3.bf16.msra.mxu0 %v4887_v3  ;;  %4711 = vmatprep.subr.bf16.mxu1 %v4888_v4 }
  0xb2   : > { %4759 = vmatprep.subr.bf16.mxu0 %v4889_v12  ;;  %4600 = vmatmul.mubr.bf16.gmra.mxu0 %v5541_v43 }
  0xb3   : > { %4552 = vmatmul.mubr.bf16.gmra.mxu1 %v5539_v9  ;;  %4603 = vmatprep.mubr.bf16.mxu0 %v5545_v35 }
  0xb4   : > { %4555 = vmatprep.mubr.bf16.mxu1 %v5543_v21 }
  0xba   : > { %4604 = vmatmul.mubr.bf16.gmra.mxu0 %v5166_v14  ;;  %v2716_v14 = vld [vmem:[#allocation2 + $0x48] sm:$0xff] }
  0xbb   : > { %4556 = vmatmul.mubr.bf16.gmra.mxu1 %v5238_v36  ;;  %4607 = vmatprep.mubr.bf16.mxu0 %v5245_v40  ;;  %v2746_v36 = vpack.c.bf16 %v2715_v32, %v2714_v17  ;;  %v2717_v40 = vld [vmem:[#allocation2 + $0x50] sm:$0xff] }
  0xbc   : > { %4559 = vmatprep.mubr.bf16.mxu1 %v5265_v41  ;;  %v2719_v41 = vld [vmem:[#allocation2 + $0x68] sm:$0xff] }
  0xc2   : > { %4608 = vmatmul.mubr.bf16.gmra.mxu0 %v5253_v46  ;;  %v2718_v46 = vld [vmem:[#allocation2 + $0x60] sm:$0xff] }
  0xc3   : > { %4560 = vmatmul.mubr.bf16.gmra.mxu1 %v5277_v39  ;;  %4611 = vmatprep.mubr.bf16.mxu0 %v5267_v0  ;;  %v2747_v39 = vpack.c.bf16 %v2717_v40, %v2716_v14  ;;  %v2748_v0 = vpack.c.bf16 %v2719_v41, %v2718_v46  ;;  %v2374_v41 = vld [vmem:[#allocation2 + $0x18a] sm:$0xff] }
  0xc4   : > { %4563 = vmatprep.mubr.bf16.mxu1 %v5291_v25  ;;  %v4890_v25 = vld [vmem:[%s6189_s3 + $0x1f0] sm:$0xff]  }
  0xca   : > { %4612 = vmatmul.mubr.bf16.gmra.mxu0 %v5443_v7  ;;  %v2721_v7 = vld [vmem:[#allocation2 + $0x80] sm:$0xff] }
  0xcb   : > { %4564 = vmatmul.mubr.bf16.gmra.mxu1 %v5559_v15  ;;  %4679 = vmatprep.mubr.bf16.mxu0 %v2746_v36 }
  0xcc   : > { %4631 = vmatprep.mubr.bf16.mxu1 %v5313_v55  ;;  %v2720_v55 = vld [vmem:[#allocation2 + $0x78] sm:$0xff] }
  0xd2   : > { %4680 = vmatmul.mubr.bf16.vlgmr.msra.gmra.mxu0 %v2747_v39  ;;  %v3084_v39 = vld [vmem:[#allocation2 + $0x31] sm:$0xff] }
  0xd3   : > { %4632 = vmatmul.mubr.bf16.vlgmr.msra.gmra.mxu1 %v5321_v59  ;;  %4760 = vmatpush3.bf16.msra.mxu0 %v4889_v12  ;;  %v2749_v59 = vpack.c.bf16 %v2721_v7, %v2720_v55  ;;  %v3454_v55 = vld [vmem:[#allocation2 + $0x32] sm:$0xff]  ;;  %v3455_v7 = vld [vmem:[#allocation2 + $0x3a] sm:$0xff] }
  0xd4   : > { %4712 = vmatpush3.bf16.msra.mxu1 %v4888_v4  ;;  %4635 = vmatprep.mubr.bf16.mxu1 %v5345_v63  ;;  %v4894_v63 = vld [vmem:[%s6189_s3 + $0x1e0] sm:$0xff]  }
  0xd5   : > { %4683 = vmatprep.mubr.bf16.mxu0 %v2748_v0  ;;  %4713 = vmatprep.subr.bf16.mxu1 %v4890_v25 }
  0xd6   : > { %4761 = vmatprep.subr.bf16.mxu0 %v4891_v22 }
  0xd7   : > { %4762 = vmatpush3.bf16.msra.mxu0 %v4891_v22  ;;  %v3085_v22 = vld [vmem:[#allocation2 + $0x39] sm:$0xff] }
  0xd8   : > { %4714 = vmatpush3.bf16.msra.mxu1 %v4890_v25  ;;  %4763 = vmatprep.subr.bf16.mxu0 %v4893_v26 }
  0xd9   : > { %4715 = vmatprep.subr.bf16.mxu1 %v4892_v34 }
  0xda   : > { %4684 = vmatmul.mubr.bf16.gmra.mxu0 %v2749_v59 }
  0xdb   : > { %4636 = vmatmul.mubr.bf16.gmra.mxu1 %v5353_v18  ;;  %4687 = vmatprep.mubr.bf16.mxu0 %v2750_v60  ;;  %v4898_v18 = vld [vmem:[%s6189_s3 + $0x1d0] sm:$0xff]  }
  0xdc   : > { %4639 = vmatprep.mubr.bf16.mxu1 %v5377_v28  ;;  %4716 = vmatpush3.bf16.msra.mxu1 %v4892_v34  ;;  %v4899_v28 = vld [vmem:[%s6189_s3 + $0x210] sm:$0xff]   ;;  %v4904_v34 = vld [vmem:[#allocation2] sm:$0xff] }
  0xdd   : > { %4764 = vmatpush3.bf16.msra.mxu0 %v4893_v26  ;;  %4717 = vmatprep.subr.bf16.mxu1 %v4894_v63  ;;  %v3116_v26 = vpack.c.bf16 %v3085_v22, %v3084_v39 }
  0xde   : > { %4765 = vmatprep.subr.bf16.mxu0 %v4895_v27 }
  0xe0   : > { %4718 = vmatpush3.bf16.msra.mxu1 %v4894_v63 }
  0xe1   : > { %4766 = vmatpush3.bf16.msra.mxu0 %v4895_v27  ;;  %4719 = vmatprep.subr.bf16.mxu1 %v4896_v10 }
  0xe2   : > { %4767 = vmatprep.subr.bf16.mxu0 %v4897_v58  ;;  %4688 = vmatmul.mubr.bf16.gmra.mxu0 %v2751_v31  ;;  %v3088_v31 = vld [vmem:[#allocation2 + $0x61] sm:$0xff] }
  0xe3   : > { %4640 = vmatmul.mubr.bf16.gmra.mxu1 %v5385_v11  ;;  %4691 = vmatprep.mubr.bf16.mxu0 %v5515_v1  ;;  %v4902_v11 = vld [vmem:[%s6189_s3 + $0x1c0] sm:$0xff]   ;;  %v2735_v1 = vld [vmem:[#allocation2 + $0x128] sm:$0xff] }
  0xe4   : > { %4643 = vmatprep.mubr.bf16.mxu1 %v5409_v45  ;;  %4720 = vmatpush3.bf16.msra.mxu1 %v4896_v10  ;;  %v4903_v45 = vld [vmem:[%s6189_s3 + $0x200] sm:$0xff]   ;;  %v2756_v57 = vpack.c.bf16 %v2735_v1, %v2734_v16  ;;  %v3456_v10 = vld [vmem:[#allocation2 + $0x4a] sm:$0xff]  ;;  %v3117_v1 = vpack.c.bf16 %v3087_v8, %v3086_v30 }
  0xe5   : > { %4768 = vmatpush3.bf16.msra.mxu0 %v4897_v58  ;;  %4721 = vmatprep.subr.bf16.mxu1 %v4898_v18  ;;  %v3457_v58 = vld [vmem:[#allocation2 + $0x52] sm:$0xff] }
  0xe6   : > { %4769 = vmatprep.subr.bf16.mxu0 %v4899_v28 }
  0xe8   : > { %4722 = vmatpush3.bf16.msra.mxu1 %v4898_v18 }
  0xe9   : > { %4770 = vmatpush3.bf16.msra.mxu0 %v4899_v28  ;;  %4723 = vmatprep.subr.bf16.mxu1 %v4900_v48 }
  0xea   : > { %4771 = vmatprep.subr.bf16.mxu0 %v4901_v33  ;;  %4692 = vmatmul.mubr.bf16.gmra.mxu0 %v5519_v49 }
  0xeb   : > { %4644 = vmatmul.mubr.bf16.gmra.mxu1 %v5411_v52  ;;  %4695 = vmatprep.mubr.bf16.mxu0 %v5539_v9  ;;  %v2736_v52 = vld [vmem:[#allocation2 + $0x138] sm:$0xff]  ;;  %v2740_v9 = vld [vmem:[#allocation2 + $0x168] sm:$0xff] }
  0xec   : > { %4647 = vmatprep.mubr.bf16.mxu1 %v5433_v53  ;;  %4724 = vmatpush3.bf16.msra.mxu1 %v4900_v48  ;;  %v2737_v53 = vld [vmem:[#allocation2 + $0x140] sm:$0xff]  ;;  %v3089_v48 = vld [vmem:[#allocation2 + $0x69] sm:$0xff] }
  0xed   : > { %4772 = vmatpush3.bf16.msra.mxu0 %v4901_v33  ;;  %4725 = vmatprep.subr.bf16.mxu1 %v4902_v11  ;;  %v2757_v47 = vpack.c.bf16 %v2737_v53, %v2736_v52  ;;  %v3458_v33 = vld [vmem:[#allocation2 + $0x62] sm:$0xff]  ;;  %v3118_v52 = vpack.c.bf16 %v3089_v48, %v3088_v31 }
  0xee   : > { %4773 = vmatprep.subr.bf16.mxu0 %v4903_v45 }
  0xf0   : > { %4726 = vmatpush3.bf16.msra.mxu1 %v4902_v11  ;;  %v3459_v11 = vld [vmem:[#allocation2 + $0x6a] sm:$0xff] }
  0xf1   : > { %4774 = vmatpush3.bf16.msra.mxu0 %v4903_v45  ;;  %v3488_v53 = vpack.c.bf16 %v3459_v11, %v3458_v33 }
  0xf2   : > { %v5617_v3 = vpop.f32.mrf.mxu0  ;;  %4696 = vmatmul.mubr.bf16.gmra.mxu0 %v5543_v21  ;;  %v2741_v21 = vld [vmem:[#allocation2 + $0x170] sm:$0xff] }
  0xf3   : > { %v5619_v61 = vpop.f32.mrf.mxu1  ;;  %4648 = vmatmul.mubr.bf16.gmra.mxu1 %v5435_v54  ;;  %4699 = vmatprep.mubr.bf16.mxu0 %v2756_v57  ;;  %v2759_v36 = vpack.c.bf16 %v2741_v21, %v2740_v9  ;;  %v3487_v57 = vpack.c.bf16 %v3457_v58, %v3456_v10 }
  0xf4   : > { %4651 = vmatprep.mubr.bf16.mxu1 %v5445_v50  ;;  %v5624_v49 = vpop.f32.mrf.mxu0 }
  0xf5   : > { %v5626_v62 = vpop.f32.mrf.mxu1  ;;  %v799_v39 = vadd.f32 %v5691_v20, %v5624_v49 }
  0xf6   : > { %v5628_v38 = vpop.f32.mrf.mxu0 }
  0xf7   : > { %v5630_v6 = vpop.f32.mrf.mxu1  ;;  %v802_v30 = vadd.f32 %v5628_v38, %v5691_v20 }
  0xf8   : > { %v5632_v54 = vpop.f32.mrf.mxu0 }
  0xf9   : > { %v5634_v4 = vpop.f32.mrf.mxu1  ;;  %v800_v11 = vadd.f32 %v5691_v20, %v5632_v54 }
  0xfa   : > { %v5636_v50 = vpop.f32.mrf.mxu0  ;;  %4700 = vmatmul.mubr.bf16.gmra.mxu0 %v2757_v47 }
  0xfb   : > { %v5638_v12 = vpop.f32.mrf.mxu1  ;;  %4652 = vmatmul.mubr.bf16.gmra.mxu1 %v5447_v5  ;;  %4703 = vmatprep.mubr.bf16.mxu0 %v2758_v44  ;;  %v801_v44 = vadd.f32 %v5617_v3, %v5691_v20  ;;  %v3463_v3 = vld [vmem:[#allocation2 + $0x9a] sm:$0xff]  ;;  %v805_v38 = vadd.f32 %v5636_v50, %v5691_v20 }
  0xfc   : > { %4655 = vmatprep.mubr.bf16.mxu1 %v5453_v51  ;;  %v5642_v23 = vpop.f32.mrf.mxu0  ;;  %v2373_v51 = vld [vmem:[#allocation2 + $0x182] sm:$0xff] }
  0xfd   : > { %v5644_v24 = vpop.f32.mrf.mxu1  ;;  %v803_v54 = vadd.f32 %v5691_v20, %v5642_v23 }
  0xfe   : > { %v5646_v17 = vpop.f32.mrf.mxu0 }
  0xff   : > { %v5648_v32 = vpop.f32.mrf.mxu1 }
 0x100   : > { %v5650_v14 = vpop.f32.mrf.mxu0 }
 0x101   : > { %v5652_v40 = vpop.f32.mrf.mxu1 }
 0x102   : > { %v5654_v5 = vpop.f32.mrf.mxu0  ;;  %4704 = vmatmul.mubr.bf16.gmra.mxu0 %v2759_v36  ;;  %v3090_v36 = vld [vmem:[#allocation2 + $0x79] sm:$0xff] }
 0x103   : > { %v5656_v46 = vpop.f32.mrf.mxu1  ;;  %4656 = vmatmul.mubr.bf16.gmra.mxu1 %v5455_v2  ;;  %4707 = vmatprep.mubr.bf16.mxu0 %v5559_v15  ;;  %v5669_v2 = vpack.c.bf16 %v2374_v41, %v2373_v51  ;;  %v3486_v15 = vpack.c.bf16 %v3455_v7, %v3454_v55  ;;  %v3091_v51 = vld [vmem:[#allocation2 + $0x81] sm:$0xff]  ;;  %v3092_v7 = vld [vmem:[#allocation2 + $0x91] sm:$0xff] }
 0x104   : > { %4659 = vmatprep.mubr.bf16.mxu1 %v5461_v29  ;;  %v5661_v0 = vpop.f32.mrf.mxu0  ;;  %v2761_v29 = vpack.c.bf16 %v4904_v34, %v4904_v34  ;;  %v3460_v41 = vld [vmem:[#allocation2 + $0x7a] sm:$0xff]  ;;  %v3461_v55 = vld [vmem:[#allocation2 + $0x82] sm:$0xff]  ;;  %v3119_v48 = vpack.c.bf16 %v3091_v51, %v3090_v36 }
 0x105   : > { %v5663_v25 = vpop.f32.mrf.mxu1  ;;  %v3093_v34 = vld [vmem:[#allocation2 + $0x99] sm:$0xff]  ;;  %v3489_v49 = vpack.c.bf16 %v3461_v55, %v3460_v41  ;;  %v3094_v36 = vld [vmem:[#allocation2 + $0xa9] sm:$0xff]  ;;  %v3095_v55 = vld [vmem:[#allocation2 + $0xb1] sm:$0xff] }
 0x106   : > { %v5665_v13 = vpop.f32.mrf.mxu0  ;;  %v3120_v33 = vpack.c.bf16 %v3093_v34, %v3092_v7  ;;  %v3464_v7 = vld [vmem:[#allocation2 + $0xaa] sm:$0xff]  ;;  %v3465_v34 = vld [vmem:[#allocation2 + $0xb2] sm:$0xff] }
 0x107   : > { %v5667_v19 = vpop.f32.mrf.mxu1 }
 0x108   : > { %v5671_v59 = vpop.f32.mrf.mxu0 }
 0x109   : > { %v5673_v60 = vpop.f32.mrf.mxu1 }
 0x10a   : > { %v5675_v63 = vpop.f32.mrf.mxu0  ;;  %4708 = vmatmul.mubr.bf16.gmra.mxu0 %v2761_v29 }
 0x10b   : > { %v5677_v27 = vpop.f32.mrf.mxu1  ;;  %4660 = vmatmul.mubr.bf16.gmra.mxu1 %v5669_v2  ;;  %4775 = vmatprep.mubr.bf16.mxu0 %v3486_v15  ;;  %v3462_v15 = vld [vmem:[#allocation2 + $0x92] sm:$0xff] }
 0x10c   : > { %4727 = vmatprep.mubr.bf16.mxu1 %v3116_v26  ;;  %v5680_v18 = vpop.f32.mrf.mxu0 }
 0x10d   : > { %v5682_v28 = vpop.f32.mrf.mxu1 }
 0x10e   : > { %v5684_v45 = vpop.f32.mrf.mxu0 }
 0x10f   : > { %v5686_v16 = vpop.f32.mrf.mxu1 }
 0x110   : > { %v5693_v37 = vpop.f32.mrf.mxu0 }
 0x111   : > { %v5695_v47 = vpop.f32.mrf.mxu1 }
 0x112   : > { %v4489_v21 = vpop.f32.mrf.mxu0  ;;  %4776 = vmatmul.mubr.bf16.vlgmr.msra.gmra.mxu0 %v3487_v57 }
 0x113   : > { %v4441_v9 = vpop.f32.mrf.mxu1  ;;  %4728 = vmatmul.mubr.bf16.vlgmr.msra.gmra.mxu1 %v3117_v1  ;;  %4779 = vmatprep.mubr.bf16.mxu0 %v3488_v53 }
 0x114   : > { %v1171_v22 = vadd.f32 %v4441_v9, %v801_v44  ;;  %4731 = vmatprep.mubr.bf16.mxu1 %v3118_v52  ;;  %v1412_v26 = vpop.f32.mrf.mxu0  ;;  %v3490_v52 = vpack.c.bf16 %v3463_v3, %v3462_v15  ;;  %v3467_v15 = vld [vmem:[#allocation2 + $0xca] sm:$0xff]  ;;  %v806_v3 = vadd.f32 %v5646_v17, %v5691_v20 }
 0x115   : > { %v1042_v29 = vpop.f32.mrf.mxu1 }
 0x116   : > { %v5703_v8 = vadd.f32 %v4489_v21, %v1171_v22  ;;  %v1169_v10 = vadd.f32 %v1042_v29, %v799_v39  ;;  %v4490_v31 = vpop.f32.mrf.mxu0 }
 0x117   : > { %v4442_v58 = vpop.f32.mrf.mxu1 }
 0x118   : > { %v5707_v1 = vadd.f32 %v1412_v26, %v1169_v10  ;;  %v1172_v57 = vadd.f32 %v4442_v58, %v802_v30  ;;  %v1415_v44 = vpop.f32.mrf.mxu0  ;;  %v3466_v26 = vld [vmem:[#allocation2 + $0xc2] sm:$0xff] }
 0x119   : > { %v1045_v53 = vpop.f32.mrf.mxu1 }
 0x11a   : > { %v5711_v9 = vadd.f32 %v4490_v31, %v1172_v57  ;;  %v1170_v21 = vadd.f32 %v1045_v53, %v800_v11  ;;  %v4493_v22 = vpop.f32.mrf.mxu0  ;;  %4780 = vmatmul.mubr.bf16.gmra.mxu0 %v3489_v49  ;;  %v3121_v31 = vpack.c.bf16 %v3095_v55, %v3094_v36  ;;  %v804_v49 = vadd.f32 %v5691_v20, %v5650_v14 }
 0x11b   : > { %v4445_v39 = vpop.f32.mrf.mxu1  ;;  %4732 = vmatmul.mubr.bf16.gmra.mxu1 %v3119_v48  ;;  %4783 = vmatprep.mubr.bf16.mxu0 %v3490_v52  ;;  %v3491_v48 = vpack.c.bf16 %v3465_v34, %v3464_v7  ;;  %v3492_v57 = vpack.c.bf16 %v3467_v15, %v3466_v26  ;;  %v3470_v7 = vld [vmem:[#allocation2 + $0xf2] sm:$0xff]  ;;  %v3471_v34 = vld [vmem:[#allocation2 + $0xfa] sm:$0xff] }
 0x11c   : > { %v5715_v51 = vadd.f32 %v1415_v44, %v1170_v21  ;;  %v1175_v41 = vadd.f32 %v4445_v39, %v805_v38  ;;  %4735 = vmatprep.mubr.bf16.mxu1 %v3120_v33  ;;  %v1428_v29 = vpop.f32.mrf.mxu0  ;;  %v809_v44 = vadd.f32 %v5654_v5, %v5691_v20 }
 0x11d   : > { %v1058_v50 = vpop.f32.mrf.mxu1 }
 0x11e   : > { %v5719_v30 = vadd.f32 %v4493_v22, %v1175_v41  ;;  %v1173_v10 = vadd.f32 %v1058_v50, %v803_v54  ;;  %v4494_v23 = vpop.f32.mrf.mxu0  ;;  %v807_v22 = vadd.f32 %v5691_v20, %v5661_v0  ;;  %v3468_v54 = vld [vmem:[#allocation2 + $0xda] sm:$0xff]  ;;  %v3469_v41 = vld [vmem:[#allocation2 + $0xe2] sm:$0xff]  ;;  %v810_v50 = vadd.f32 %v5665_v13, %v5691_v20 }
 0x11f   : > { %v4446_v58 = vpop.f32.mrf.mxu1 }
 0x120   : > { %v5723_v33 = vadd.f32 %v1428_v29, %v1173_v10  ;;  %v1176_v11 = vadd.f32 %v4446_v58, %v806_v3  ;;  %v1431_v53 = vpop.f32.mrf.mxu0  ;;  %v3493_v3 = vpack.c.bf16 %v3469_v41, %v3468_v54  ;;  %v808_v10 = vadd.f32 %v5691_v20, %v5671_v59  ;;  %v3474_v54 = vld [vmem:[#allocation2 + $0x122] sm:$0xff]  ;;  %v3475_v41 = vld [vmem:[#allocation2 + $0x12a] sm:$0xff] }
 0x121   : > { %v1061_v52 = vpop.f32.mrf.mxu1  ;;  %v811_v59 = vadd.f32 %v5691_v20, %v5680_v18 }
 0x122   : > { %v5727_v17 = vadd.f32 %v4494_v23, %v1176_v11  ;;  %v1174_v38 = vadd.f32 %v1061_v52, %v804_v49  ;;  %v4497_v39 = vpop.f32.mrf.mxu0  ;;  %4784 = vmatmul.mubr.bf16.gmra.mxu0 %v3491_v48  ;;  %v3494_v23 = vpack.c.bf16 %v3471_v34, %v3470_v7  ;;  %v813_v49 = vadd.f32 %v5675_v63, %v5691_v20  ;;  %v3104_v63 = vld [vmem:[#allocation2 + $0x121] sm:$0xff] }
 0x123   : > { %v4449_v21 = vpop.f32.mrf.mxu1  ;;  %4736 = vmatmul.mubr.bf16.gmra.mxu1 %v3121_v31  ;;  %4787 = vmatprep.mubr.bf16.mxu0 %v3492_v57 }
 0x124   : > { %v5731_v14 = vadd.f32 %v1431_v53, %v1174_v38  ;;  %v1179_v36 = vadd.f32 %v4449_v21, %v809_v44  ;;  %4739 = vmatprep.mubr.bf16.mxu1 %v5517_v42  ;;  %v1444_v5 = vpop.f32.mrf.mxu0  ;;  %v3472_v53 = vld [vmem:[#allocation2 + $0x10a] sm:$0xff]  ;;  %v3473_v21 = vld [vmem:[#allocation2 + $0x112] sm:$0xff] }
 0x125   : > { %v1074_v55 = vpop.f32.mrf.mxu1  ;;  %v3495_v34 = vpack.c.bf16 %v3473_v21, %v3472_v53 }
 0x126   : > { %v5736_v29 = vadd.f32 %v4497_v39, %v1179_v36  ;;  %v1177_v26 = vadd.f32 %v1074_v55, %v807_v22  ;;  %v4498_v0 = vpop.f32.mrf.mxu0  ;;  %v3105_v39 = vld [vmem:[#allocation2 + $0x129] sm:$0xff] }
 0x127   : > { %v4450_v15 = vpop.f32.mrf.mxu1 }
 0x128   : > { %v5740_v42 = vadd.f32 %v1444_v5, %v1177_v26  ;;  %v1180_v58 = vadd.f32 %v4450_v15, %v810_v50  ;;  %v1447_v48 = vpop.f32.mrf.mxu0  ;;  %v3126_v50 = vpack.c.bf16 %v3105_v39, %v3104_v63  ;;  %v3478_v39 = vld [vmem:[#allocation2 + $0x152] sm:$0xff] }
 0x129   : > { %v1077_v31 = vpop.f32.mrf.mxu1 }
 0x12a   : > { %v5744_v11 = vadd.f32 %v4498_v0, %v1180_v58  ;;  %v1178_v13 = vadd.f32 %v1077_v31, %v808_v10  ;;  %v4501_v52 = vpop.f32.mrf.mxu0  ;;  %4788 = vmatmul.mubr.bf16.gmra.mxu0 %v3493_v3  ;;  %v3496_v0 = vpack.c.bf16 %v3475_v41, %v3474_v54  ;;  %v817_v58 = vadd.f32 %v5619_v61, %v5691_v20  ;;  %v3477_v61 = vld [vmem:[#allocation2 + $0x142] sm:$0xff] }
 0x12b   : > { %v4453_v57 = vpop.f32.mrf.mxu1  ;;  %4740 = vmatmul.mubr.bf16.gmra.mxu1 %v5521_v56  ;;  %4791 = vmatprep.mubr.bf16.mxu0 %v3494_v23  ;;  %v814_v56 = vadd.f32 %v5684_v45, %v5691_v20 }
 0x12c   : > { %v5749_v44 = vadd.f32 %v1447_v48, %v1178_v13  ;;  %v1183_v38 = vadd.f32 %v4453_v57, %v813_v49  ;;  %4743 = vmatprep.mubr.bf16.mxu1 %v5541_v43  ;;  %v1460_v36 = vpop.f32.mrf.mxu0  ;;  %v812_v43 = vadd.f32 %v5691_v20, %v5693_v37  ;;  %v3106_v49 = vld [vmem:[#allocation2 + $0x139] sm:$0xff]  ;;  %v3107_v13 = vld [vmem:[#allocation2 + $0x141] sm:$0xff]  ;;  %v815_v57 = vadd.f32 %v5691_v20, %v5626_v62 }
 0x12d   : > { %v1090_v22 = vpop.f32.mrf.mxu1  ;;  %v3476_v37 = vld [vmem:[#allocation2 + $0x13a] sm:$0xff] }
 0x12e   : > { %v5754_v55 = vadd.f32 %v4501_v52, %v1183_v38  ;;  %v1181_v5 = vadd.f32 %v1090_v22, %v811_v59  ;;  %v4502_v7 = vpop.f32.mrf.mxu0  ;;  %v3108_v59 = vld [vmem:[#allocation2 + $0x151] sm:$0xff]  ;;  %v3109_v38 = vld [vmem:[#allocation2 + $0x159] sm:$0xff] }
 0x12f   : > { %v4454_v18 = vpop.f32.mrf.mxu1  ;;  %v3479_v22 = vld [vmem:[#allocation2 + $0x15a] sm:$0xff] }
 0x130   : > { %v5758_v26 = vadd.f32 %v1460_v36, %v1181_v5  ;;  %v1184_v15 = vadd.f32 %v4454_v18, %v814_v56  ;;  %v1463_v10 = vpop.f32.mrf.mxu0  ;;  %v3127_v56 = vpack.c.bf16 %v3107_v13, %v3106_v49  ;;  %v3497_v5 = vpack.c.bf16 %v3477_v61, %v3476_v37  ;;  %v3111_v13 = vld [vmem:[#allocation2 + $0x171] sm:$0xff]  ;;  %v3112_v61 = vld [vmem:[#allocation2 + $0x181] sm:$0xff] }
 0x131   : > { %v1093_v3 = vpop.f32.mrf.mxu1  ;;  %v3128_v18 = vpack.c.bf16 %v3109_v38, %v3108_v59  ;;  %v3480_v37 = vld [vmem:[#allocation2 + $0x16a] sm:$0xff]  ;;  %v822_v38 = vadd.f32 %v5648_v32, %v5691_v20 }
 0x132   : > { %v5762_v45 = vadd.f32 %v4502_v7, %v1184_v15  ;;  %v1182_v23 = vadd.f32 %v1093_v3, %v812_v43  ;;  %v4505_v48 = vpop.f32.mrf.mxu0  ;;  %4792 = vmatmul.mubr.bf16.gmra.mxu0 %v3495_v34  ;;  %v816_v7 = vadd.f32 %v5691_v20, %v5634_v4  ;;  %v3498_v43 = vpack.c.bf16 %v3479_v22, %v3478_v39  ;;  %v3113_v59 = vld [vmem:[#allocation2 + $0x189] sm:$0xff] }
 0x133   : > { %v4457_v31 = vpop.f32.mrf.mxu1  ;;  %4744 = vmatmul.mubr.bf16.gmra.mxu1 %v5545_v35  ;;  %4795 = vmatprep.mubr.bf16.mxu0 %v3496_v0  ;;  %v818_v35 = vadd.f32 %v5630_v6, %v5691_v20  ;;  %v821_v6 = vadd.f32 %v5638_v12, %v5691_v20  ;;  %v819_v4 = vadd.f32 %v5691_v20, %v5644_v24 }
 0x134   : > { %v5767_v52 = vadd.f32 %v1463_v10, %v1182_v23  ;;  %v1187_v53 = vadd.f32 %v4457_v31, %v817_v58  ;;  %4747 = vmatprep.mubr.bf16.mxu1 %v3126_v50  ;;  %v1476_v63 = vpop.f32.mrf.mxu0  ;;  %v3110_v31 = vld [vmem:[#allocation2 + $0x169] sm:$0xff] }
 0x135   : > { %v1106_v21 = vpop.f32.mrf.mxu1  ;;  %v3129_v22 = vpack.c.bf16 %v3111_v13, %v3110_v31 }
 0x136   : > { %v5771_v36 = vadd.f32 %v4505_v48, %v1187_v53  ;;  %v1185_v54 = vadd.f32 %v1106_v21, %v815_v57  ;;  %v4506_v62 = vpop.f32.mrf.mxu0  ;;  %v3481_v57 = vld [vmem:[#allocation2 + $0x172] sm:$0xff] }
 0x137   : > { %v4458_v41 = vpop.f32.mrf.mxu1 }
 0x138   : > { %v5775_v34 = vadd.f32 %v1476_v63, %v1185_v54  ;;  %v1188_v50 = vadd.f32 %v4458_v41, %v818_v35  ;;  %v1479_v0 = vpop.f32.mrf.mxu0  ;;  %v3499_v35 = vpack.c.bf16 %v3481_v57, %v3480_v37  ;;  %v820_v54 = vadd.f32 %v5691_v20, %v5652_v40 }
 0x139   : > { %v1109_v15 = vpop.f32.mrf.mxu1  ;;  %v823_v40 = vadd.f32 %v5691_v20, %v5663_v25 }
 0x13a   : > { %v5779_v3 = vadd.f32 %v4506_v62, %v1188_v50  ;;  %v1186_v10 = vadd.f32 %v1109_v15, %v816_v7  ;;  %v4509_v23 = vpop.f32.mrf.mxu0  ;;  %4796 = vmatmul.mubr.bf16.gmra.mxu0 %v3497_v5  ;;  %v825_v7 = vadd.f32 %v5656_v46, %v5691_v20  ;;  %v3485_v46 = vld [vmem:[#allocation2 + $0x1a2] sm:$0xff] }
 0x13b   : > { %v4461_v58 = vpop.f32.mrf.mxu1  ;;  %4748 = vmatmul.mubr.bf16.gmra.mxu1 %v3127_v56  ;;  %4799 = vmatprep.mubr.bf16.mxu0 %v3498_v43  ;;  %v3130_v56 = vpack.c.bf16 %v3113_v59, %v3112_v61  ;;  %v824_v61 = vadd.f32 %v5691_v20, %v5673_v60 }
 0x13c   : > { %v5783_v48 = vadd.f32 %v1479_v0, %v1186_v10  ;;  %v1191_v49 = vadd.f32 %v4461_v58, %v821_v6  ;;  %4751 = vmatprep.mubr.bf16.mxu1 %v3128_v18  ;;  %v1492_v53 = vpop.f32.mrf.mxu0  ;;  %v3114_v0 = vld [vmem:[#allocation2 + $0x199] sm:$0xff]  ;;  %v3115_v58 = vld [vmem:[#allocation2 + $0x1a1] sm:$0xff] }
 0x13d   : > { %v1122_v12 = vpop.f32.mrf.mxu1  ;;  %v3131_v25 = vpack.c.bf16 %v3115_v58, %v3114_v0 }
 0x13e   : > { %v5787_v21 = vadd.f32 %v4509_v23, %v1191_v49  ;;  %v1189_v63 = vadd.f32 %v1122_v12, %v819_v4  ;;  %v4510_v24 = vpop.f32.mrf.mxu0  ;;  %v3484_v23 = vld [vmem:[#allocation2 + $0x19a] sm:$0xff]  ;;  %v826_v49 = vadd.f32 %v5667_v19, %v5691_v20 }
 0x13f   : > { %v4462_v39 = vpop.f32.mrf.mxu1 }
 0x140   : > { %v5791_v41 = vadd.f32 %v1492_v53, %v1189_v63  ;;  %v1192_v62 = vadd.f32 %v4462_v39, %v822_v38  ;;  %v1495_v18 = vpop.f32.mrf.mxu0  ;;  %v3501_v53 = vpack.c.bf16 %v3485_v46, %v3484_v23  ;;  %v829_v39 = vadd.f32 %v5677_v27, %v5691_v20 }
 0x141   : > { %v1125_v5 = vpop.f32.mrf.mxu1 }
 0x142   : > { %v5795_v32 = vadd.f32 %v4510_v24, %v1192_v62  ;;  %v1190_v50 = vadd.f32 %v1125_v5, %v820_v54  ;;  %v4513_v15 = vpop.f32.mrf.mxu0  ;;  %4800 = vmatmul.mubr.bf16.gmra.mxu0 %v3499_v35  ;;  %v827_v54 = vadd.f32 %v5691_v20, %v5682_v28 }
 0x143   : > { %v4465_v43 = vpop.f32.mrf.mxu1  ;;  %4752 = vmatmul.mubr.bf16.gmra.mxu1 %v3129_v22  ;;  %4803 = vmatprep.mubr.bf16.mxu0 %v5669_v2 }
 0x144   : > { %v5799_v6 = vadd.f32 %v1495_v18, %v1190_v50  ;;  %v1195_v10 = vadd.f32 %v4465_v43, %v825_v7  ;;  %4755 = vmatprep.mubr.bf16.mxu1 %v3130_v56  ;;  %v1508_v4 = vpop.f32.mrf.mxu0  ;;  %v830_v18 = vadd.f32 %v5686_v16, %v5691_v20 }
 0x145   : > { %v1138_v31 = vpop.f32.mrf.mxu1 }
 0x146   : > { %v5804_v13 = vadd.f32 %v4513_v15, %v1195_v10  ;;  %v1193_v37 = vadd.f32 %v1138_v31, %v823_v40  ;;  %v4514_v12 = vpop.f32.mrf.mxu0  ;;  %v828_v15 = vadd.f32 %v5691_v20, %v5695_v47 }
 0x147   : > { %v4466_v57 = vpop.f32.mrf.mxu1 }
 0x148   : > { %v5808_v59 = vadd.f32 %v1508_v4, %v1193_v37  ;;  %v1196_v2 = vadd.f32 %v4466_v57, %v826_v49  ;;  %v1511_v63 = vpop.f32.mrf.mxu0 }
 0x149   : > { %v1141_v38 = vpop.f32.mrf.mxu1 }
 0x14a   : > { %v5812_v24 = vadd.f32 %v4514_v12, %v1196_v2  ;;  %v1194_v19 = vadd.f32 %v1141_v38, %v824_v61  ;;  %v4517_v35 = vpop.f32.mrf.mxu0  ;;  %4804 = vmatmul.mubr.bf16.gmra.mxu0 %v3501_v53 }
 0x14b   : > { %v4469_v22 = vpop.f32.mrf.mxu1  ;;  %4756 = vmatmul.mubr.bf16.gmra.mxu1 %v3131_v25 }
 0x14c   : > { %v5816_v62 = vadd.f32 %v1511_v63, %v1194_v19  ;;  %v1199_v60 = vadd.f32 %v4469_v22, %v829_v39  ;;  %v1524_v5 = vpop.f32.mrf.mxu0 }
 0x14d   : > { %v1154_v56 = vpop.f32.mrf.mxu1 }
 0x14e   : > { %v5820_v7 = vadd.f32 %v4517_v35, %v1199_v60  ;;  %v1197_v27 = vadd.f32 %v1154_v56, %v827_v54  ;;  %v4518_v43 = vpop.f32.mrf.mxu0 }
 0x14f   : > { %v4470_v50 = vpop.f32.mrf.mxu1 }
 0x150   : > { %v5824_v0 = vadd.f32 %v1524_v5, %v1197_v27  ;;  %v1200_v40 = vadd.f32 %v4470_v50, %v830_v18  ;;  %v1527_v10 = vpop.f32.mrf.mxu0 }
 0x151   : > { %v1157_v28 = vpop.f32.mrf.mxu1 }
 0x152   : > { %v5826_v58 = vadd.f32 %v4518_v43, %v1200_v40  ;;  %v1198_v23 = vadd.f32 %v1157_v28, %v828_v15  ;;  %v4585_v31 = vpop.f32.mrf.mxu0 }
 0x153   : > { %v4537_v46 = vpop.f32.mrf.mxu1 }
 0x154   : > { %v5828_v4 = vadd.f32 %v1527_v10, %v1198_v23  ;;  %v1911_v16 = vadd.f32 %v4537_v46, %v5703_v8  ;;  %v2152_v37 = vpop.f32.mrf.mxu0 }
 0x155   : > { %v1782_v49 = vpop.f32.mrf.mxu1 }
 0x156   : > { %v5831_v57 = vadd.f32 %v4585_v31, %v1911_v16  ;;  %v1909_v20 = vadd.f32 %v1782_v49, %v5707_v1  ;;  %v4586_v12 = vpop.f32.mrf.mxu0 }
 0x157   : > { %v4538_v47 = vpop.f32.mrf.mxu1 }
 0x158   : > { %v5834_v25 = vadd.f32 %v2152_v37, %v1909_v20  ;;  %v1912_v53 = vadd.f32 %v4538_v47, %v5711_v9  ;;  %v2155_v2 = vpop.f32.mrf.mxu0 }
 0x159   : > { %v1785_v61 = vpop.f32.mrf.mxu1 }
 0x15a   : > { %v5837_v38 = vadd.f32 %v4586_v12, %v1912_v53  ;;  %v1910_v63 = vadd.f32 %v1785_v61, %v5715_v51  ;;  %v4589_v8 = vpop.f32.mrf.mxu0 }
 0x15b   : > { %v4541_v39 = vpop.f32.mrf.mxu1 }
 0x15c   : > { %v5840_v19 = vadd.f32 %v2155_v2, %v1910_v63  ;;  %v1915_v22 = vadd.f32 %v4541_v39, %v5719_v30  ;;  %v2168_v1 = vpop.f32.mrf.mxu0 }
 0x15d   : > { %v1798_v35 = vpop.f32.mrf.mxu1 }
 0x15e   : > { %v5843_v54 = vadd.f32 %v4589_v8, %v1915_v22  ;;  %v1913_v60 = vadd.f32 %v1798_v35, %v5723_v33  ;;  %v4590_v9 = vpop.f32.mrf.mxu0 }
 0x15f   : > { %v4542_v56 = vpop.f32.mrf.mxu1 }
 0x160   : > { %v5846_v5 = vadd.f32 %v2168_v1, %v1913_v60  ;;  %v1916_v18 = vadd.f32 %v4542_v56, %v5727_v17  ;;  %v2171_v51 = vpop.f32.mrf.mxu0 }
 0x161   : > { %v1801_v27 = vpop.f32.mrf.mxu1 }
 0x162   : > { %v5849_v50 = vadd.f32 %v4590_v9, %v1916_v18  ;;  %v1914_v43 = vadd.f32 %v1801_v27, %v5731_v14  ;;  %v4593_v30 = vpop.f32.mrf.mxu0 }
 0x163   : > { %v4545_v15 = vpop.f32.mrf.mxu1 }
 0x164   : > { %v5852_v40 = vadd.f32 %v2171_v51, %v1914_v43  ;;  %v1919_v28 = vadd.f32 %v4545_v15, %v5736_v29  ;;  %v2184_v33 = vpop.f32.mrf.mxu0 }
 0x165   : > { %v1814_v10 = vpop.f32.mrf.mxu1 }
 0x166   : > { %v5855_v23 = vadd.f32 %v4593_v30, %v1919_v28  ;;  %v1917_v46 = vadd.f32 %v1814_v10, %v5740_v42  ;;  %v4594_v17 = vpop.f32.mrf.mxu0 }
 0x167   : > { %v4546_v31 = vpop.f32.mrf.mxu1 }
 0x168   : > { %v5858_v16 = vadd.f32 %v2184_v33, %v1917_v46  ;;  %v1920_v49 = vadd.f32 %v4546_v31, %v5744_v11  ;;  %v2187_v14 = vpop.f32.mrf.mxu0 }
 0x169   : > { %v1817_v37 = vpop.f32.mrf.mxu1 }
 0x16a   : > { %v5861_v20 = vadd.f32 %v4594_v17, %v1920_v49  ;;  %v1918_v47 = vadd.f32 %v1817_v37, %v5749_v44  ;;  %v4597_v29 = vpop.f32.mrf.mxu0 }
 0x16b   : > { %v4549_v12 = vpop.f32.mrf.mxu1 }
 0x16c   : > { %v5864_v53 = vadd.f32 %v2187_v14, %v1918_v47  ;;  %v1923_v61 = vadd.f32 %v4549_v12, %v5754_v55  ;;  %v2200_v42 = vpop.f32.mrf.mxu0 }
 0x16d   : > { %v1830_v2 = vpop.f32.mrf.mxu1 }
 0x16e   : > { %v5867_v63 = vadd.f32 %v4597_v29, %v1923_v61  ;;  %v1921_v39 = vadd.f32 %v1830_v2, %v5758_v26  ;;  %v4598_v11 = vpop.f32.mrf.mxu0 }
 0x16f   : > { %v4550_v8 = vpop.f32.mrf.mxu1 }
 0x170   : > { %v5870_v22 = vadd.f32 %v2200_v42, %v1921_v39  ;;  %v1924_v35 = vadd.f32 %v4550_v8, %v5762_v45  ;;  %v2203_v44 = vpop.f32.mrf.mxu0 }
 0x171   : > { %v1833_v1 = vpop.f32.mrf.mxu1 }
 0x172   : > { %v5873_v60 = vadd.f32 %v4598_v11, %v1924_v35  ;;  %v1922_v56 = vadd.f32 %v1833_v1, %v5767_v52  ;;  %v4601_v55 = vpop.f32.mrf.mxu0 }
 0x173   : > { %v4553_v9 = vpop.f32.mrf.mxu1 }
 0x174   : > { %v5876_v18 = vadd.f32 %v2203_v44, %v1922_v56  ;;  %v1927_v27 = vadd.f32 %v4553_v9, %v5771_v36  ;;  %v2216_v26 = vpop.f32.mrf.mxu0 }
 0x175   : > { %v1846_v51 = vpop.f32.mrf.mxu1 }
 0x176   : > { %v5879_v43 = vadd.f32 %v4601_v55, %v1927_v27  ;;  %v1925_v15 = vadd.f32 %v1846_v51, %v5775_v34  ;;  %v4602_v45 = vpop.f32.mrf.mxu0 }
 0x177   : > { %v4554_v30 = vpop.f32.mrf.mxu1 }
 0x178   : > { %v5882_v28 = vadd.f32 %v2216_v26, %v1925_v15  ;;  %v1928_v10 = vadd.f32 %v4554_v30, %v5779_v3  ;;  %v2219_v52 = vpop.f32.mrf.mxu0 }
 0x179   : > { %v1849_v33 = vpop.f32.mrf.mxu1 }
 0x17a   : > { %v5885_v46 = vadd.f32 %v4602_v45, %v1928_v10  ;;  %v1926_v31 = vadd.f32 %v1849_v33, %v5783_v48  ;;  %v4605_v36 = vpop.f32.mrf.mxu0 }
 0x17b   : > { %v4557_v17 = vpop.f32.mrf.mxu1 }
 0x17c   : > { %6194 = vst [vmem:[#allocation4_spill] sm:$0xff] %v5885_v46  ;;  %v5888_v49 = vadd.f32 %v2219_v52, %v1926_v31  ;;  %v1931_v37 = vadd.f32 %v4557_v17, %v5787_v21  ;;  %v2232_v34 = vpop.f32.mrf.mxu0 }
 0x17d   : > { %v1862_v14 = vpop.f32.mrf.mxu1 }
 0x17e   : > { %6195 = vst [vmem:[#allocation5_spill] sm:$0xff] %v5888_v49  ;;  %v5891_v47 = vadd.f32 %v4605_v36, %v1931_v37  ;;  %v1929_v12 = vadd.f32 %v1862_v14, %v5791_v41  ;;  %v4606_v3 = vpop.f32.mrf.mxu0 }
 0x17f   : > { %v4558_v29 = vpop.f32.mrf.mxu1 }
 0x180   : > { %6196 = vst [vmem:[#allocation6_spill] sm:$0xff] %v5891_v47  ;;  %v5894_v61 = vadd.f32 %v2232_v34, %v1929_v12  ;;  %v1932_v2 = vadd.f32 %v4558_v29, %v5795_v32  ;;  %v2235_v48 = vpop.f32.mrf.mxu0 }
 0x181   : > { %v1865_v42 = vpop.f32.mrf.mxu1 }
 0x182   : > { %6197 = vst [vmem:[#allocation7_spill] sm:$0xff] %v5894_v61  ;;  %v5897_v39 = vadd.f32 %v4606_v3, %v1932_v2  ;;  %v1930_v8 = vadd.f32 %v1865_v42, %v5799_v6  ;;  %v4609_v21 = vpop.f32.mrf.mxu0 }
 0x183   : > { %v4561_v11 = vpop.f32.mrf.mxu1 }
 0x184   : > { %6198 = vst [vmem:[#allocation8_spill] sm:$0xff] %v5897_v39  ;;  %v5900_v35 = vadd.f32 %v2235_v48, %v1930_v8  ;;  %v1935_v1 = vadd.f32 %v4561_v11, %v5804_v13  ;;  %v2248_v41 = vpop.f32.mrf.mxu0 }
 0x185   : > { %v1878_v44 = vpop.f32.mrf.mxu1 }
 0x186   : > { %6199 = vst [vmem:[#allocation9_spill] sm:$0xff] %v5900_v35  ;;  %v5903_v56 = vadd.f32 %v4609_v21, %v1935_v1  ;;  %v1933_v9 = vadd.f32 %v1878_v44, %v5808_v59  ;;  %v4610_v32 = vpop.f32.mrf.mxu0 }
 0x187   : > { %v4562_v55 = vpop.f32.mrf.mxu1 }
 0x188   : > { %6200 = vst [vmem:[#allocation10_spill] sm:$0xff] %v5903_v56  ;;  %v5906_v27 = vadd.f32 %v2248_v41, %v1933_v9  ;;  %v1936_v51 = vadd.f32 %v4562_v55, %v5812_v24  ;;  %v2251_v6 = vpop.f32.mrf.mxu0 }
 0x189   : > { %v1881_v26 = vpop.f32.mrf.mxu1 }
 0x18a   : > { %6201 = vst [vmem:[#allocation11_spill] sm:$0xff] %v5906_v27  ;;  %v5909_v15 = vadd.f32 %v4610_v32, %v1936_v51  ;;  %v1934_v30 = vadd.f32 %v1881_v26, %v5816_v62  ;;  %v4613_v13 = vpop.f32.mrf.mxu0 }
 0x18b   : > { %v4565_v45 = vpop.f32.mrf.mxu1 }
 0x18c   : > { %6202 = vst [vmem:[#allocation12_spill] sm:$0xff] %v5909_v15  ;;  %v5912_v10 = vadd.f32 %v2251_v6, %v1934_v30  ;;  %v1939_v33 = vadd.f32 %v4565_v45, %v5820_v7  ;;  %v2264_v59 = vpop.f32.mrf.mxu0 }
 0x18d   : > { %v1894_v52 = vpop.f32.mrf.mxu1 }
 0x18e   : > { %6203 = vst [vmem:[#allocation13_spill] sm:$0xff] %v5912_v10  ;;  %v5915_v31 = vadd.f32 %v4613_v13, %v1939_v33  ;;  %v1937_v17 = vadd.f32 %v1894_v52, %v5824_v0  ;;  %v4614_v24 = vpop.f32.mrf.mxu0 }
 0x18f   : > { %v4566_v36 = vpop.f32.mrf.mxu1 }
 0x190   : > { %6204 = vst [vmem:[#allocation14_spill] sm:$0xff] %v5915_v31  ;;  %v5918_v37 = vadd.f32 %v2264_v59, %v1937_v17  ;;  %v1940_v14 = vadd.f32 %v4566_v36, %v5826_v58  ;;  %v2267_v62 = vpop.f32.mrf.mxu0 }
 0x191   : > { %v1897_v34 = vpop.f32.mrf.mxu1 }
 0x192   : > { %6205 = vst [vmem:[#allocation15_spill] sm:$0xff] %v5918_v37  ;;  %v5921_v12 = vadd.f32 %v4614_v24, %v1940_v14  ;;  %v1938_v29 = vadd.f32 %v1897_v34, %v5828_v4  ;;  %v5924_v7 = vpop.f32.mrf.mxu0 }
 0x193   : > { %v4633_v3 = vpop.f32.mrf.mxu1 }
 0x194   : > { %6206 = vst [vmem:[#allocation16_spill] sm:$0xff] %v5921_v12  ;;  %v5926_v2 = vadd.f32 %v2267_v62, %v1938_v29  ;;  %v5928_v48 = vpop.f32.mrf.mxu0 }
 0x195   : > { %v2522_v42 = vpop.f32.mrf.mxu1 }
 0x196   : > { %6207 = vst [vmem:[#allocation17_spill] sm:$0xff] %v5926_v2  ;;  %v5932_v8 = vpop.f32.mrf.mxu0 }
 0x197   : > { %v5930_v0 = vpop.f32.mrf.mxu1 }
 0x198   : > { %v5936_v58 = vpop.f32.mrf.mxu0 }
 0x199   : > { %v5934_v11 = vpop.f32.mrf.mxu1 }
 0x19a   : > { %v5940_v1 = vpop.f32.mrf.mxu0 }
 0x19b   : > { %v5938_v21 = vpop.f32.mrf.mxu1 }
 0x19c   : > { %v5944_v44 = vpop.f32.mrf.mxu0 }
 0x19d   : > { %v5942_v4 = vpop.f32.mrf.mxu1 }
 0x19e   : > { %v5948_v9 = vpop.f32.mrf.mxu0 }
 0x19f   : > { %v5946_v41 = vpop.f32.mrf.mxu1 }
 0x1a0   : > { %v5952_v32 = vpop.f32.mrf.mxu0 }
 0x1a1   : > { %v5950_v55 = vpop.f32.mrf.mxu1 }
 0x1a2   : > { %v5956_v26 = vpop.f32.mrf.mxu0 }
 0x1a3   : > { %v5954_v51 = vpop.f32.mrf.mxu1 }
 0x1a4   : > { %v5960_v30 = vpop.f32.mrf.mxu0 }
 0x1a5   : > { %v5958_v6 = vpop.f32.mrf.mxu1 }
 0x1a6   : > { %v5964_v13 = vpop.f32.mrf.mxu0 }
 0x1a7   : > { %v5962_v45 = vpop.f32.mrf.mxu1 }
 0x1a8   : > { %v5968_v52 = vpop.f32.mrf.mxu0 }
 0x1a9   : > { %v5966_v33 = vpop.f32.mrf.mxu1 }
 0x1aa   : > { %v5972_v17 = vpop.f32.mrf.mxu0 }
 0x1ab   : > { %v5970_v59 = vpop.f32.mrf.mxu1 }
 0x1ac   : > { %v5976_v24 = vpop.f32.mrf.mxu0 }
 0x1ad   : > { %v5974_v36 = vpop.f32.mrf.mxu1 }
 0x1ae   : > { %v5980_v34 = vpop.f32.mrf.mxu0 }
 0x1af   : > { %v5978_v14 = vpop.f32.mrf.mxu1 }
 0x1b0   : > { %v5984_v29 = vpop.f32.mrf.mxu0 }
 0x1b1   : > { %v5982_v62 = vpop.f32.mrf.mxu1 }
 0x1b2   : > { %v5988_v12 = vpop.f32.mrf.mxu0 }
 0x1b3   : > { %v5986_v2 = vpop.f32.mrf.mxu1 }
 0x1b4   : > { %v5992_v31 = vpop.f32.mrf.mxu0 }
 0x1b5   : > { %v5990_v37 = vpop.f32.mrf.mxu1  ;;  %6208 = vst [vmem:[#allocation18_spill] sm:$0xff] %v5992_v31 }
 0x1b6   : > { %v5996_v15 = vpop.f32.mrf.mxu0 }
 0x1b7   : > { %v5994_v10 = vpop.f32.mrf.mxu1  ;;  %6210 = vst [vmem:[#allocation20_spill] sm:$0xff] %v5996_v15 }
 0x1b8   : > { %6209 = vst [vmem:[#allocation19_spill] sm:$0xff] %v5994_v10  ;;  %v6000_v56 = vpop.f32.mrf.mxu0 }
 0x1b9   : > { %v5998_v27 = vpop.f32.mrf.mxu1  ;;  %6212 = vst [vmem:[#allocation22_spill] sm:$0xff] %v6000_v56 }
 0x1ba   : > { %6211 = vst [vmem:[#allocation21_spill] sm:$0xff] %v5998_v27  ;;  %v6004_v39 = vpop.f32.mrf.mxu0 }
 0x1bb   : > { %v6002_v35 = vpop.f32.mrf.mxu1  ;;  %6214 = vst [vmem:[#allocation24_spill] sm:$0xff] %v6004_v39 }
 0x1bc   : > { %6213 = vst [vmem:[#allocation23_spill] sm:$0xff] %v6002_v35  ;;  %v6008_v47 = vpop.f32.mrf.mxu0 }
 0x1bd   : > { %v6006_v61 = vpop.f32.mrf.mxu1  ;;  %6216 = vst [vmem:[#allocation26_spill] sm:$0xff] %v6008_v47 }
 0x1be   : > { %6215 = vst [vmem:[#allocation25_spill] sm:$0xff] %v6006_v61  ;;  %v6012_v46 = vpop.f32.mrf.mxu0 }
 0x1bf   : > { %v6010_v49 = vpop.f32.mrf.mxu1  ;;  %6218 = vst [vmem:[#allocation28_spill] sm:$0xff] %v6012_v46 }
 0x1c0   : > { %6217 = vst [vmem:[#allocation27_spill] sm:$0xff] %v6010_v49  ;;  %v6016_v10 = vpop.f32.mrf.mxu0 }
 0x1c1   : > { %v6014_v31 = vpop.f32.mrf.mxu1  ;;  %6220 = vst [vmem:[#allocation30_spill] sm:$0xff] %v6016_v10 }
 0x1c2   : > { %6219 = vst [vmem:[#allocation29_spill] sm:$0xff] %v6014_v31  ;;  %v6020_v27 = vpop.f32.mrf.mxu0 }
 0x1c3   : > { %v6018_v15 = vpop.f32.mrf.mxu1  ;;  %6222 = vst [vmem:[#allocation32_spill] sm:$0xff] %v6020_v27 }
 0x1c4   : > { %6221 = vst [vmem:[#allocation31_spill] sm:$0xff] %v6018_v15  ;;  %v6024_v35 = vpop.f32.mrf.mxu0 }
 0x1c5   : > { %v6022_v56 = vpop.f32.mrf.mxu1  ;;  %6224 = vst [vmem:[#allocation34_spill] sm:$0xff] %v6024_v35 }
 0x1c6   : > { %6223 = vst [vmem:[#allocation33_spill] sm:$0xff] %v6022_v56  ;;  %v6028_v61 = vpop.f32.mrf.mxu0  ;;  %v2651_v56 = vadd.f32 %v4633_v3, %v5831_v57  ;;  %v2650_v57 = vadd.f32 %v5934_v11, %v5840_v19 }
 0x1c7   : > { %v6026_v39 = vpop.f32.mrf.mxu1  ;;  %6226 = vst [vmem:[#allocation36_spill] sm:$0xff] %v6028_v61  ;;  %v2649_v61 = vadd.f32 %v2522_v42, %v5834_v25 }
 0x1c8   : > { %6225 = vst [vmem:[#allocation35_spill] sm:$0xff] %v6026_v39  ;;  %v6032_v49 = vpop.f32.mrf.mxu0 }
 0x1c9   : > { %v6030_v47 = vpop.f32.mrf.mxu1  ;;  %6228 = vst [vmem:[#allocation38_spill] sm:$0xff] %v6032_v49 }
 0x1ca   : > { %6227 = vst [vmem:[#allocation37_spill] sm:$0xff] %v6030_v47  ;;  %v6036_v31 = vpop.f32.mrf.mxu0 }
 0x1cb   : > { %v6034_v46 = vpop.f32.mrf.mxu1  ;;  %6230 = vst [vmem:[#allocation40_spill] sm:$0xff] %v6036_v31  ;;  %v2652_v31 = vadd.f32 %v5930_v0, %v5837_v38 }
 0x1cc   : > { %6229 = vst [vmem:[#allocation39_spill] sm:$0xff] %v6034_v46  ;;  %v6040_v27 = vpop.f32.mrf.mxu0  ;;  %v3022_v46 = vadd.f32 %v5924_v7, %v2651_v56  ;;  %v2655_v7 = vadd.f32 %v5938_v21, %v5843_v54  ;;  %v2656_v54 = vadd.f32 %v5946_v41, %v5849_v50  ;;  %v2659_v50 = vadd.f32 %v5954_v51, %v5855_v23 }
 0x1cd   : > { %v6038_v10 = vpop.f32.mrf.mxu1  ;;  %6232 = vst [vmem:[#allocation42_spill] sm:$0xff] %v6040_v27  ;;  %v3020_v27 = vadd.f32 %v5928_v48, %v2649_v61  ;;  %v3023_v38 = vadd.f32 %v5932_v8, %v2652_v31  ;;  %v2660_v23 = vadd.f32 %v5962_v45, %v5861_v20  ;;  %v2663_v20 = vadd.f32 %v5970_v59, %v5867_v63 }
 0x1ce   : > { %6231 = vst [vmem:[#allocation41_spill] sm:$0xff] %v6038_v10  ;;  %v6045_v39 = vpop.f32.mrf.mxu0  ;;  %v3026_v31 = vadd.f32 %v5940_v1, %v2655_v7  ;;  %v2664_v63 = vadd.f32 %v5978_v14, %v5873_v60  ;;  %v2667_v60 = vadd.f32 %v5986_v2, %v5879_v43  ;;  %v6236_v43 = vld [vmem:[#allocation19_spill] sm:$0xff] }
 0x1cf   : > { %v6043_v35 = vpop.f32.mrf.mxu1  ;;  %6233 = vst [vmem:[#allocation43_spill] sm:$0xff] %v6045_v39 }
 0x1d0   : > { %v6050_v49 = vpop.f32.mrf.mxu0 }
 0x1d1   : > { %v6048_v47 = vpop.f32.mrf.mxu1  ;;  %6234 = vst [vmem:[#allocation44_spill] sm:$0xff] %v6050_v49 }
 0x1d2   : > { %v4777_v15 = vpop.f32.mrf.mxu0 }
 0x1d3   : > { %v4729_v10 = vpop.f32.mrf.mxu1 }
 0x1d4   : > { %v3392_v3 = vadd.f32 %v4729_v10, %v3022_v46  ;;  %v3633_v56 = vpop.f32.mrf.mxu0  ;;  %v3021_v46 = vadd.f32 %v5936_v58, %v2650_v57  ;;  %v2653_v10 = vadd.f32 %v5942_v4, %v5846_v5  ;;  %v2654_v5 = vadd.f32 %v5950_v55, %v5852_v40 }
 0x1d5   : > { %v3263_v25 = vpop.f32.mrf.mxu1  ;;  %v2657_v40 = vadd.f32 %v5958_v6, %v5858_v16  ;;  %v2658_v16 = vadd.f32 %v5966_v33, %v5864_v53  ;;  %v2661_v53 = vadd.f32 %v5974_v36, %v5870_v22  ;;  %v2662_v22 = vadd.f32 %v5982_v62, %v5876_v18 }
 0x1d6   : > { %v3762_v61 = vadd.f32 %v4777_v15, %v3392_v3  ;;  %v3390_v42 = vadd.f32 %v3263_v25, %v3020_v27  ;;  %v4778_v19 = vpop.f32.mrf.mxu0  ;;  %v3024_v21 = vadd.f32 %v5944_v44, %v2653_v10  ;;  %v3027_v25 = vadd.f32 %v5948_v9, %v2656_v54 }
 0x1d7   : > { %v4730_v48 = vpop.f32.mrf.mxu1  ;;  %v3029_v54 = vadd.f32 %v5968_v52, %v2658_v16  ;;  %v2665_v18 = vadd.f32 %v5990_v37, %v5882_v28  ;;  %v6239_v28 = vld [vmem:[#allocation21_spill] sm:$0xff] }
 0x1d8   : > { %3858 = vst [vmem:[%s6063_s24 + $0x10] sm:$0xff] %v3762_v61  ;;  %v3760_v0 = vadd.f32 %v3633_v56, %v3390_v42  ;;  %v3393_v11 = vadd.f32 %v4730_v48, %v3023_v38  ;;  %v3636_v39 = vpop.f32.mrf.mxu0  ;;  %v3025_v38 = vadd.f32 %v5952_v32, %v2654_v5  ;;  %v3030_v61 = vadd.f32 %v5956_v26, %v2659_v50 }
 0x1d9   : > { %v3266_v49 = vpop.f32.mrf.mxu1  ;;  %v3032_v5 = vadd.f32 %v5976_v24, %v2661_v53  ;;  %v3033_v50 = vadd.f32 %v5984_v29, %v2662_v22 }
 0x1da   : > { %3856 = vst [vmem:[%s6063_s24] sm:$0xff] %v3760_v0  ;;  %v3763_v27 = vadd.f32 %v4778_v19, %v3393_v11  ;;  %v3391_v15 = vadd.f32 %v3266_v49, %v3021_v46  ;;  %v4781_v58 = vpop.f32.mrf.mxu0  ;;  %v3028_v19 = vadd.f32 %v5960_v30, %v2657_v40  ;;  %v3031_v0 = vadd.f32 %v5964_v13, %v2660_v23 }
 0x1db   : > { %v4733_v8 = vpop.f32.mrf.mxu1 }
 0x1dc   : > { %3859 = vst [vmem:[%s6063_s24 + $0x18] sm:$0xff] %v3763_v27  ;;  %v3761_v4 = vadd.f32 %v3636_v39, %v3391_v15  ;;  %v3396_v57 = vadd.f32 %v4733_v8, %v3026_v31  ;;  %v3649_v1 = vpop.f32.mrf.mxu0  ;;  %v3034_v8 = vadd.f32 %v5972_v17, %v2663_v20 }
 0x1dd   : > { %v3279_v3 = vpop.f32.mrf.mxu1 }
 0x1de   : > { %3857 = vst [vmem:[%s6063_s24 + $0x8] sm:$0xff] %v3761_v4  ;;  %v3766_v49 = vadd.f32 %v4781_v58, %v3396_v57  ;;  %v3394_v41 = vadd.f32 %v3279_v3, %v3024_v21  ;;  %v4782_v44 = vpop.f32.mrf.mxu0  ;;  %v3035_v3 = vadd.f32 %v5980_v34, %v2664_v63 }
 0x1df   : > { %v4734_v56 = vpop.f32.mrf.mxu1 }
 0x1e0   : > { %3862 = vst [vmem:[%s6063_s24 + $0x30] sm:$0xff] %v3766_v49  ;;  %v3764_v39 = vadd.f32 %v3649_v1, %v3394_v41  ;;  %v3397_v55 = vadd.f32 %v4734_v56, %v3027_v25  ;;  %v3652_v9 = vpop.f32.mrf.mxu0  ;;  %v3038_v56 = vadd.f32 %v5988_v12, %v2667_v60 }
 0x1e1   : > { %v3282_v7 = vpop.f32.mrf.mxu1 }
 0x1e2   : > { %3860 = vst [vmem:[%s6063_s24 + $0x20] sm:$0xff] %v3764_v39  ;;  %v3767_v51 = vadd.f32 %v4782_v44, %v3397_v55  ;;  %v3395_v42 = vadd.f32 %v3282_v7, %v3025_v38  ;;  %v4785_v32 = vpop.f32.mrf.mxu0  ;;  %v6235_v44 = vld [vmem:[#allocation4_spill] sm:$0xff]  ;;  %v6237_v55 = vld [vmem:[#allocation18_spill] sm:$0xff] }
 0x1e3   : > { %v4737_v48 = vpop.f32.mrf.mxu1  ;;  %v2668_v2 = vadd.f32 %v6236_v43, %v6235_v44  ;;  %v3036_v7 = vadd.f32 %v6237_v55, %v2665_v18  ;;  %v6256_v43 = vld [vmem:[#allocation11_spill] sm:$0xff] }
 0x1e4   : > { %3863 = vst [vmem:[%s6063_s24 + $0x38] sm:$0xff] %v3767_v51  ;;  %v3765_v6 = vadd.f32 %v3652_v9, %v3395_v42  ;;  %v3400_v46 = vadd.f32 %v4737_v48, %v3030_v61  ;;  %v3665_v26 = vpop.f32.mrf.mxu0  ;;  %v6238_v9 = vld [vmem:[#allocation5_spill] sm:$0xff]  ;;  %v6240_v42 = vld [vmem:[#allocation20_spill] sm:$0xff] }
 0x1e5   : > { %v3295_v10 = vpop.f32.mrf.mxu1  ;;  %v2666_v37 = vadd.f32 %v6239_v28, %v6238_v9  ;;  %v3039_v48 = vadd.f32 %v6240_v42, %v2668_v2  ;;  %v6257_v2 = vld [vmem:[#allocation33_spill] sm:$0xff]  ;;  %v6259_v28 = vld [vmem:[#allocation12_spill] sm:$0xff] }
 0x1e6   : > { %3861 = vst [vmem:[%s6063_s24 + $0x28] sm:$0xff] %v3765_v6  ;;  %v3770_v45 = vadd.f32 %v4785_v32, %v3400_v46  ;;  %v3398_v11 = vadd.f32 %v3295_v10, %v3028_v19  ;;  %v4786_v30 = vpop.f32.mrf.mxu0  ;;  %v6241_v32 = vld [vmem:[#allocation6_spill] sm:$0xff]  ;;  %v6242_v19 = vld [vmem:[#allocation23_spill] sm:$0xff] }
 0x1e7   : > { %v4738_v31 = vpop.f32.mrf.mxu1  ;;  %v2671_v16 = vadd.f32 %v6242_v19, %v6241_v32  ;;  %v6262_v19 = vld [vmem:[#allocation13_spill] sm:$0xff] }
 0x1e8   : > { %3866 = vst [vmem:[%s6063_s24 + $0x50] sm:$0xff] %v3770_v45  ;;  %v3768_v33 = vadd.f32 %v3665_v26, %v3398_v11  ;;  %v3401_v27 = vadd.f32 %v4738_v31, %v3031_v0  ;;  %v3668_v13 = vpop.f32.mrf.mxu0  ;;  %v6243_v0 = vld [vmem:[#allocation22_spill] sm:$0xff]  ;;  %v6244_v45 = vld [vmem:[#allocation7_spill] sm:$0xff]  ;;  %v6245_v11 = vld [vmem:[#allocation25_spill] sm:$0xff] }
 0x1e9   : > { %v3298_v15 = vpop.f32.mrf.mxu1  ;;  %v3037_v20 = vadd.f32 %v6243_v0, %v2666_v37  ;;  %v2669_v31 = vadd.f32 %v6245_v11, %v6244_v45  ;;  %v6260_v37 = vld [vmem:[#allocation35_spill] sm:$0xff]  ;;  %v6265_v11 = vld [vmem:[#allocation14_spill] sm:$0xff] }
 0x1ea   : > { %3864 = vst [vmem:[%s6063_s24 + $0x40] sm:$0xff] %v3768_v33  ;;  %v3771_v59 = vadd.f32 %v4786_v30, %v3401_v27  ;;  %v3399_v58 = vadd.f32 %v3298_v15, %v3029_v54  ;;  %v4789_v52 = vpop.f32.mrf.mxu0  ;;  %v6246_v27 = vld [vmem:[#allocation24_spill] sm:$0xff] }
 0x1eb   : > { %v4741_v21 = vpop.f32.mrf.mxu1  ;;  %v3042_v15 = vadd.f32 %v6246_v27, %v2671_v16  ;;  %v6263_v16 = vld [vmem:[#allocation37_spill] sm:$0xff] }
 0x1ec   : > { %3867 = vst [vmem:[%s6063_s24 + $0x58] sm:$0xff] %v3771_v59  ;;  %v3769_v36 = vadd.f32 %v3668_v13, %v3399_v58  ;;  %v3404_v4 = vadd.f32 %v4741_v21, %v3034_v8  ;;  %v3681_v17 = vpop.f32.mrf.mxu0  ;;  %v6247_v13 = vld [vmem:[#allocation8_spill] sm:$0xff]  ;;  %v6248_v8 = vld [vmem:[#allocation27_spill] sm:$0xff] }
 0x1ed   : > { %v3311_v57 = vpop.f32.mrf.mxu1  ;;  %v2672_v63 = vadd.f32 %v6248_v8, %v6247_v13  ;;  %v6268_v8 = vld [vmem:[#allocation15_spill] sm:$0xff] }
 0x1ee   : > { %3865 = vst [vmem:[%s6063_s24 + $0x48] sm:$0xff] %v3769_v36  ;;  %v3774_v14 = vadd.f32 %v4789_v52, %v3404_v4  ;;  %v3402_v1 = vadd.f32 %v3311_v57, %v3032_v5  ;;  %v4790_v24 = vpop.f32.mrf.mxu0  ;;  %v6249_v5 = vld [vmem:[#allocation26_spill] sm:$0xff]  ;;  %v6250_v36 = vld [vmem:[#allocation9_spill] sm:$0xff] }
 0x1ef   : > { %v4742_v25 = vpop.f32.mrf.mxu1  ;;  %v3040_v22 = vadd.f32 %v6249_v5, %v2669_v31  ;;  %v6251_v4 = vld [vmem:[#allocation29_spill] sm:$0xff]  ;;  %v6266_v31 = vld [vmem:[#allocation39_spill] sm:$0xff] }
 0x1f0   : > { %3870 = vst [vmem:[%s6063_s24 + $0x70] sm:$0xff] %v3774_v14  ;;  %v3772_v62 = vadd.f32 %v3681_v17, %v3402_v1  ;;  %v3405_v49 = vadd.f32 %v4742_v25, %v3035_v3  ;;  %v3684_v34 = vpop.f32.mrf.mxu0  ;;  %v2670_v57 = vadd.f32 %v6251_v4, %v6250_v36  ;;  %v6252_v1 = vld [vmem:[#allocation28_spill] sm:$0xff] }
 0x1f1   : > { %v3314_v41 = vpop.f32.mrf.mxu1  ;;  %v3043_v25 = vadd.f32 %v6252_v1, %v2672_v63  ;;  %v6269_v63 = vld [vmem:[#allocation41_spill] sm:$0xff]  ;;  %v6271_v4 = vld [vmem:[#allocation16_spill] sm:$0xff]  ;;  %v6272_v1 = vld [vmem:[#allocation42_spill] sm:$0xff] }
 0x1f2   : > { %3868 = vst [vmem:[%s6063_s24 + $0x60] sm:$0xff] %v3772_v62  ;;  %v3775_v38 = vadd.f32 %v4790_v24, %v3405_v49  ;;  %v3403_v40 = vadd.f32 %v3314_v41, %v3033_v50  ;;  %v4793_v29 = vpop.f32.mrf.mxu0  ;;  %v6253_v24 = vld [vmem:[#allocation10_spill] sm:$0xff]  ;;  %v6254_v50 = vld [vmem:[#allocation31_spill] sm:$0xff] }
 0x1f3   : > { %v4745_v39 = vpop.f32.mrf.mxu1  ;;  %v2675_v18 = vadd.f32 %v6254_v50, %v6253_v24  ;;  %v6273_v24 = vld [vmem:[#allocation17_spill] sm:$0xff] }
 0x1f4   : > { %3871 = vst [vmem:[%s6063_s24 + $0x78] sm:$0xff] %v3775_v38  ;;  %v3773_v61 = vadd.f32 %v3684_v34, %v3403_v40  ;;  %v3408_v23 = vadd.f32 %v4745_v39, %v3038_v56  ;;  %v3697_v12 = vpop.f32.mrf.mxu0  ;;  %v6255_v56 = vld [vmem:[#allocation30_spill] sm:$0xff]  ;;  %v2673_v38 = vadd.f32 %v6257_v2, %v6256_v43  ;;  %v2678_v50 = vadd.f32 %v6048_v47, %v6273_v24 }
 0x1f5   : > { %v3327_v51 = vpop.f32.mrf.mxu1  ;;  %v3041_v44 = vadd.f32 %v6255_v56, %v2670_v57  ;;  %v2680_v57 = vadd.f32 %v6043_v35, %v6271_v4 }
 0x1f6   : > { %3869 = vst [vmem:[%s6063_s24 + $0x68] sm:$0xff] %v3773_v61  ;;  %v3778_v6 = vadd.f32 %v4793_v29, %v3408_v23  ;;  %v3406_v46 = vadd.f32 %v3327_v51, %v3036_v7  ;;  %v4794_v26 = vpop.f32.mrf.mxu0  ;;  %v6258_v7 = vld [vmem:[#allocation32_spill] sm:$0xff]  ;;  %v2676_v61 = vadd.f32 %v6260_v37, %v6259_v28 }
 0x1f7   : > { %v4746_v10 = vpop.f32.mrf.mxu1  ;;  %v3046_v9 = vadd.f32 %v6258_v7, %v2675_v18 }
 0x1f8   : > { %3874 = vst [vmem:[%s6063_s24 + $0x90] sm:$0xff] %v3778_v6  ;;  %v3776_v30 = vadd.f32 %v3697_v12, %v3406_v46  ;;  %v3409_v54 = vadd.f32 %v4746_v10, %v3039_v48  ;;  %v3700_v33 = vpop.f32.mrf.mxu0  ;;  %v6261_v48 = vld [vmem:[#allocation34_spill] sm:$0xff]  ;;  %v2674_v6 = vadd.f32 %v6263_v16, %v6262_v19 }
 0x1f9   : > { %v3330_v53 = vpop.f32.mrf.mxu1  ;;  %v3044_v32 = vadd.f32 %v6261_v48, %v2673_v38  ;;  %v6275_v38 = vld [vmem:[#allocation44_spill] sm:$0xff] }
 0x1fa   : > { %3872 = vst [vmem:[%s6063_s24 + $0x80] sm:$0xff] %v3776_v30  ;;  %v3779_v59 = vadd.f32 %v4794_v26, %v3409_v54  ;;  %v3407_v58 = vadd.f32 %v3330_v53, %v3037_v20  ;;  %v4797_v52 = vpop.f32.mrf.mxu0  ;;  %v6264_v20 = vld [vmem:[#allocation36_spill] sm:$0xff]  ;;  %v2679_v30 = vadd.f32 %v6266_v31, %v6265_v11 }
 0x1fb   : > { %v4749_v21 = vpop.f32.mrf.mxu1  ;;  %v3047_v45 = vadd.f32 %v6264_v20, %v2676_v61 }
 0x1fc   : > { %3875 = vst [vmem:[%s6063_s24 + $0x98] sm:$0xff] %v3779_v59  ;;  %v3777_v17 = vadd.f32 %v3700_v33, %v3407_v58  ;;  %v3412_v3 = vadd.f32 %v4749_v21, %v3042_v15  ;;  %v3713_v14 = vpop.f32.mrf.mxu0  ;;  %v6267_v15 = vld [vmem:[#allocation38_spill] sm:$0xff]  ;;  %v2677_v59 = vadd.f32 %v6269_v63, %v6268_v8 }
 0x1fd   : > { %v3343_v60 = vpop.f32.mrf.mxu1  ;;  %v3045_v13 = vadd.f32 %v6267_v15, %v2674_v6 }
 0x1fe   : > { %3873 = vst [vmem:[%s6063_s24 + $0x88] sm:$0xff] %v3777_v17  ;;  %v3782_v62 = vadd.f32 %v4797_v52, %v3412_v3  ;;  %v3410_v49 = vadd.f32 %v3343_v60, %v3040_v22  ;;  %v4798_v34 = vpop.f32.mrf.mxu0  ;;  %v6270_v22 = vld [vmem:[#allocation40_spill] sm:$0xff] }
 0x1ff   : > { %v4750_v41 = vpop.f32.mrf.mxu1  ;;  %v3050_v36 = vadd.f32 %v6270_v22, %v2679_v30 }
 0x200   : > { %3878 = vst [vmem:[%s6063_s24 + $0xb0] sm:$0xff] %v3782_v62  ;;  %v3780_v40 = vadd.f32 %v3713_v14, %v3410_v49  ;;  %v3413_v39 = vadd.f32 %v4750_v41, %v3043_v25  ;;  %v3716_v55 = vpop.f32.mrf.mxu0  ;;  %v3048_v25 = vadd.f32 %v6272_v1, %v2677_v59 }
 0x201   : > { %v3346_v29 = vpop.f32.mrf.mxu1 }
 0x202   : > { %3876 = vst [vmem:[%s6063_s24 + $0xa0] sm:$0xff] %v3780_v40  ;;  %v3783_v23 = vadd.f32 %v4798_v34, %v3413_v39  ;;  %v3411_v51 = vadd.f32 %v3346_v29, %v3041_v44  ;;  %v4801_v42 = vpop.f32.mrf.mxu0  ;;  %v6274_v34 = vld [vmem:[#allocation43_spill] sm:$0xff]  ;;  %v3049_v40 = vadd.f32 %v6275_v38, %v2678_v50 }
 0x203   : > { %v4753_v12 = vpop.f32.mrf.mxu1  ;;  %v3051_v35 = vadd.f32 %v6274_v34, %v2680_v57 }
 0x204   : > { %3879 = vst [vmem:[%s6063_s24 + $0xb8] sm:$0xff] %v3783_v23  ;;  %v3781_v46 = vadd.f32 %v3716_v55, %v3411_v51  ;;  %v3416_v10 = vadd.f32 %v4753_v12, %v3046_v9  ;;  %v3729_v0 = vpop.f32.mrf.mxu0 }
 0x205   : > { %v3359_v26 = vpop.f32.mrf.mxu1 }
 0x206   : > { %3877 = vst [vmem:[%s6063_s24 + $0xa8] sm:$0xff] %v3781_v46  ;;  %v3786_v54 = vadd.f32 %v4801_v42, %v3416_v10  ;;  %v3414_v53 = vadd.f32 %v3359_v26, %v3044_v32  ;;  %v4802_v27 = vpop.f32.mrf.mxu0 }
 0x207   : > { %v4754_v33 = vpop.f32.mrf.mxu1 }
 0x208   : > { %3882 = vst [vmem:[%s6063_s24 + $0xd0] sm:$0xff] %v3786_v54  ;;  %v3784_v58 = vadd.f32 %v3729_v0, %v3414_v53  ;;  %v3417_v21 = vadd.f32 %v4754_v33, %v3047_v45  ;;  %v3732_v5 = vpop.f32.mrf.mxu0 }
 0x209   : > { %v3362_v52 = vpop.f32.mrf.mxu1 }
 0x20a   : > { %3880 = vst [vmem:[%s6063_s24 + $0xc0] sm:$0xff] %v3784_v58  ;;  %v3787_v17 = vadd.f32 %v4802_v27, %v3417_v21  ;;  %v3415_v3 = vadd.f32 %v3362_v52, %v3045_v13  ;;  %v4805_v14 = vpop.f32.mrf.mxu0 }
 0x20b   : > { %v4757_v60 = vpop.f32.mrf.mxu1 }
 0x20c   : > { %3883 = vst [vmem:[%s6063_s24 + $0xd8] sm:$0xff] %v3787_v17  ;;  %v3785_v18 = vadd.f32 %v3732_v5, %v3415_v3  ;;  %v3420_v62 = vadd.f32 %v4757_v60, %v3050_v36  ;;  %v3745_v41 = vpop.f32.mrf.mxu0 }
 0x20d   : > { %v3375_v49 = vpop.f32.mrf.mxu1 }
 0x20e   : > { %3881 = vst [vmem:[%s6063_s24 + $0xc8] sm:$0xff] %v3785_v18  ;;  %v3790_v56 = vadd.f32 %v4805_v14, %v3420_v62  ;;  %v3418_v44 = vadd.f32 %v3375_v49, %v3048_v25  ;;  %v4806_v2 = vpop.f32.mrf.mxu0 }
 0x20f   : > { %v4758_v43 = vpop.f32.mrf.mxu1 }
 0x210   : > { %3886 = vst [vmem:[%s6063_s24 + $0xf0] sm:$0xff] %v3790_v56  ;;  %v3788_v39 = vadd.f32 %v3745_v41, %v3418_v44  ;;  %v3421_v47 = vadd.f32 %v4758_v43, %v3051_v35  ;;  %v3748_v9 = vpop.f32.mrf.mxu0 }
 0x211   : > { %v3378_v29 = vpop.f32.mrf.mxu1 }
 0x212   : > { %3884 = vst [vmem:[%s6063_s24 + $0xe0] sm:$0xff] %v3788_v39  ;;  %v3791_v55 = vadd.f32 %v4806_v2, %v3421_v47  ;;  %v3419_v7 = vadd.f32 %v3378_v29, %v3049_v40 }
 0x214   : > { %3887 = vst [vmem:[%s6063_s24 + $0xf8] sm:$0xff] %v3791_v55  ;;  %v3789_v28 = vadd.f32 %v3748_v9, %v3419_v7 }
 0x216   : > { %3885 = vst [vmem:[%s6063_s24 + $0xe8] sm:$0xff] %v3789_v28 }
 0x217 PF: > { %s15_s18 = sadd.s32 1, %s4911_s18  }
 0x218   : > { %p12_p4 = scmp.ge.s32.totalorder %s15_s18, 4  }
 0x21a   :  { %14 = sbr.rel (!%p12_p4) target bundleno = 1 (0x1), region = 80 }

</bundles_post_ra>
